<compile_context>
chip_gen: v7x
topology: tpu7x:2x2x1
jax: 0.10.0
libtpu: 0.0.40
codegen_flags: <defaults>
</compile_context>

<pallas_src>
import jax
import jax.numpy as jnp
from jax.experimental import pallas as pl
from jax.experimental.pallas import tpu as pltpu

_BN_EPS = 1e-5


# ------------------------------- kernel ------------------------------------ #

def _bn_relu6(acc, gamma, beta):
    """Training-mode BatchNorm2d (biased var, eps=1e-5) + ReLU6 on (C, M) f32.

    gamma / beta: (C, 1) f32 columns.  One-pass per-channel stats along the
    lane (M) axis; all elementwise math stays in f32.
    """
    inv_m = 1.0 / acc.shape[-1]
    s = jnp.sum(acc, axis=-1, keepdims=True)
    sq = jnp.sum(acc * acc, axis=-1, keepdims=True)
    mean = s * inv_m
    var = sq * inv_m - mean * mean            # biased variance, single pass
    inv = jax.lax.rsqrt(var + _BN_EPS)
    scale = gamma * inv
    shift = beta - mean * scale
    return jnp.clip(acc * scale + shift, 0.0, 6.0)


def _make_block_kernel(cfg):
    cin, c1, c2a, c3a, c4 = cfg["cin"], cfg["c1"], cfg["c2a"], cfg["c3a"], cfg["c4"]
    out_b2, out_b3 = cfg["out_b2"], cfg["out_b3"]
    W, M, P = cfg["W"], cfg["M"], cfg["P"]
    chain2, chain3 = cfg["chain2"], cfg["chain3"]
    c123 = c1 + c2a + c3a

    def kernel(x_ref, masks_ref, ws1_ref, w4_ref, gs1_ref, bs1_ref,
               wt2_ref, gt2_ref, bt2_ref, wt3_ref, gt3_ref, bt3_ref,
               o_ref, scr_ref):
        # Shift-pad columns of the scratch must be zero: masked taps rely on
        # 0 * pad == 0 and uninitialized VMEM may hold NaNs.
        scr_ref[...] = jnp.zeros_like(scr_ref)

        masks = masks_ref[...]                                   # (4, M) f32
        m_for = {(-1, "W"): masks[0:1, :], (1, "W"): masks[1:2, :],
                 (-1, "H"): masks[2:3, :], (1, "H"): masks[3:4, :]}

        def shifted(rows, d):                                    # static shifted read
            return scr_ref[0:rows, P + d:P + d + M]

        # ---- stage 1: branch1 / branch2-reduce / branch3-reduce 1x1 convs on x ----
        x_bf = x_ref[...]                                        # (Cin, M) bf16
        acc123 = jnp.dot(ws1_ref[...], x_bf, preferred_element_type=jnp.float32)
        y123 = _bn_relu6(acc123, gs1_ref[0:c123, :], bs1_ref[0:c123, :])

        # ---- branch4: 3x3/s1/p1 maxpool (9 masked shifted reads) -> 1x1 conv ----
        scr_ref[0:cin, P:P + M] = x_bf.astype(jnp.float32)
        pooled = shifted(cin, 0)
        for dh in (-1, 0, 1):
            for dw in (-1, 0, 1):
                if dh == 0 and dw == 0:
                    continue
                tap = shifted(cin, dh * W + dw)
                mk = m_for[(dh, "H")] if dh != 0 else None
                if dw != 0:
                    mk = m_for[(dw, "W")] if mk is None else mk * m_for[(dw, "W")]
                tap = jnp.where(mk > 0.0, tap, jnp.float32(-1e30))
                pooled = jnp.maximum(pooled, tap)
        acc4 = jnp.dot(w4_ref[...], pooled.astype(jnp.bfloat16),
                       preferred_element_type=jnp.float32)
        y4 = _bn_relu6(acc4, gs1_ref[c123:, :], bs1_ref[c123:, :])

        o_ref[0:c1, :] = y123[0:c1, :].astype(o_ref.dtype)
        o_ref[c1 + out_b2 + out_b3:, :] = y4.astype(o_ref.dtype)

        # ---- branch2 / branch3 factorized 1x3 / 3x1 tails, fully in VMEM ----
        def run_chain(y, w_ref, g_ref, b_ref, specs):
            off_w, off_c = 0, 0
            for axis, cout in specs:
                rows = y.shape[0]
                scr_ref[0:rows, P:P + M] = y                     # shift-padded activation
                acc = None
                for t in range(3):                               # 3 taps -> 3 matmuls
                    d = (t - 1) * (W if axis == "H" else 1)
                    tap = shifted(rows, d)
                    if t != 1:                                   # zero boundary-crossing taps
                        tap = tap * m_for[(t - 1, axis)]
                    wt = w_ref[off_w + t * cout:off_w + (t + 1) * cout, :]
                    acc_t = jnp.dot(wt.astype(jnp.float32), tap,
                                    preferred_element_type=jnp.float32)
                    acc = acc_t if acc is None else acc + acc_t
                y = _bn_relu6(acc, g_ref[off_c:off_c + cout, :],
                              b_ref[off_c:off_c + cout, :])
                off_w += 3 * cout
                off_c += cout
            return y

        out2 = run_chain(y123[c1:c1 + c2a, :], wt2_ref, gt2_ref, bt2_ref, chain2)
        o_ref[c1:c1 + out_b2, :] = out2.astype(o_ref.dtype)
        out3 = run_chain(y123[c1 + c2a:, :], wt3_ref, gt3_ref, bt3_ref, chain3)
        o_ref[c1 + out_b2:c1 + out_b2 + out_b3, :] = out3.astype(o_ref.dtype)

    return kernel


# --------------------------- wrapper / glue --------------------------------- #

def inception_block_b(x_nchw, params):
    """Inception_block_ModuleB forward (training-mode BN), one pallas_call.

    params[branch] = list of (weight, gamma, beta, padding) per conv layer.
    Conv biases are intentionally absent: they cancel exactly under
    training-mode BatchNorm.  Returns NCHW, channels = [b1, b2, b3, b4].
    """
    n, cin, h, w = x_nchw.shape
    m = n * h * w          # lane axis (512 here -> multiple of 128 -> dense stores)
    f32, bf16 = jnp.float32, jnp.bfloat16

    # Channels-first flattening: one transpose in, one transpose out at the end.
    x_cf = jnp.transpose(x_nchw, (1, 0, 2, 3)).reshape(cin, m)

    # (4, M) validity masks for the in-kernel shifted taps:
    #   row 0: col w-1 exists, row 1: col w+1 exists,
    #   row 2: row h-1 exists, row 3: row h+1 exists.
    col = jnp.arange(m, dtype=jnp.int32) % w
    row = (jnp.arange(m, dtype=jnp.int32) // w) % h
    masks = jnp.stack([col >= 1, col <= w - 2, row >= 1, row <= h - 2],
                      axis=0).astype(f32)

    # ---- parameter packing (tiny; constant-folded under jit) ----
    (w1, g1, be1, _) = params["b1"][0]
    (w2a, g2a, be2a, _) = params["b2"][0]
    (w3a, g3a, be3a, _) = params["b3"][0]
    (w4, g4, be4, _) = params["b4"][0]
    c1, c2a, c3a, c4 = w1.shape[0], w2a.shape[0], w3a.shape[0], w4.shape[0]

    ws1 = jnp.concatenate([w1.reshape(c1, cin), w2a.reshape(c2a, cin),
                           w3a.reshape(c3a, cin)], axis=0).astype(bf16)
    w4_2d = w4.reshape(c4, cin).astype(bf16)
    gs1 = jnp.concatenate([g1, g2a, g3a, g4]).reshape(-1, 1).astype(f32)
    bs1 = jnp.concatenate([be1, be2a, be3a, be4]).reshape(-1, 1).astype(f32)

    def pack_chain(layers):
        wrows, grows, brows, specs = [], [], [], []
        for (wgt, gm, bt, _pad) in layers:
            cout, cin_l, kh, kw = wgt.shape
            axis = "H" if kh == 3 else "W"
            taps = wgt.reshape(cout, cin_l, 3)      # tap axis last for both 1x3 and 3x1
            wrows += [taps[:, :, t] for t in range(3)]
            grows.append(gm.reshape(-1, 1))
            brows.append(bt.reshape(-1, 1))
            specs.append((axis, cout))
        return (jnp.concatenate(wrows, axis=0).astype(bf16),
                jnp.concatenate(grows, axis=0).astype(f32),
                jnp.concatenate(brows, axis=0).astype(f32), specs)

    wt2, gt2, bt2, chain2 = pack_chain(params["b2"][1:])
    wt3, gt3, bt3, chain3 = pack_chain(params["b3"][1:])
    out_b2, out_b3 = chain2[-1][1], chain3[-1][1]
    c_total = c1 + out_b2 + out_b3 + c4

    pad = w + 1                                  # covers +-(W+1) pool and +-W conv shifts
    scr_rows = max(cin, c2a, c3a)
    cfg = dict(cin=cin, c1=c1, c2a=c2a, c3a=c3a, c4=c4, out_b2=out_b2,
               out_b3=out_b3, W=w, M=m, P=pad, chain2=chain2, chain3=chain3)

    vmem = pl.BlockSpec(memory_space=pltpu.MemorySpace.VMEM)
    out_cf = pl.pallas_call(
        _make_block_kernel(cfg),
        out_shape=jax.ShapeDtypeStruct((c_total, m), f32),
        in_specs=[vmem] * 12,
        out_specs=vmem,
        scratch_shapes=[pltpu.VMEM((scr_rows, m + 2 * pad), f32)],
    )(x_cf.astype(bf16), masks, ws1, w4_2d, gs1, bs1,
      wt2, gt2, bt2, wt3, gt3, bt3)

    return jnp.transpose(out_cf.reshape(c_total, n, h, w), (1, 0, 2, 3))


# ------------------------------- demo / test --------------------------------- #

if __name__ == "__main__":
    root = jax.random.PRNGKey(0)
    kx, kparams = jax.random.split(root)

    # Small shapes consistent with the module.
    N, Cin, H, W = 2, 4, 16, 16
    out_b1, red_b2, out_b2, red_b3, out_b3, out_b4 = 8, 4, 8, 4, 8, 8

    # layer configs: (cout, cin, kh, kw, padding)
    layer_cfg = {
        "b1": [(out_b1, Cin, 1, 1, (0, 0))],
        "b2": [(red_b2, Cin, 1, 1, (0, 0)),
               (red_b2, red_b2, 1, 3, (0, 1)),
               (out_b2, red_b2, 3, 1, (1, 0))],
        "b3": [(red_b3, Cin, 1, 1, (0, 0)),
               (red_b3, red_b3, 1, 3, (0, 1)),
               (red_b3, red_b3, 3, 1, (1, 0)),
               (red_b3, red_b3, 1, 3, (0, 1)),
               (out_b3, red_b3, 3, 1, (1, 0))],
        "b4": [(out_b4, Cin, 1, 1, (0, 0))],
    }

    params = {}      # Pallas path (no conv bias: it cancels under training-mode BN)
    params_ref = {}  # full params incl. conv bias, for the pure-JAX reference
    key = kparams
    for name, layers in layer_cfg.items():
        plist, rlist = [], []
        for (cout, cin_l, kh, kw, pad) in layers:
            key, sub = jax.random.split(key)
            k1, k2, k3, k4 = jax.random.split(sub, 4)
            wgt = 0.1 * jax.random.normal(k1, (cout, cin_l, kh, kw), jnp.float32)
            bias = 0.1 * jax.random.normal(k2, (cout,), jnp.float32)
            gamma = 1.0 + 0.1 * jax.random.normal(k3, (cout,), jnp.float32)
            beta = 0.1 * jax.random.normal(k4, (cout,), jnp.float32)
            plist.append((wgt, gamma, beta, pad))
            rlist.append((wgt, bias, gamma, beta, pad))
        params[name] = plist
        params_ref[name] = rlist

    x = jax.random.normal(kx, (N, Cin, H, W), jnp.float32)

    fwd = jax.jit(lambda xx: inception_block_b(xx, params))
    y = jax.block_until_ready(fwd(x))

    # ---- pure-JAX f32 reference (Conv2d + training-mode BN + ReLU6 per layer) ----
    def ref_conv_bn_relu6(z, wgt, bias, gamma, beta, pad):
        ph, pw = pad
        c = wgt.shape[0]
        z = jax.lax.conv_general_dilated(
            z, wgt, window_strides=(1, 1), padding=((ph, ph), (pw, pw)),
            dimension_numbers=("NCHW", "OIHW", "NCHW")) + bias.reshape(1, c, 1, 1)
        mean = jnp.mean(z, axis=(0, 2, 3), keepdims=True)
        var = jnp.mean((z - mean) ** 2, axis=(0, 2, 3), keepdims=True)
        z = (z - mean) * jax.lax.rsqrt(var + _BN_EPS)
        z = z * gamma.reshape(1, c, 1, 1) + beta.reshape(1, c, 1, 1)
        return jnp.clip(z, 0.0, 6.0)

    def ref_branch(z, layers):
        for (wgt, bias, gamma, beta, pad) in layers:
            z = ref_conv_bn_relu6(z, wgt, bias, gamma, beta, pad)
        return z

    r1 = ref_branch(x, params_ref["b1"])
    r2 = ref_branch(x, params_ref["b2"])
    r3 = ref_branch(x, params_ref["b3"])
    x_pool = jax.lax.reduce_window(
        x, -jnp.inf, jax.lax.max, (1, 1, 3, 3), (1, 1, 1, 1),
        padding=((0, 0), (0, 0), (1, 1), (1, 1)))
    r4 = ref_branch(x_pool, params_ref["b4"])
    ref = jnp.concatenate([r1, r2, r3, r4], axis=1)

    assert y.shape == (N, out_b1 + out_b2 + out_b3 + out_b4, H, W), y.shape
    max_err = float(jnp.max(jnp.abs(y - ref)))
    mean_err = float(jnp.mean(jnp.abs(y - ref)))
    # bf16 MXU operands (x, weights) vs. an f32 reference -> loosen tolerance vs. pure-f32.
    assert jnp.allclose(y, ref, atol=5e-2, rtol=5e-2), (max_err, mean_err)
    assert mean_err < 2e-2, (max_err, mean_err)
    print("KERNEL_OK")
</pallas_src>

<mosaic_0001>
module attributes {stable_mosaic.version = 11 : i64} {
  func.func @kernel(%arg0: memref<4x512xbf16, #tpu.memory_space<vmem>>, %arg1: memref<4x512xf32, #tpu.memory_space<vmem>>, %arg2: memref<16x4xbf16, #tpu.memory_space<vmem>>, %arg3: memref<8x4xbf16, #tpu.memory_space<vmem>>, %arg4: memref<24x1xf32, #tpu.memory_space<vmem>>, %arg5: memref<24x1xf32, #tpu.memory_space<vmem>>, %arg6: memref<36x4xbf16, #tpu.memory_space<vmem>>, %arg7: memref<12x1xf32, #tpu.memory_space<vmem>>, %arg8: memref<12x1xf32, #tpu.memory_space<vmem>>, %arg9: memref<60x4xbf16, #tpu.memory_space<vmem>>, %arg10: memref<20x1xf32, #tpu.memory_space<vmem>>, %arg11: memref<20x1xf32, #tpu.memory_space<vmem>>, %arg12: memref<32x512xf32, #tpu.memory_space<vmem>>, %arg13: memref<4x546xf32, #tpu.memory_space<vmem>>) attributes {dimension_semantics = [], scalar_prefetch = 0 : i64, scratch_operands = 1 : i64, tpu.core_type = #tpu.core_type<tc>} {
    %cst = arith.constant 0.000000e+00 : f32
    %0 = vector.broadcast %cst : f32 to vector<4x546xf32>
    %c0 = arith.constant 0 : index
    %c0_0 = arith.constant 0 : index
    %1 = vector.load %arg13[%c0, %c0_0] : memref<4x546xf32, #tpu.memory_space<vmem>>, vector<4x546xf32>
    tpu.vector_store %arg13[%c0, %c0_0], %0 {strides = array<i32>} : memref<4x546xf32, #tpu.memory_space<vmem>>, vector<4x546xf32>,
    %c0_1 = arith.constant 0 : index
    %c0_2 = arith.constant 0 : index
    %2 = vector.load %arg1[%c0_1, %c0_2] : memref<4x512xf32, #tpu.memory_space<vmem>>, vector<4x512xf32>
    %3 = vector.extract_strided_slice %2 {offsets = [0, 0], sizes = [1, 512], strides = [1, 1]} : vector<4x512xf32> to vector<1x512xf32>
    %4 = vector.extract_strided_slice %2 {offsets = [1, 0], sizes = [1, 512], strides = [1, 1]} : vector<4x512xf32> to vector<1x512xf32>
    %5 = vector.extract_strided_slice %2 {offsets = [2, 0], sizes = [1, 512], strides = [1, 1]} : vector<4x512xf32> to vector<1x512xf32>
    %6 = vector.extract_strided_slice %2 {offsets = [3, 0], sizes = [1, 512], strides = [1, 1]} : vector<4x512xf32> to vector<1x512xf32>
    %c0_3 = arith.constant 0 : index
    %c0_4 = arith.constant 0 : index
    %7 = vector.load %arg0[%c0_3, %c0_4] : memref<4x512xbf16, #tpu.memory_space<vmem>>, vector<4x512xbf16>
    %c0_5 = arith.constant 0 : index
    %c0_6 = arith.constant 0 : index
    %8 = vector.load %arg2[%c0_5, %c0_6] : memref<16x4xbf16, #tpu.memory_space<vmem>>, vector<16x4xbf16>
    %cst_7 = arith.constant dense<0.000000e+00> : vector<16x512xf32>
    %9 = tpu.matmul %8, %7, %cst_7 {dimension_numbers = #tpu.dot_dimension_numbers<[1], [0], [0], [1], [0, 0, 1, 1], [], []>} : vector<16x4xbf16>, vector<4x512xbf16>, vector<16x512xf32> -> vector<16x512xf32>
    %c0_8 = arith.constant 0 : index
    %c0_9 = arith.constant 0 : index
    %10 = vector.load %arg4[%c0_8, %c0_9] : memref<24x1xf32, #tpu.memory_space<vmem>>, vector<16x1xf32>
    %c0_10 = arith.constant 0 : index
    %c0_11 = arith.constant 0 : index
    %11 = vector.load %arg5[%c0_10, %c0_11] : memref<24x1xf32, #tpu.memory_space<vmem>>, vector<16x1xf32>
    %cst_12 = arith.constant dense<0.000000e+00> : vector<16xf32>
    %12 = vector.multi_reduction <add>, %9, %cst_12 [1] : vector<16x512xf32> to vector<16xf32>
    %13 = vector.shape_cast %12 : vector<16xf32> to vector<16x1xf32>
    %14 = arith.mulf %9, %9 : vector<16x512xf32>
    %cst_13 = arith.constant dense<0.000000e+00> : vector<16xf32>
    %15 = vector.multi_reduction <add>, %14, %cst_13 [1] : vector<16x512xf32> to vector<16xf32>
    %16 = vector.shape_cast %15 : vector<16xf32> to vector<16x1xf32>
    %cst_14 = arith.constant 0.001953125 : f32
    %17 = vector.broadcast %cst_14 : f32 to vector<16x1xf32>
    %18 = arith.mulf %13, %17 : vector<16x1xf32>
    %cst_15 = arith.constant 0.001953125 : f32
    %19 = vector.broadcast %cst_15 : f32 to vector<16x1xf32>
    %20 = arith.mulf %16, %19 : vector<16x1xf32>
    %21 = arith.mulf %18, %18 : vector<16x1xf32>
    %22 = arith.subf %20, %21 : vector<16x1xf32>
    %cst_16 = arith.constant 9.99999974E-6 : f32
    %23 = vector.broadcast %cst_16 : f32 to vector<16x1xf32>
    %24 = arith.addf %22, %23 : vector<16x1xf32>
    %25 = math.rsqrt %24 : vector<16x1xf32>
    %26 = arith.mulf %10, %25 : vector<16x1xf32>
    %27 = arith.mulf %18, %26 : vector<16x1xf32>
    %28 = arith.subf %11, %27 : vector<16x1xf32>
    %29 = vector.broadcast %26 : vector<16x1xf32> to vector<16x512xf32>
    %30 = arith.mulf %9, %29 : vector<16x512xf32>
    %31 = vector.broadcast %28 : vector<16x1xf32> to vector<16x512xf32>
    %32 = arith.addf %30, %31 : vector<16x512xf32>
    %cst_17 = arith.constant 0.000000e+00 : f32
    %cst_18 = arith.constant 6.000000e+00 : f32
    %33 = vector.broadcast %cst_17 : f32 to vector<16x512xf32>
    %34 = arith.maximumf %33, %32 : vector<16x512xf32>
    %35 = vector.broadcast %cst_18 : f32 to vector<16x512xf32>
    %36 = arith.minimumf %35, %34 : vector<16x512xf32>
    %37 = arith.extf %7 : vector<4x512xbf16> to vector<4x512xf32>
    %c0_19 = arith.constant 0 : index
    %c17 = arith.constant 17 : index
    %38 = vector.load %arg13[%c0_19, %c17] : memref<4x546xf32, #tpu.memory_space<vmem>>, vector<4x512xf32>
    tpu.vector_store %arg13[%c0_19, %c17], %37 {strides = array<i32>} : memref<4x546xf32, #tpu.memory_space<vmem>>, vector<4x512xf32>,
    %c0_20 = arith.constant 0 : index
    %c17_21 = arith.constant 17 : index
    %39 = vector.load %arg13[%c0_20, %c17_21] : memref<4x546xf32, #tpu.memory_space<vmem>>, vector<4x512xf32>
    %c0_22 = arith.constant 0 : index
    %c0_23 = arith.constant 0 : index
    %40 = vector.load %arg13[%c0_22, %c0_23] : memref<4x546xf32, #tpu.memory_space<vmem>>, vector<4x512xf32>
    %41 = arith.mulf %5, %3 : vector<1x512xf32>
    %cst_24 = arith.constant 0.000000e+00 : f32
    %42 = vector.broadcast %cst_24 : f32 to vector<1x512xf32>
    %43 = arith.cmpf ogt, %41, %42 : vector<1x512xf32>
    %cst_25 = arith.constant -1.000000e+30 : f32
    %44 = vector.shape_cast %43 : vector<1x512xi1> to vector<1x512xi1>
    %45 = vector.broadcast %44 : vector<1x512xi1> to vector<4x512xi1>
    %46 = vector.broadcast %cst_25 : f32 to vector<4x512xf32>
    %47 = arith.select %45, %40, %46 : vector<4x512xi1>, vector<4x512xf32>
    %48 = arith.maximumf %39, %47 : vector<4x512xf32>
    %c0_26 = arith.constant 0 : index
    %c1 = arith.constant 1 : index
    %49 = vector.load %arg13[%c0_26, %c1] : memref<4x546xf32, #tpu.memory_space<vmem>>, vector<4x512xf32>
    %cst_27 = arith.constant 0.000000e+00 : f32
    %50 = vector.broadcast %cst_27 : f32 to vector<1x512xf32>
    %51 = arith.cmpf ogt, %5, %50 : vector<1x512xf32>
    %cst_28 = arith.constant -1.000000e+30 : f32
    %52 = vector.shape_cast %51 : vector<1x512xi1> to vector<1x512xi1>
    %53 = vector.broadcast %52 : vector<1x512xi1> to vector<4x512xi1>
    %54 = vector.broadcast %cst_28 : f32 to vector<4x512xf32>
    %55 = arith.select %53, %49, %54 : vector<4x512xi1>, vector<4x512xf32>
    %56 = arith.maximumf %48, %55 : vector<4x512xf32>
    %c0_29 = arith.constant 0 : index
    %c2 = arith.constant 2 : index
    %57 = vector.load %arg13[%c0_29, %c2] : memref<4x546xf32, #tpu.memory_space<vmem>>, vector<4x512xf32>
    %58 = arith.mulf %5, %4 : vector<1x512xf32>
    %cst_30 = arith.constant 0.000000e+00 : f32
    %59 = vector.broadcast %cst_30 : f32 to vector<1x512xf32>
    %60 = arith.cmpf ogt, %58, %59 : vector<1x512xf32>
    %cst_31 = arith.constant -1.000000e+30 : f32
    %61 = vector.shape_cast %60 : vector<1x512xi1> to vector<1x512xi1>
    %62 = vector.broadcast %61 : vector<1x512xi1> to vector<4x512xi1>
    %63 = vector.broadcast %cst_31 : f32 to vector<4x512xf32>
    %64 = arith.select %62, %57, %63 : vector<4x512xi1>, vector<4x512xf32>
    %65 = arith.maximumf %56, %64 : vector<4x512xf32>
    %c0_32 = arith.constant 0 : index
    %c16 = arith.constant 16 : index
    %66 = vector.load %arg13[%c0_32, %c16] : memref<4x546xf32, #tpu.memory_space<vmem>>, vector<4x512xf32>
    %cst_33 = arith.constant 0.000000e+00 : f32
    %67 = vector.broadcast %cst_33 : f32 to vector<1x512xf32>
    %68 = arith.cmpf ogt, %3, %67 : vector<1x512xf32>
    %cst_34 = arith.constant -1.000000e+30 : f32
    %69 = vector.shape_cast %68 : vector<1x512xi1> to vector<1x512xi1>
    %70 = vector.broadcast %69 : vector<1x512xi1> to vector<4x512xi1>
    %71 = vector.broadcast %cst_34 : f32 to vector<4x512xf32>
    %72 = arith.select %70, %66, %71 : vector<4x512xi1>, vector<4x512xf32>
    %73 = arith.maximumf %65, %72 : vector<4x512xf32>
    %c0_35 = arith.constant 0 : index
    %c18 = arith.constant 18 : index
    %74 = vector.load %arg13[%c0_35, %c18] : memref<4x546xf32, #tpu.memory_space<vmem>>, vector<4x512xf32>
    %cst_36 = arith.constant 0.000000e+00 : f32
    %75 = vector.broadcast %cst_36 : f32 to vector<1x512xf32>
    %76 = arith.cmpf ogt, %4, %75 : vector<1x512xf32>
    %cst_37 = arith.constant -1.000000e+30 : f32
    %77 = vector.shape_cast %76 : vector<1x512xi1> to vector<1x512xi1>
    %78 = vector.broadcast %77 : vector<1x512xi1> to vector<4x512xi1>
    %79 = vector.broadcast %cst_37 : f32 to vector<4x512xf32>
    %80 = arith.select %78, %74, %79 : vector<4x512xi1>, vector<4x512xf32>
    %81 = arith.maximumf %73, %80 : vector<4x512xf32>
    %c0_38 = arith.constant 0 : index
    %c32 = arith.constant 32 : index
    %82 = vector.load %arg13[%c0_38, %c32] : memref<4x546xf32, #tpu.memory_space<vmem>>, vector<4x512xf32>
    %83 = arith.mulf %6, %3 : vector<1x512xf32>
    %cst_39 = arith.constant 0.000000e+00 : f32
    %84 = vector.broadcast %cst_39 : f32 to vector<1x512xf32>
    %85 = arith.cmpf ogt, %83, %84 : vector<1x512xf32>
    %cst_40 = arith.constant -1.000000e+30 : f32
    %86 = vector.shape_cast %85 : vector<1x512xi1> to vector<1x512xi1>
    %87 = vector.broadcast %86 : vector<1x512xi1> to vector<4x512xi1>
    %88 = vector.broadcast %cst_40 : f32 to vector<4x512xf32>
    %89 = arith.select %87, %82, %88 : vector<4x512xi1>, vector<4x512xf32>
    %90 = arith.maximumf %81, %89 : vector<4x512xf32>
    %c0_41 = arith.constant 0 : index
    %c33 = arith.constant 33 : index
    %91 = vector.load %arg13[%c0_41, %c33] : memref<4x546xf32, #tpu.memory_space<vmem>>, vector<4x512xf32>
    %cst_42 = arith.constant 0.000000e+00 : f32
    %92 = vector.broadcast %cst_42 : f32 to vector<1x512xf32>
    %93 = arith.cmpf ogt, %6, %92 : vector<1x512xf32>
    %cst_43 = arith.constant -1.000000e+30 : f32
    %94 = vector.shape_cast %93 : vector<1x512xi1> to vector<1x512xi1>
    %95 = vector.broadcast %94 : vector<1x512xi1> to vector<4x512xi1>
    %96 = vector.broadcast %cst_43 : f32 to vector<4x512xf32>
    %97 = arith.select %95, %91, %96 : vector<4x512xi1>, vector<4x512xf32>
    %98 = arith.maximumf %90, %97 : vector<4x512xf32>
    %c0_44 = arith.constant 0 : index
    %c34 = arith.constant 34 : index
    %99 = vector.load %arg13[%c0_44, %c34] : memref<4x546xf32, #tpu.memory_space<vmem>>, vector<4x512xf32>
    %100 = arith.mulf %6, %4 : vector<1x512xf32>
    %cst_45 = arith.constant 0.000000e+00 : f32
    %101 = vector.broadcast %cst_45 : f32 to vector<1x512xf32>
    %102 = arith.cmpf ogt, %100, %101 : vector<1x512xf32>
    %cst_46 = arith.constant -1.000000e+30 : f32
    %103 = vector.shape_cast %102 : vector<1x512xi1> to vector<1x512xi1>
    %104 = vector.broadcast %103 : vector<1x512xi1> to vector<4x512xi1>
    %105 = vector.broadcast %cst_46 : f32 to vector<4x512xf32>
    %106 = arith.select %104, %99, %105 : vector<4x512xi1>, vector<4x512xf32>
    %107 = arith.maximumf %98, %106 : vector<4x512xf32>
    %c0_47 = arith.constant 0 : index
    %c0_48 = arith.constant 0 : index
    %108 = vector.load %arg3[%c0_47, %c0_48] : memref<8x4xbf16, #tpu.memory_space<vmem>>, vector<8x4xbf16>
    %109 = arith.truncf %107 : vector<4x512xf32> to vector<4x512xbf16>
    %cst_49 = arith.constant dense<0.000000e+00> : vector<8x512xf32>
    %110 = tpu.matmul %108, %109, %cst_49 {dimension_numbers = #tpu.dot_dimension_numbers<[1], [0], [0], [1], [0, 0, 1, 1], [], []>} : vector<8x4xbf16>, vector<4x512xbf16>, vector<8x512xf32> -> vector<8x512xf32>
    %c16_50 = arith.constant 16 : index
    %c0_51 = arith.constant 0 : index
    %111 = vector.load %arg4[%c16_50, %c0_51] : memref<24x1xf32, #tpu.memory_space<vmem>>, vector<8x1xf32>
    %c16_52 = arith.constant 16 : index
    %c0_53 = arith.constant 0 : index
    %112 = vector.load %arg5[%c16_52, %c0_53] : memref<24x1xf32, #tpu.memory_space<vmem>>, vector<8x1xf32>
    %cst_54 = arith.constant dense<0.000000e+00> : vector<8xf32>
    %113 = vector.multi_reduction <add>, %110, %cst_54 [1] : vector<8x512xf32> to vector<8xf32>
    %114 = vector.shape_cast %113 : vector<8xf32> to vector<8x1xf32>
    %115 = arith.mulf %110, %110 : vector<8x512xf32>
    %cst_55 = arith.constant dense<0.000000e+00> : vector<8xf32>
    %116 = vector.multi_reduction <add>, %115, %cst_55 [1] : vector<8x512xf32> to vector<8xf32>
    %117 = vector.shape_cast %116 : vector<8xf32> to vector<8x1xf32>
    %cst_56 = arith.constant 0.001953125 : f32
    %118 = vector.broadcast %cst_56 : f32 to vector<8x1xf32>
    %119 = arith.mulf %114, %118 : vector<8x1xf32>
    %cst_57 = arith.constant 0.001953125 : f32
    %120 = vector.broadcast %cst_57 : f32 to vector<8x1xf32>
    %121 = arith.mulf %117, %120 : vector<8x1xf32>
    %122 = arith.mulf %119, %119 : vector<8x1xf32>
    %123 = arith.subf %121, %122 : vector<8x1xf32>
    %cst_58 = arith.constant 9.99999974E-6 : f32
    %124 = vector.broadcast %cst_58 : f32 to vector<8x1xf32>
    %125 = arith.addf %123, %124 : vector<8x1xf32>
    %126 = math.rsqrt %125 : vector<8x1xf32>
    %127 = arith.mulf %111, %126 : vector<8x1xf32>
    %128 = arith.mulf %119, %127 : vector<8x1xf32>
    %129 = arith.subf %112, %128 : vector<8x1xf32>
    %130 = vector.broadcast %127 : vector<8x1xf32> to vector<8x512xf32>
    %131 = arith.mulf %110, %130 : vector<8x512xf32>
    %132 = vector.broadcast %129 : vector<8x1xf32> to vector<8x512xf32>
    %133 = arith.addf %131, %132 : vector<8x512xf32>
    %cst_59 = arith.constant 0.000000e+00 : f32
    %cst_60 = arith.constant 6.000000e+00 : f32
    %134 = vector.broadcast %cst_59 : f32 to vector<8x512xf32>
    %135 = arith.maximumf %134, %133 : vector<8x512xf32>
    %136 = vector.broadcast %cst_60 : f32 to vector<8x512xf32>
    %137 = arith.minimumf %136, %135 : vector<8x512xf32>
    %138 = vector.extract_strided_slice %36 {offsets = [0, 0], sizes = [8, 512], strides = [1, 1]} : vector<16x512xf32> to vector<8x512xf32>
    %c0_61 = arith.constant 0 : index
    %c0_62 = arith.constant 0 : index
    %139 = vector.load %arg12[%c0_61, %c0_62] : memref<32x512xf32, #tpu.memory_space<vmem>>, vector<8x512xf32>
    tpu.vector_store %arg12[%c0_61, %c0_62], %138 {strides = array<i32>} : memref<32x512xf32, #tpu.memory_space<vmem>>, vector<8x512xf32>,
    %c24 = arith.constant 24 : index
    %c0_63 = arith.constant 0 : index
    %140 = vector.load %arg12[%c24, %c0_63] : memref<32x512xf32, #tpu.memory_space<vmem>>, vector<8x512xf32>
    tpu.vector_store %arg12[%c24, %c0_63], %137 {strides = array<i32>} : memref<32x512xf32, #tpu.memory_space<vmem>>, vector<8x512xf32>,
    %141 = vector.extract_strided_slice %36 {offsets = [8, 0], sizes = [4, 512], strides = [1, 1]} : vector<16x512xf32> to vector<4x512xf32>
    %c0_64 = arith.constant 0 : index
    %c17_65 = arith.constant 17 : index
    %142 = vector.load %arg13[%c0_64, %c17_65] : memref<4x546xf32, #tpu.memory_space<vmem>>, vector<4x512xf32>
    tpu.vector_store %arg13[%c0_64, %c17_65], %141 {strides = array<i32>} : memref<4x546xf32, #tpu.memory_space<vmem>>, vector<4x512xf32>,
    %c0_66 = arith.constant 0 : index
    %c16_67 = arith.constant 16 : index
    %143 = vector.load %arg13[%c0_66, %c16_67] : memref<4x546xf32, #tpu.memory_space<vmem>>, vector<4x512xf32>
    %144 = vector.broadcast %3 : vector<1x512xf32> to vector<4x512xf32>
    %145 = arith.mulf %143, %144 : vector<4x512xf32>
    %c0_68 = arith.constant 0 : index
    %c0_69 = arith.constant 0 : index
    %146 = vector.load %arg6[%c0_68, %c0_69] : memref<36x4xbf16, #tpu.memory_space<vmem>>, vector<4x4xbf16>
    %147 = arith.extf %146 : vector<4x4xbf16> to vector<4x4xf32>
    %cst_70 = arith.constant dense<0.000000e+00> : vector<4x512xf32>
    %148 = tpu.matmul %147, %145, %cst_70 {dimension_numbers = #tpu.dot_dimension_numbers<[1], [0], [0], [1], [0, 0, 1, 1], [], []>} : vector<4x4xf32>, vector<4x512xf32>, vector<4x512xf32> -> vector<4x512xf32>
    %c0_71 = arith.constant 0 : index
    %c17_72 = arith.constant 17 : index
    %149 = vector.load %arg13[%c0_71, %c17_72] : memref<4x546xf32, #tpu.memory_space<vmem>>, vector<4x512xf32>
    %c4 = arith.constant 4 : index
    %c0_73 = arith.constant 0 : index
    %150 = vector.load %arg6[%c4, %c0_73] : memref<36x4xbf16, #tpu.memory_space<vmem>>, vector<4x4xbf16>
    %151 = arith.extf %150 : vector<4x4xbf16> to vector<4x4xf32>
    %cst_74 = arith.constant dense<0.000000e+00> : vector<4x512xf32>
    %152 = tpu.matmul %151, %149, %cst_74 {dimension_numbers = #tpu.dot_dimension_numbers<[1], [0], [0], [1], [0, 0, 1, 1], [], []>} : vector<4x4xf32>, vector<4x512xf32>, vector<4x512xf32> -> vector<4x512xf32>
    %153 = arith.addf %148, %152 : vector<4x512xf32>
    %c0_75 = arith.constant 0 : index
    %c18_76 = arith.constant 18 : index
    %154 = vector.load %arg13[%c0_75, %c18_76] : memref<4x546xf32, #tpu.memory_space<vmem>>, vector<4x512xf32>
    %155 = vector.broadcast %4 : vector<1x512xf32> to vector<4x512xf32>
    %156 = arith.mulf %154, %155 : vector<4x512xf32>
    %c8 = arith.constant 8 : index
    %c0_77 = arith.constant 0 : index
    %157 = vector.load %arg6[%c8, %c0_77] : memref<36x4xbf16, #tpu.memory_space<vmem>>, vector<4x4xbf16>
    %158 = arith.extf %157 : vector<4x4xbf16> to vector<4x4xf32>
    %cst_78 = arith.constant dense<0.000000e+00> : vector<4x512xf32>
    %159 = tpu.matmul %158, %156, %cst_78 {dimension_numbers = #tpu.dot_dimension_numbers<[1], [0], [0], [1], [0, 0, 1, 1], [], []>} : vector<4x4xf32>, vector<4x512xf32>, vector<4x512xf32> -> vector<4x512xf32>
    %160 = arith.addf %153, %159 : vector<4x512xf32>
    %c0_79 = arith.constant 0 : index
    %c0_80 = arith.constant 0 : index
    %161 = vector.load %arg7[%c0_79, %c0_80] : memref<12x1xf32, #tpu.memory_space<vmem>>, vector<4x1xf32>
    %c0_81 = arith.constant 0 : index
    %c0_82 = arith.constant 0 : index
    %162 = vector.load %arg8[%c0_81, %c0_82] : memref<12x1xf32, #tpu.memory_space<vmem>>, vector<4x1xf32>
    %cst_83 = arith.constant dense<0.000000e+00> : vector<4xf32>
    %163 = vector.multi_reduction <add>, %160, %cst_83 [1] : vector<4x512xf32> to vector<4xf32>
    %164 = vector.shape_cast %163 : vector<4xf32> to vector<4x1xf32>
    %165 = arith.mulf %160, %160 : vector<4x512xf32>
    %cst_84 = arith.constant dense<0.000000e+00> : vector<4xf32>
    %166 = vector.multi_reduction <add>, %165, %cst_84 [1] : vector<4x512xf32> to vector<4xf32>
    %167 = vector.shape_cast %166 : vector<4xf32> to vector<4x1xf32>
    %cst_85 = arith.constant 0.001953125 : f32
    %168 = vector.broadcast %cst_85 : f32 to vector<4x1xf32>
    %169 = arith.mulf %164, %168 : vector<4x1xf32>
    %cst_86 = arith.constant 0.001953125 : f32
    %170 = vector.broadcast %cst_86 : f32 to vector<4x1xf32>
    %171 = arith.mulf %167, %170 : vector<4x1xf32>
    %172 = arith.mulf %169, %169 : vector<4x1xf32>
    %173 = arith.subf %171, %172 : vector<4x1xf32>
    %cst_87 = arith.constant 9.99999974E-6 : f32
    %174 = vector.broadcast %cst_87 : f32 to vector<4x1xf32>
    %175 = arith.addf %173, %174 : vector<4x1xf32>
    %176 = math.rsqrt %175 : vector<4x1xf32>
    %177 = arith.mulf %161, %176 : vector<4x1xf32>
    %178 = arith.mulf %169, %177 : vector<4x1xf32>
    %179 = arith.subf %162, %178 : vector<4x1xf32>
    %180 = vector.broadcast %177 : vector<4x1xf32> to vector<4x512xf32>
    %181 = arith.mulf %160, %180 : vector<4x512xf32>
    %182 = vector.broadcast %179 : vector<4x1xf32> to vector<4x512xf32>
    %183 = arith.addf %181, %182 : vector<4x512xf32>
    %cst_88 = arith.constant 0.000000e+00 : f32
    %cst_89 = arith.constant 6.000000e+00 : f32
    %184 = vector.broadcast %cst_88 : f32 to vector<4x512xf32>
    %185 = arith.maximumf %184, %183 : vector<4x512xf32>
    %186 = vector.broadcast %cst_89 : f32 to vector<4x512xf32>
    %187 = arith.minimumf %186, %185 : vector<4x512xf32>
    %c0_90 = arith.constant 0 : index
    %c17_91 = arith.constant 17 : index
    %188 = vector.load %arg13[%c0_90, %c17_91] : memref<4x546xf32, #tpu.memory_space<vmem>>, vector<4x512xf32>
    tpu.vector_store %arg13[%c0_90, %c17_91], %187 {strides = array<i32>} : memref<4x546xf32, #tpu.memory_space<vmem>>, vector<4x512xf32>,
    %c0_92 = arith.constant 0 : index
    %c1_93 = arith.constant 1 : index
    %189 = vector.load %arg13[%c0_92, %c1_93] : memref<4x546xf32, #tpu.memory_space<vmem>>, vector<4x512xf32>
    %190 = vector.broadcast %5 : vector<1x512xf32> to vector<4x512xf32>
    %191 = arith.mulf %189, %190 : vector<4x512xf32>
    %c12 = arith.constant 12 : index
    %c0_94 = arith.constant 0 : index
    %192 = vector.load %arg6[%c12, %c0_94] : memref<36x4xbf16, #tpu.memory_space<vmem>>, vector<8x4xbf16>
    %193 = arith.extf %192 : vector<8x4xbf16> to vector<8x4xf32>
    %cst_95 = arith.constant dense<0.000000e+00> : vector<8x512xf32>
    %194 = tpu.matmul %193, %191, %cst_95 {dimension_numbers = #tpu.dot_dimension_numbers<[1], [0], [0], [1], [0, 0, 1, 1], [], []>} : vector<8x4xf32>, vector<4x512xf32>, vector<8x512xf32> -> vector<8x512xf32>
    %c0_96 = arith.constant 0 : index
    %c17_97 = arith.constant 17 : index
    %195 = vector.load %arg13[%c0_96, %c17_97] : memref<4x546xf32, #tpu.memory_space<vmem>>, vector<4x512xf32>
    %c20 = arith.constant 20 : index
    %c0_98 = arith.constant 0 : index
    %196 = vector.load %arg6[%c20, %c0_98] : memref<36x4xbf16, #tpu.memory_space<vmem>>, vector<8x4xbf16>
    %197 = arith.extf %196 : vector<8x4xbf16> to vector<8x4xf32>
    %cst_99 = arith.constant dense<0.000000e+00> : vector<8x512xf32>
    %198 = tpu.matmul %197, %195, %cst_99 {dimension_numbers = #tpu.dot_dimension_numbers<[1], [0], [0], [1], [0, 0, 1, 1], [], []>} : vector<8x4xf32>, vector<4x512xf32>, vector<8x512xf32> -> vector<8x512xf32>
    %199 = arith.addf %194, %198 : vector<8x512xf32>
    %c0_100 = arith.constant 0 : index
    %c33_101 = arith.constant 33 : index
    %200 = vector.load %arg13[%c0_100, %c33_101] : memref<4x546xf32, #tpu.memory_space<vmem>>, vector<4x512xf32>
    %201 = vector.broadcast %6 : vector<1x512xf32> to vector<4x512xf32>
    %202 = arith.mulf %200, %201 : vector<4x512xf32>
    %c28 = arith.constant 28 : index
    %c0_102 = arith.constant 0 : index
    %203 = vector.load %arg6[%c28, %c0_102] : memref<36x4xbf16, #tpu.memory_space<vmem>>, vector<8x4xbf16>
    %204 = arith.extf %203 : vector<8x4xbf16> to vector<8x4xf32>
    %cst_103 = arith.constant dense<0.000000e+00> : vector<8x512xf32>
    %205 = tpu.matmul %204, %202, %cst_103 {dimension_numbers = #tpu.dot_dimension_numbers<[1], [0], [0], [1], [0, 0, 1, 1], [], []>} : vector<8x4xf32>, vector<4x512xf32>, vector<8x512xf32> -> vector<8x512xf32>
    %206 = arith.addf %199, %205 : vector<8x512xf32>
    %c4_104 = arith.constant 4 : index
    %c0_105 = arith.constant 0 : index
    %207 = vector.load %arg7[%c4_104, %c0_105] : memref<12x1xf32, #tpu.memory_space<vmem>>, vector<8x1xf32>
    %c4_106 = arith.constant 4 : index
    %c0_107 = arith.constant 0 : index
    %208 = vector.load %arg8[%c4_106, %c0_107] : memref<12x1xf32, #tpu.memory_space<vmem>>, vector<8x1xf32>
    %cst_108 = arith.constant dense<0.000000e+00> : vector<8xf32>
    %209 = vector.multi_reduction <add>, %206, %cst_108 [1] : vector<8x512xf32> to vector<8xf32>
    %210 = vector.shape_cast %209 : vector<8xf32> to vector<8x1xf32>
    %211 = arith.mulf %206, %206 : vector<8x512xf32>
    %cst_109 = arith.constant dense<0.000000e+00> : vector<8xf32>
    %212 = vector.multi_reduction <add>, %211, %cst_109 [1] : vector<8x512xf32> to vector<8xf32>
    %213 = vector.shape_cast %212 : vector<8xf32> to vector<8x1xf32>
    %cst_110 = arith.constant 0.001953125 : f32
    %214 = vector.broadcast %cst_110 : f32 to vector<8x1xf32>
    %215 = arith.mulf %210, %214 : vector<8x1xf32>
    %cst_111 = arith.constant 0.001953125 : f32
    %216 = vector.broadcast %cst_111 : f32 to vector<8x1xf32>
    %217 = arith.mulf %213, %216 : vector<8x1xf32>
    %218 = arith.mulf %215, %215 : vector<8x1xf32>
    %219 = arith.subf %217, %218 : vector<8x1xf32>
    %cst_112 = arith.constant 9.99999974E-6 : f32
    %220 = vector.broadcast %cst_112 : f32 to vector<8x1xf32>
    %221 = arith.addf %219, %220 : vector<8x1xf32>
    %222 = math.rsqrt %221 : vector<8x1xf32>
    %223 = arith.mulf %207, %222 : vector<8x1xf32>
    %224 = arith.mulf %215, %223 : vector<8x1xf32>
    %225 = arith.subf %208, %224 : vector<8x1xf32>
    %226 = vector.broadcast %223 : vector<8x1xf32> to vector<8x512xf32>
    %227 = arith.mulf %206, %226 : vector<8x512xf32>
    %228 = vector.broadcast %225 : vector<8x1xf32> to vector<8x512xf32>
    %229 = arith.addf %227, %228 : vector<8x512xf32>
    %cst_113 = arith.constant 0.000000e+00 : f32
    %cst_114 = arith.constant 6.000000e+00 : f32
    %230 = vector.broadcast %cst_113 : f32 to vector<8x512xf32>
    %231 = arith.maximumf %230, %229 : vector<8x512xf32>
    %232 = vector.broadcast %cst_114 : f32 to vector<8x512xf32>
    %233 = arith.minimumf %232, %231 : vector<8x512xf32>
    %c8_115 = arith.constant 8 : index
    %c0_116 = arith.constant 0 : index
    %234 = vector.load %arg12[%c8_115, %c0_116] : memref<32x512xf32, #tpu.memory_space<vmem>>, vector<8x512xf32>
    tpu.vector_store %arg12[%c8_115, %c0_116], %233 {strides = array<i32>} : memref<32x512xf32, #tpu.memory_space<vmem>>, vector<8x512xf32>,
    %235 = vector.extract_strided_slice %36 {offsets = [12, 0], sizes = [4, 512], strides = [1, 1]} : vector<16x512xf32> to vector<4x512xf32>
    %c0_117 = arith.constant 0 : index
    %c17_118 = arith.constant 17 : index
    %236 = vector.load %arg13[%c0_117, %c17_118] : memref<4x546xf32, #tpu.memory_space<vmem>>, vector<4x512xf32>
    tpu.vector_store %arg13[%c0_117, %c17_118], %235 {strides = array<i32>} : memref<4x546xf32, #tpu.memory_space<vmem>>, vector<4x512xf32>,
    %c0_119 = arith.constant 0 : index
    %c16_120 = arith.constant 16 : index
    %237 = vector.load %arg13[%c0_119, %c16_120] : memref<4x546xf32, #tpu.memory_space<vmem>>, vector<4x512xf32>
    %238 = vector.broadcast %3 : vector<1x512xf32> to vector<4x512xf32>
    %239 = arith.mulf %237, %238 : vector<4x512xf32>
    %c0_121 = arith.constant 0 : index
    %c0_122 = arith.constant 0 : index
    %240 = vector.load %arg9[%c0_121, %c0_122] : memref<60x4xbf16, #tpu.memory_space<vmem>>, vector<4x4xbf16>
    %241 = arith.extf %240 : vector<4x4xbf16> to vector<4x4xf32>
    %cst_123 = arith.constant dense<0.000000e+00> : vector<4x512xf32>
    %242 = tpu.matmul %241, %239, %cst_123 {dimension_numbers = #tpu.dot_dimension_numbers<[1], [0], [0], [1], [0, 0, 1, 1], [], []>} : vector<4x4xf32>, vector<4x512xf32>, vector<4x512xf32> -> vector<4x512xf32>
    %c0_124 = arith.constant 0 : index
    %c17_125 = arith.constant 17 : index
    %243 = vector.load %arg13[%c0_124, %c17_125] : memref<4x546xf32, #tpu.memory_space<vmem>>, vector<4x512xf32>
    %c4_126 = arith.constant 4 : index
    %c0_127 = arith.constant 0 : index
    %244 = vector.load %arg9[%c4_126, %c0_127] : memref<60x4xbf16, #tpu.memory_space<vmem>>, vector<4x4xbf16>
    %245 = arith.extf %244 : vector<4x4xbf16> to vector<4x4xf32>
    %cst_128 = arith.constant dense<0.000000e+00> : vector<4x512xf32>
    %246 = tpu.matmul %245, %243, %cst_128 {dimension_numbers = #tpu.dot_dimension_numbers<[1], [0], [0], [1], [0, 0, 1, 1], [], []>} : vector<4x4xf32>, vector<4x512xf32>, vector<4x512xf32> -> vector<4x512xf32>
    %247 = arith.addf %242, %246 : vector<4x512xf32>
    %c0_129 = arith.constant 0 : index
    %c18_130 = arith.constant 18 : index
    %248 = vector.load %arg13[%c0_129, %c18_130] : memref<4x546xf32, #tpu.memory_space<vmem>>, vector<4x512xf32>
    %249 = vector.broadcast %4 : vector<1x512xf32> to vector<4x512xf32>
    %250 = arith.mulf %248, %249 : vector<4x512xf32>
    %c8_131 = arith.constant 8 : index
    %c0_132 = arith.constant 0 : index
    %251 = vector.load %arg9[%c8_131, %c0_132] : memref<60x4xbf16, #tpu.memory_space<vmem>>, vector<4x4xbf16>
    %252 = arith.extf %251 : vector<4x4xbf16> to vector<4x4xf32>
    %cst_133 = arith.constant dense<0.000000e+00> : vector<4x512xf32>
    %253 = tpu.matmul %252, %250, %cst_133 {dimension_numbers = #tpu.dot_dimension_numbers<[1], [0], [0], [1], [0, 0, 1, 1], [], []>} : vector<4x4xf32>, vector<4x512xf32>, vector<4x512xf32> -> vector<4x512xf32>
    %254 = arith.addf %247, %253 : vector<4x512xf32>
    %c0_134 = arith.constant 0 : index
    %c0_135 = arith.constant 0 : index
    %255 = vector.load %arg10[%c0_134, %c0_135] : memref<20x1xf32, #tpu.memory_space<vmem>>, vector<4x1xf32>
    %c0_136 = arith.constant 0 : index
    %c0_137 = arith.constant 0 : index
    %256 = vector.load %arg11[%c0_136, %c0_137] : memref<20x1xf32, #tpu.memory_space<vmem>>, vector<4x1xf32>
    %cst_138 = arith.constant dense<0.000000e+00> : vector<4xf32>
    %257 = vector.multi_reduction <add>, %254, %cst_138 [1] : vector<4x512xf32> to vector<4xf32>
    %258 = vector.shape_cast %257 : vector<4xf32> to vector<4x1xf32>
    %259 = arith.mulf %254, %254 : vector<4x512xf32>
    %cst_139 = arith.constant dense<0.000000e+00> : vector<4xf32>
    %260 = vector.multi_reduction <add>, %259, %cst_139 [1] : vector<4x512xf32> to vector<4xf32>
    %261 = vector.shape_cast %260 : vector<4xf32> to vector<4x1xf32>
    %cst_140 = arith.constant 0.001953125 : f32
    %262 = vector.broadcast %cst_140 : f32 to vector<4x1xf32>
    %263 = arith.mulf %258, %262 : vector<4x1xf32>
    %cst_141 = arith.constant 0.001953125 : f32
    %264 = vector.broadcast %cst_141 : f32 to vector<4x1xf32>
    %265 = arith.mulf %261, %264 : vector<4x1xf32>
    %266 = arith.mulf %263, %263 : vector<4x1xf32>
    %267 = arith.subf %265, %266 : vector<4x1xf32>
    %cst_142 = arith.constant 9.99999974E-6 : f32
    %268 = vector.broadcast %cst_142 : f32 to vector<4x1xf32>
    %269 = arith.addf %267, %268 : vector<4x1xf32>
    %270 = math.rsqrt %269 : vector<4x1xf32>
    %271 = arith.mulf %255, %270 : vector<4x1xf32>
    %272 = arith.mulf %263, %271 : vector<4x1xf32>
    %273 = arith.subf %256, %272 : vector<4x1xf32>
    %274 = vector.broadcast %271 : vector<4x1xf32> to vector<4x512xf32>
    %275 = arith.mulf %254, %274 : vector<4x512xf32>
    %276 = vector.broadcast %273 : vector<4x1xf32> to vector<4x512xf32>
    %277 = arith.addf %275, %276 : vector<4x512xf32>
    %cst_143 = arith.constant 0.000000e+00 : f32
    %cst_144 = arith.constant 6.000000e+00 : f32
    %278 = vector.broadcast %cst_143 : f32 to vector<4x512xf32>
    %279 = arith.maximumf %278, %277 : vector<4x512xf32>
    %280 = vector.broadcast %cst_144 : f32 to vector<4x512xf32>
    %281 = arith.minimumf %280, %279 : vector<4x512xf32>
    %c0_145 = arith.constant 0 : index
    %c17_146 = arith.constant 17 : index
    %282 = vector.load %arg13[%c0_145, %c17_146] : memref<4x546xf32, #tpu.memory_space<vmem>>, vector<4x512xf32>
    tpu.vector_store %arg13[%c0_145, %c17_146], %281 {strides = array<i32>} : memref<4x546xf32, #tpu.memory_space<vmem>>, vector<4x512xf32>,
    %c0_147 = arith.constant 0 : index
    %c1_148 = arith.constant 1 : index
    %283 = vector.load %arg13[%c0_147, %c1_148] : memref<4x546xf32, #tpu.memory_space<vmem>>, vector<4x512xf32>
    %284 = vector.broadcast %5 : vector<1x512xf32> to vector<4x512xf32>
    %285 = arith.mulf %283, %284 : vector<4x512xf32>
    %c12_149 = arith.constant 12 : index
    %c0_150 = arith.constant 0 : index
    %286 = vector.load %arg9[%c12_149, %c0_150] : memref<60x4xbf16, #tpu.memory_space<vmem>>, vector<4x4xbf16>
    %287 = arith.extf %286 : vector<4x4xbf16> to vector<4x4xf32>
    %cst_151 = arith.constant dense<0.000000e+00> : vector<4x512xf32>
    %288 = tpu.matmul %287, %285, %cst_151 {dimension_numbers = #tpu.dot_dimension_numbers<[1], [0], [0], [1], [0, 0, 1, 1], [], []>} : vector<4x4xf32>, vector<4x512xf32>, vector<4x512xf32> -> vector<4x512xf32>
    %c0_152 = arith.constant 0 : index
    %c17_153 = arith.constant 17 : index
    %289 = vector.load %arg13[%c0_152, %c17_153] : memref<4x546xf32, #tpu.memory_space<vmem>>, vector<4x512xf32>
    %c16_154 = arith.constant 16 : index
    %c0_155 = arith.constant 0 : index
    %290 = vector.load %arg9[%c16_154, %c0_155] : memref<60x4xbf16, #tpu.memory_space<vmem>>, vector<4x4xbf16>
    %291 = arith.extf %290 : vector<4x4xbf16> to vector<4x4xf32>
    %cst_156 = arith.constant dense<0.000000e+00> : vector<4x512xf32>
    %292 = tpu.matmul %291, %289, %cst_156 {dimension_numbers = #tpu.dot_dimension_numbers<[1], [0], [0], [1], [0, 0, 1, 1], [], []>} : vector<4x4xf32>, vector<4x512xf32>, vector<4x512xf32> -> vector<4x512xf32>
    %293 = arith.addf %288, %292 : vector<4x512xf32>
    %c0_157 = arith.constant 0 : index
    %c33_158 = arith.constant 33 : index
    %294 = vector.load %arg13[%c0_157, %c33_158] : memref<4x546xf32, #tpu.memory_space<vmem>>, vector<4x512xf32>
    %295 = vector.broadcast %6 : vector<1x512xf32> to vector<4x512xf32>
    %296 = arith.mulf %294, %295 : vector<4x512xf32>
    %c20_159 = arith.constant 20 : index
    %c0_160 = arith.constant 0 : index
    %297 = vector.load %arg9[%c20_159, %c0_160] : memref<60x4xbf16, #tpu.memory_space<vmem>>, vector<4x4xbf16>
    %298 = arith.extf %297 : vector<4x4xbf16> to vector<4x4xf32>
    %cst_161 = arith.constant dense<0.000000e+00> : vector<4x512xf32>
    %299 = tpu.matmul %298, %296, %cst_161 {dimension_numbers = #tpu.dot_dimension_numbers<[1], [0], [0], [1], [0, 0, 1, 1], [], []>} : vector<4x4xf32>, vector<4x512xf32>, vector<4x512xf32> -> vector<4x512xf32>
    %300 = arith.addf %293, %299 : vector<4x512xf32>
    %c4_162 = arith.constant 4 : index
    %c0_163 = arith.constant 0 : index
    %301 = vector.load %arg10[%c4_162, %c0_163] : memref<20x1xf32, #tpu.memory_space<vmem>>, vector<4x1xf32>
    %c4_164 = arith.constant 4 : index
    %c0_165 = arith.constant 0 : index
    %302 = vector.load %arg11[%c4_164, %c0_165] : memref<20x1xf32, #tpu.memory_space<vmem>>, vector<4x1xf32>
    %cst_166 = arith.constant dense<0.000000e+00> : vector<4xf32>
    %303 = vector.multi_reduction <add>, %300, %cst_166 [1] : vector<4x512xf32> to vector<4xf32>
    %304 = vector.shape_cast %303 : vector<4xf32> to vector<4x1xf32>
    %305 = arith.mulf %300, %300 : vector<4x512xf32>
    %cst_167 = arith.constant dense<0.000000e+00> : vector<4xf32>
    %306 = vector.multi_reduction <add>, %305, %cst_167 [1] : vector<4x512xf32> to vector<4xf32>
    %307 = vector.shape_cast %306 : vector<4xf32> to vector<4x1xf32>
    %cst_168 = arith.constant 0.001953125 : f32
    %308 = vector.broadcast %cst_168 : f32 to vector<4x1xf32>
    %309 = arith.mulf %304, %308 : vector<4x1xf32>
    %cst_169 = arith.constant 0.001953125 : f32
    %310 = vector.broadcast %cst_169 : f32 to vector<4x1xf32>
    %311 = arith.mulf %307, %310 : vector<4x1xf32>
    %312 = arith.mulf %309, %309 : vector<4x1xf32>
    %313 = arith.subf %311, %312 : vector<4x1xf32>
    %cst_170 = arith.constant 9.99999974E-6 : f32
    %314 = vector.broadcast %cst_170 : f32 to vector<4x1xf32>
    %315 = arith.addf %313, %314 : vector<4x1xf32>
    %316 = math.rsqrt %315 : vector<4x1xf32>
    %317 = arith.mulf %301, %316 : vector<4x1xf32>
    %318 = arith.mulf %309, %317 : vector<4x1xf32>
    %319 = arith.subf %302, %318 : vector<4x1xf32>
    %320 = vector.broadcast %317 : vector<4x1xf32> to vector<4x512xf32>
    %321 = arith.mulf %300, %320 : vector<4x512xf32>
    %322 = vector.broadcast %319 : vector<4x1xf32> to vector<4x512xf32>
    %323 = arith.addf %321, %322 : vector<4x512xf32>
    %cst_171 = arith.constant 0.000000e+00 : f32
    %cst_172 = arith.constant 6.000000e+00 : f32
    %324 = vector.broadcast %cst_171 : f32 to vector<4x512xf32>
    %325 = arith.maximumf %324, %323 : vector<4x512xf32>
    %326 = vector.broadcast %cst_172 : f32 to vector<4x512xf32>
    %327 = arith.minimumf %326, %325 : vector<4x512xf32>
    %c0_173 = arith.constant 0 : index
    %c17_174 = arith.constant 17 : index
    %328 = vector.load %arg13[%c0_173, %c17_174] : memref<4x546xf32, #tpu.memory_space<vmem>>, vector<4x512xf32>
    tpu.vector_store %arg13[%c0_173, %c17_174], %327 {strides = array<i32>} : memref<4x546xf32, #tpu.memory_space<vmem>>, vector<4x512xf32>,
    %c0_175 = arith.constant 0 : index
    %c16_176 = arith.constant 16 : index
    %329 = vector.load %arg13[%c0_175, %c16_176] : memref<4x546xf32, #tpu.memory_space<vmem>>, vector<4x512xf32>
    %330 = vector.broadcast %3 : vector<1x512xf32> to vector<4x512xf32>
    %331 = arith.mulf %329, %330 : vector<4x512xf32>
    %c24_177 = arith.constant 24 : index
    %c0_178 = arith.constant 0 : index
    %332 = vector.load %arg9[%c24_177, %c0_178] : memref<60x4xbf16, #tpu.memory_space<vmem>>, vector<4x4xbf16>
    %333 = arith.extf %332 : vector<4x4xbf16> to vector<4x4xf32>
    %cst_179 = arith.constant dense<0.000000e+00> : vector<4x512xf32>
    %334 = tpu.matmul %333, %331, %cst_179 {dimension_numbers = #tpu.dot_dimension_numbers<[1], [0], [0], [1], [0, 0, 1, 1], [], []>} : vector<4x4xf32>, vector<4x512xf32>, vector<4x512xf32> -> vector<4x512xf32>
    %c0_180 = arith.constant 0 : index
    %c17_181 = arith.constant 17 : index
    %335 = vector.load %arg13[%c0_180, %c17_181] : memref<4x546xf32, #tpu.memory_space<vmem>>, vector<4x512xf32>
    %c28_182 = arith.constant 28 : index
    %c0_183 = arith.constant 0 : index
    %336 = vector.load %arg9[%c28_182, %c0_183] : memref<60x4xbf16, #tpu.memory_space<vmem>>, vector<4x4xbf16>
    %337 = arith.extf %336 : vector<4x4xbf16> to vector<4x4xf32>
    %cst_184 = arith.constant dense<0.000000e+00> : vector<4x512xf32>
    %338 = tpu.matmul %337, %335, %cst_184 {dimension_numbers = #tpu.dot_dimension_numbers<[1], [0], [0], [1], [0, 0, 1, 1], [], []>} : vector<4x4xf32>, vector<4x512xf32>, vector<4x512xf32> -> vector<4x512xf32>
    %339 = arith.addf %334, %338 : vector<4x512xf32>
    %c0_185 = arith.constant 0 : index
    %c18_186 = arith.constant 18 : index
    %340 = vector.load %arg13[%c0_185, %c18_186] : memref<4x546xf32, #tpu.memory_space<vmem>>, vector<4x512xf32>
    %341 = vector.broadcast %4 : vector<1x512xf32> to vector<4x512xf32>
    %342 = arith.mulf %340, %341 : vector<4x512xf32>
    %c32_187 = arith.constant 32 : index
    %c0_188 = arith.constant 0 : index
    %343 = vector.load %arg9[%c32_187, %c0_188] : memref<60x4xbf16, #tpu.memory_space<vmem>>, vector<4x4xbf16>
    %344 = arith.extf %343 : vector<4x4xbf16> to vector<4x4xf32>
    %cst_189 = arith.constant dense<0.000000e+00> : vector<4x512xf32>
    %345 = tpu.matmul %344, %342, %cst_189 {dimension_numbers = #tpu.dot_dimension_numbers<[1], [0], [0], [1], [0, 0, 1, 1], [], []>} : vector<4x4xf32>, vector<4x512xf32>, vector<4x512xf32> -> vector<4x512xf32>
    %346 = arith.addf %339, %345 : vector<4x512xf32>
    %c8_190 = arith.constant 8 : index
    %c0_191 = arith.constant 0 : index
    %347 = vector.load %arg10[%c8_190, %c0_191] : memref<20x1xf32, #tpu.memory_space<vmem>>, vector<4x1xf32>
    %c8_192 = arith.constant 8 : index
    %c0_193 = arith.constant 0 : index
    %348 = vector.load %arg11[%c8_192, %c0_193] : memref<20x1xf32, #tpu.memory_space<vmem>>, vector<4x1xf32>
    %cst_194 = arith.constant dense<0.000000e+00> : vector<4xf32>
    %349 = vector.multi_reduction <add>, %346, %cst_194 [1] : vector<4x512xf32> to vector<4xf32>
    %350 = vector.shape_cast %349 : vector<4xf32> to vector<4x1xf32>
    %351 = arith.mulf %346, %346 : vector<4x512xf32>
    %cst_195 = arith.constant dense<0.000000e+00> : vector<4xf32>
    %352 = vector.multi_reduction <add>, %351, %cst_195 [1] : vector<4x512xf32> to vector<4xf32>
    %353 = vector.shape_cast %352 : vector<4xf32> to vector<4x1xf32>
    %cst_196 = arith.constant 0.001953125 : f32
    %354 = vector.broadcast %cst_196 : f32 to vector<4x1xf32>
    %355 = arith.mulf %350, %354 : vector<4x1xf32>
    %cst_197 = arith.constant 0.001953125 : f32
    %356 = vector.broadcast %cst_197 : f32 to vector<4x1xf32>
    %357 = arith.mulf %353, %356 : vector<4x1xf32>
    %358 = arith.mulf %355, %355 : vector<4x1xf32>
    %359 = arith.subf %357, %358 : vector<4x1xf32>
    %cst_198 = arith.constant 9.99999974E-6 : f32
    %360 = vector.broadcast %cst_198 : f32 to vector<4x1xf32>
    %361 = arith.addf %359, %360 : vector<4x1xf32>
    %362 = math.rsqrt %361 : vector<4x1xf32>
    %363 = arith.mulf %347, %362 : vector<4x1xf32>
    %364 = arith.mulf %355, %363 : vector<4x1xf32>
    %365 = arith.subf %348, %364 : vector<4x1xf32>
    %366 = vector.broadcast %363 : vector<4x1xf32> to vector<4x512xf32>
    %367 = arith.mulf %346, %366 : vector<4x512xf32>
    %368 = vector.broadcast %365 : vector<4x1xf32> to vector<4x512xf32>
    %369 = arith.addf %367, %368 : vector<4x512xf32>
    %cst_199 = arith.constant 0.000000e+00 : f32
    %cst_200 = arith.constant 6.000000e+00 : f32
    %370 = vector.broadcast %cst_199 : f32 to vector<4x512xf32>
    %371 = arith.maximumf %370, %369 : vector<4x512xf32>
    %372 = vector.broadcast %cst_200 : f32 to vector<4x512xf32>
    %373 = arith.minimumf %372, %371 : vector<4x512xf32>
    %c0_201 = arith.constant 0 : index
    %c17_202 = arith.constant 17 : index
    %374 = vector.load %arg13[%c0_201, %c17_202] : memref<4x546xf32, #tpu.memory_space<vmem>>, vector<4x512xf32>
    tpu.vector_store %arg13[%c0_201, %c17_202], %373 {strides = array<i32>} : memref<4x546xf32, #tpu.memory_space<vmem>>, vector<4x512xf32>,
    %c0_203 = arith.constant 0 : index
    %c1_204 = arith.constant 1 : index
    %375 = vector.load %arg13[%c0_203, %c1_204] : memref<4x546xf32, #tpu.memory_space<vmem>>, vector<4x512xf32>
    %376 = vector.broadcast %5 : vector<1x512xf32> to vector<4x512xf32>
    %377 = arith.mulf %375, %376 : vector<4x512xf32>
    %c36 = arith.constant 36 : index
    %c0_205 = arith.constant 0 : index
    %378 = vector.load %arg9[%c36, %c0_205] : memref<60x4xbf16, #tpu.memory_space<vmem>>, vector<8x4xbf16>
    %379 = arith.extf %378 : vector<8x4xbf16> to vector<8x4xf32>
    %cst_206 = arith.constant dense<0.000000e+00> : vector<8x512xf32>
    %380 = tpu.matmul %379, %377, %cst_206 {dimension_numbers = #tpu.dot_dimension_numbers<[1], [0], [0], [1], [0, 0, 1, 1], [], []>} : vector<8x4xf32>, vector<4x512xf32>, vector<8x512xf32> -> vector<8x512xf32>
    %c0_207 = arith.constant 0 : index
    %c17_208 = arith.constant 17 : index
    %381 = vector.load %arg13[%c0_207, %c17_208] : memref<4x546xf32, #tpu.memory_space<vmem>>, vector<4x512xf32>
    %c44 = arith.constant 44 : index
    %c0_209 = arith.constant 0 : index
    %382 = vector.load %arg9[%c44, %c0_209] : memref<60x4xbf16, #tpu.memory_space<vmem>>, vector<8x4xbf16>
    %383 = arith.extf %382 : vector<8x4xbf16> to vector<8x4xf32>
    %cst_210 = arith.constant dense<0.000000e+00> : vector<8x512xf32>
    %384 = tpu.matmul %383, %381, %cst_210 {dimension_numbers = #tpu.dot_dimension_numbers<[1], [0], [0], [1], [0, 0, 1, 1], [], []>} : vector<8x4xf32>, vector<4x512xf32>, vector<8x512xf32> -> vector<8x512xf32>
    %385 = arith.addf %380, %384 : vector<8x512xf32>
    %c0_211 = arith.constant 0 : index
    %c33_212 = arith.constant 33 : index
    %386 = vector.load %arg13[%c0_211, %c33_212] : memref<4x546xf32, #tpu.memory_space<vmem>>, vector<4x512xf32>
    %387 = vector.broadcast %6 : vector<1x512xf32> to vector<4x512xf32>
    %388 = arith.mulf %386, %387 : vector<4x512xf32>
    %c52 = arith.constant 52 : index
    %c0_213 = arith.constant 0 : index
    %389 = vector.load %arg9[%c52, %c0_213] : memref<60x4xbf16, #tpu.memory_space<vmem>>, vector<8x4xbf16>
    %390 = arith.extf %389 : vector<8x4xbf16> to vector<8x4xf32>
    %cst_214 = arith.constant dense<0.000000e+00> : vector<8x512xf32>
    %391 = tpu.matmul %390, %388, %cst_214 {dimension_numbers = #tpu.dot_dimension_numbers<[1], [0], [0], [1], [0, 0, 1, 1], [], []>} : vector<8x4xf32>, vector<4x512xf32>, vector<8x512xf32> -> vector<8x512xf32>
    %392 = arith.addf %385, %391 : vector<8x512xf32>
    %c12_215 = arith.constant 12 : index
    %c0_216 = arith.constant 0 : index
    %393 = vector.load %arg10[%c12_215, %c0_216] : memref<20x1xf32, #tpu.memory_space<vmem>>, vector<8x1xf32>
    %c12_217 = arith.constant 12 : index
    %c0_218 = arith.constant 0 : index
    %394 = vector.load %arg11[%c12_217, %c0_218] : memref<20x1xf32, #tpu.memory_space<vmem>>, vector<8x1xf32>
    %cst_219 = arith.constant dense<0.000000e+00> : vector<8xf32>
    %395 = vector.multi_reduction <add>, %392, %cst_219 [1] : vector<8x512xf32> to vector<8xf32>
    %396 = vector.shape_cast %395 : vector<8xf32> to vector<8x1xf32>
    %397 = arith.mulf %392, %392 : vector<8x512xf32>
    %cst_220 = arith.constant dense<0.000000e+00> : vector<8xf32>
    %398 = vector.multi_reduction <add>, %397, %cst_220 [1] : vector<8x512xf32> to vector<8xf32>
    %399 = vector.shape_cast %398 : vector<8xf32> to vector<8x1xf32>
    %cst_221 = arith.constant 0.001953125 : f32
    %400 = vector.broadcast %cst_221 : f32 to vector<8x1xf32>
    %401 = arith.mulf %396, %400 : vector<8x1xf32>
    %cst_222 = arith.constant 0.001953125 : f32
    %402 = vector.broadcast %cst_222 : f32 to vector<8x1xf32>
    %403 = arith.mulf %399, %402 : vector<8x1xf32>
    %404 = arith.mulf %401, %401 : vector<8x1xf32>
    %405 = arith.subf %403, %404 : vector<8x1xf32>
    %cst_223 = arith.constant 9.99999974E-6 : f32
    %406 = vector.broadcast %cst_223 : f32 to vector<8x1xf32>
    %407 = arith.addf %405, %406 : vector<8x1xf32>
    %408 = math.rsqrt %407 : vector<8x1xf32>
    %409 = arith.mulf %393, %408 : vector<8x1xf32>
    %410 = arith.mulf %401, %409 : vector<8x1xf32>
    %411 = arith.subf %394, %410 : vector<8x1xf32>
    %412 = vector.broadcast %409 : vector<8x1xf32> to vector<8x512xf32>
    %413 = arith.mulf %392, %412 : vector<8x512xf32>
    %414 = vector.broadcast %411 : vector<8x1xf32> to vector<8x512xf32>
    %415 = arith.addf %413, %414 : vector<8x512xf32>
    %cst_224 = arith.constant 0.000000e+00 : f32
    %cst_225 = arith.constant 6.000000e+00 : f32
    %416 = vector.broadcast %cst_224 : f32 to vector<8x512xf32>
    %417 = arith.maximumf %416, %415 : vector<8x512xf32>
    %418 = vector.broadcast %cst_225 : f32 to vector<8x512xf32>
    %419 = arith.minimumf %418, %417 : vector<8x512xf32>
    %c16_226 = arith.constant 16 : index
    %c0_227 = arith.constant 0 : index
    %420 = vector.load %arg12[%c16_226, %c0_227] : memref<32x512xf32, #tpu.memory_space<vmem>>, vector<8x512xf32>
    tpu.vector_store %arg12[%c16_226, %c0_227], %419 {strides = array<i32>} : memref<32x512xf32, #tpu.memory_space<vmem>>, vector<8x512xf32>,
    return
  }
}

</mosaic_0001>

<bundles_post_ra>
// kernel: _lambda_.1
= control target key start
LH: loop header
LB: loop body
LE: loop exit
PB: predicated region body
PF: predicated region fallthrough
CT: control target
= control target key end

     0   :  { %v61_v0 = vlaneseq  ;;  %v5337_v2 = vmov 1983009808   ;;  %v6722_v4 = vmov 0   ;;  %vm44_vm0 = vcmask 273408   ;;  %s5342_s25 = smov 126   ;;  %s5343_s26 = smov 112   ;;  %s6707_s0 = inlined_call_operand.vmem [shape: bf16[4,512], index: 0, kind: input, shape index: {}]   ;;  %s6708_s2 = inlined_call_operand.vmem [shape: bf16[16,4], index: 2, kind: input, shape index: {}]   ;;  %s6709_s1 = inlined_call_operand.vmem [shape: f32[4,512], index: 1, kind: input, shape index: {}]   ;;  %s6710_s4 = inlined_call_operand.vmem [shape: f32[24,1], index: 4, kind: input, shape index: {}]   ;;  %s6711_s5 = inlined_call_operand.vmem [shape: f32[24,1], index: 5, kind: input, shape index: {}]   ;;  %s6712_s3 = inlined_call_operand.vmem [shape: bf16[8,4], index: 3, kind: input, shape index: {}]   ;;  %s6713_s6 = inlined_call_operand.vmem [shape: bf16[36,4], index: 6, kind: input, shape index: {}]   ;;  %s6714_s7 = inlined_call_operand.vmem [shape: f32[12,1], index: 7, kind: input, shape index: {}]   ;;  %s6715_s8 = inlined_call_operand.vmem [shape: f32[12,1], index: 8, kind: input, shape index: {}]   ;;  %s6716_s9 = inlined_call_operand.vmem [shape: bf16[60,4], index: 9, kind: input, shape index: {}]   ;;  %s6717_s10 = inlined_call_operand.vmem [shape: f32[20,1], index: 10, kind: input, shape index: {}]   ;;  %s6718_s11 = inlined_call_operand.vmem [shape: f32[20,1], index: 11, kind: input, shape index: {}]   ;;  %s6719_s12 = inlined_call_operand.vmem [shape: f32[32,512], index: 12, kind: output, shape index: {}]  }
   0x1   :  { %v48_v1 = vld [vmem:[%s6707_s0] sm:$0xff]  ;;  %v59_v3 = vunpack.c.l.s4 %v5337_v2  ;;  %123 = vmatprep.mubr.bf16.mxu0 %v6722_v4  ;;  %166 = vmatprep.mubr.bf16.mxu1 %v6722_v4  ;;  %v6720_v11 = vmov 0.0   ;;  %vm6725_vm1 = vcmask 1041408   ;;  %s5340_s0 = smov 17   ;;  %vm6724_vm2 = vcmask 31744   ;;  %s5344_s27 = smov 110  }
   0x2   :  { %v5423_v5 = vshrl.u32 %v61_v0, 7  ;;  %v279_v6 = vunpack.c.l.bf16 %v48_v1  ;;  %v280_v7 = vunpack.c.h.bf16 %v48_v1  ;;  %5307 = vset.pattern.permute.xlu1 %v6722_v4  ;;  %5308 = vset.pattern.permute.xlu0 %v6722_v4  ;;  %v57_v9 = vcombine.high %v48_v1, %v48_v1  ;;  %42 = vst [vmem:[#allocation2] sm:$0xff] %v6720_v11  ;;  %45 = vst.msk [vmem:[#allocation2 + $0x10] sm:$0xf] %vm44_vm0, %v6720_v11  ;;  %v5310_v19 = vld [vmem:[%s6708_s2] sm:$0xff]   ;;  %s5341_s2 = smov 127  }
   0x3   :  { %v60_v8 = vunpack.c.0.s8 %v59_v3  ;;  %vm297_vm3 = vcmask 1043592   ;;  %vm298_vm4 = vcmask 1047556   ;;  %vm289_vm5 = vcmask 138240   ;;  %s5345_s28 = smov 96   ;;  %s5346_s29 = smov 95   ;;  %v5563_v61 = vld [vmem:[%s6709_s1 + $0x8] sm:$0xff] }
   0x4   :  { %v5302_v10 = vpack.i.bf16 %v280_v7, %v279_v6  ;;  %vm302_vm6 = vcmask 134144   ;;  %vm5442_vm7 = vmor %vm298_vm4, %vm297_vm3  ;;  %vm291_vm8 = vcmask 1043456   ;;  %v310_v62 = vrot.slane %v5563_v61, 6  ;;  %s5347_s14 = smov 94   ;;  %s5348_s21 = smov 16  }
   0x5   :  { %v63_v12 = vsub.s32 %v60_v8, %v5423_v5  ;;  %v5579_v2 = vsub.s32 6, %v5423_v5  ;;  %vm387_vm10 = vcmp.gt.f32.partialorder %v5563_v61, 0.0  ;;  %vm437_vm13 = vcmask 1039360   ;;  %s5349_s22 = smov 18   ;;  %s5350_s23 = smov 111  }
   0x6   :  { %5303 = vrot.lane.b32.xlu1 %v5302_v10, %s5340_s0  ;;  %v314_v63 = vmul.f32 %v310_v62, %v5563_v61  ;;  %vm527_vm4 = vcmask 1031168  }
   0x7   :  { %v64_v13 = vrot.slane %v48_v1, %v63_v12  ;;  %v71_v14 = vrot.slane %v57_v9, %v63_v12  ;;  %v5576_v1 = vsub.s32 2, %v5423_v5  ;;  %v5594_v9 = vsel %vm387_vm10, 1, %v6722_v4 }
   0x8   :  { %vm316_vm9 = vcmp.gt.f32.partialorder %v314_v63, 0.0 }
   0x9   :  { %v72_v15 = vcombine.high %v64_v13, %v64_v13  ;;  %v73_v16 = vcombine.high %v71_v14, %v71_v14  ;;  %v80_v17 = vsel %vm6725_vm1, %v64_v13, 0  ;;  %v86_v18 = vsel %vm6725_vm1, %v71_v14, 0 }
   0xa   :  { %v5584_v6 = vsel %vm316_vm9, 1, %v6722_v4  ;;  %v401_v12 = vrot.slane %v5594_v9, %v5576_v1  ;;  %v405_v13 = vrot.slane %v5594_v9, %v5579_v2 }
   0xb   :  { %5122 = vmatprep.subr.msk.bf16.mxu0 %vm6725_vm1, %v72_v15  ;;  %5124 = vmatprep.subr.msk.bf16.mxu1 %vm6725_vm1, %v73_v16  ;;  %v330_v7 = vrot.slane %v5584_v6, %v5576_v1  ;;  %v334_v8 = vrot.slane %v5584_v6, %v5579_v2 }
   0xc   :  { %92 = vmatpush1.bf16.msra.mxu0 %v80_v17  ;;  %135 = vmatpush1.bf16.msra.mxu1 %v86_v18  ;;  %v417_v16 = vrot.slane %v401_v12, %v5576_v1  ;;  %v421_v17 = vrot.slane %v405_v13, %v5576_v1 }
   0xd   :  { %v346_v14 = vrot.slane %v330_v7, %v5576_v1  ;;  %v350_v15 = vrot.slane %v334_v8, %v5576_v1 }
   0xe   :  { %vm424_vm14 = vcmp.eq.s32.totalorder %v417_v16, 1  ;;  %vm425_vm15 = vcmp.eq.s32.totalorder %v421_v17, 1 }
   0xf   :  { %5123 = vmatmul.mubr.msk.bf16.vlgmr.msra.gmra.mrb[0].mxu0 %vm6724_vm2, %v5310_v19  ;;  %5125 = vmatmul.mubr.msk.bf16.vlgmr.msra.gmra.mrb[0].mxu1 %vm6724_vm2, %v5310_v19  ;;  %vm353_vm11 = vcmp.eq.s32.totalorder %v346_v14, 1  ;;  %vm354_vm12 = vcmp.eq.s32.totalorder %v350_v15, 1  ;;  %v5652_v14 = vsub.s32 0, %v5423_v5  ;;  %v5655_v15 = vsub.s32 4, %v5423_v5 }
  0x10   :  { %1050 = vmatprep.mubr.bf16.mxu0 %v6722_v4  ;;  %1091 = vmatprep.mubr.bf16.mxu1 %v6722_v4 }
  0x78   :  { %v5304_v20 = vpop.permute.xlu1 %5303 }
  0x79   :  { %v5306_v21 = vunpack.i.h.bf16 %v5304_v20  ;;  %v5305_v22 = vunpack.i.l.bf16 %v5304_v20 }
  0x7b   :  { %v288_v24 = vrot.slane %v5306_v21, 4  ;;  %v287_v25 = vrot.slane %v5305_v22, 4 }
  0x7d   :  { %303 = vst.msk [vmem:[#allocation2 + $0x10] sm:$0xf] %vm302_vm6, %v288_v24  ;;  %v290_v26 = vsel %vm289_vm5, %v287_v25, %v5305_v22  ;;  %v292_v27 = vsel %vm291_vm8, %v287_v25, %v288_v24 }
  0x7e   :  { %300 = vst.msk [vmem:[#allocation2] sm:$0xff] %vm5442_vm7, %v290_v26  ;;  %v5456_v29 = vsel %vm289_vm5, %v292_v27, %v5306_v21 }
  0x7f   :  { %v5462_v30 = vcombine.high %v5456_v29, %v5456_v29  ;;  %v363_v19 = vsel %vm353_vm11, %v5456_v29, -1e+30 }
  0x81   :  { %v364_v20 = vsel %vm354_vm12, %v5462_v30, -1e+30 }
  0x82   :  { %v370_v24 = vcombine.low %v363_v19, %v364_v20 }
  0x84   :  { %v5466_v31 = vld [vmem:[#allocation2 + $0x10] sm:$0xf] }
  0x85   :  { %v5451_v28 = vld [vmem:[#allocation2] sm:$0xff] }
  0x86   :  { %427 = vrot.lane.b32.xlu1 %v5451_v28, %s5341_s2  ;;  %v5474_v32 = vcombine.high %v5451_v28, %v5451_v28 }
  0x8a   :  { %431 = vrot.lane.b32.xlu1 %v5456_v29, %s5341_s2 }
  0x8e   :  { %433 = vrot.lane.b32.xlu1 %v5462_v30, %s5341_s2 }
  0x92   :  { %435 = vrot.lane.b32.xlu1 %v5466_v31, %s5341_s2 }
  0x96   :  { %517 = vrot.lane.b32.xlu1 %v5451_v28, %s5342_s25 }
  0x9a   :  { %519 = vrot.lane.b32.xlu1 %v5474_v32, %s5342_s25 }
  0x9e   :  { %521 = vrot.lane.b32.xlu1 %v5456_v29, %s5342_s25 }
  0xa2   :  { %525 = vrot.lane.b32.xlu1 %v5466_v31, %s5342_s25 }
  0xa6   :  { %599 = vrot.lane.b32.xlu1 %v5474_v32, %s5343_s26 }
  0xaa   :  { %605 = vrot.lane.b32.xlu1 %v5466_v31, %s5343_s26 }
  0xae   :  { %679 = vrot.lane.b32.xlu1 %v5474_v32, %s5344_s27 }
  0xb2   :  { %685 = vrot.lane.b32.xlu1 %v5466_v31, %s5344_s27 }
  0xb6   :  { %769 = vrot.lane.b32.xlu1 %v5474_v32, %s5345_s28 }
  0xba   :  { %773 = vrot.lane.b32.xlu1 %v5462_v30, %s5345_s28 }
  0xbe   :  { %847 = vrot.lane.b32.xlu1 %v5451_v28, %s5346_s29 }
  0xc2   :  { %851 = vrot.lane.b32.xlu1 %v5456_v29, %s5346_s29 }
  0xc6   :  { %855 = vrot.lane.b32.xlu1 %v5466_v31, %s5346_s29 }
  0xe2   :  { %v5500_v33 = vpop.f32.mrb[0].mxu0  ;;  %v5502_v34 = vpop.f32.mrb[0].mxu1 }
  0xe3   :  { %v191_v35 = vmul.f32 %v5500_v33, %v5500_v33  ;;  %v5506_v36 = vpop.f32.mrb[1].mxu0  ;;  %v5508_v37 = vpop.f32.mrb[1].mxu1  ;;  %v193_v38 = vmul.f32 %v5502_v34, %v5502_v34 }
  0xe4   :  { %v181_v39 = vadd.f32 %v5506_v36, %v5500_v33  ;;  %v192_v40 = vmul.f32 %v5506_v36, %v5506_v36  ;;  %v5516_v41 = vpop.f32.mrb[2].mxu0  ;;  %v5518_v42 = vpop.f32.mrb[2].mxu1  ;;  %v194_v50 = vmul.f32 %v5508_v37, %v5508_v37 }
  0xe5   :  { %v195_v43 = vmul.f32 %v5516_v41, %v5516_v41  ;;  %v5522_v44 = vpop.f32.mrb[3].mxu0  ;;  %v5524_v45 = vpop.f32.mrb[3].mxu1  ;;  %v197_v51 = vmul.f32 %v5518_v42, %v5518_v42 }
  0xe6   :  { %v199_v46 = vadd.f32 %v192_v40, %v191_v35  ;;  %v182_v47 = vadd.f32 %v181_v39, %v5502_v34  ;;  %v186_v48 = vadd.f32 %v5522_v44, %v5516_v41  ;;  %v196_v49 = vmul.f32 %v5522_v44, %v5522_v44 }
  0xe7   :  { %v198_v57 = vmul.f32 %v5524_v45, %v5524_v45 }
  0xe8   :  { %v5536_v52 = vadd.f32 %v182_v47, %v5508_v37  ;;  %v187_v53 = vadd.f32 %v186_v48, %v5518_v42  ;;  %v204_v54 = vadd.f32 %v196_v49, %v195_v43  ;;  %v200_v55 = vadd.f32 %v199_v46, %v193_v38  ;;  %v5628_v43 = vld [vmem:[%s6709_s1] sm:$0xff] }
  0xe9   :  { %v472_v38 = vrot.slane %v5563_v61, 7  ;;  %v309_v48 = vrot.slane %v5628_v43, 6  ;;  %v471_v12 = vrot.slane %v5628_v43, 7  ;;  %vm386_vm12 = vcmp.gt.f32.partialorder %v5628_v43, 0.0 }
  0xea   :  { %v188_v56 = vadd.f32 %v187_v53, %v5524_v45  ;;  %v205_v58 = vadd.f32 %v204_v54, %v197_v51  ;;  %v5542_v59 = vadd.f32 %v200_v55, %v194_v50 }
  0xeb   :  { %v476_v40 = vmul.f32 %v472_v38, %v5563_v61  ;;  %v313_v54 = vmul.f32 %v309_v48, %v5628_v43  ;;  %v475_v20 = vmul.f32 %v471_v12, %v5628_v43  ;;  %v576_v38 = vrot.slane %v5594_v9, %v5655_v15 }
  0xec   :  { %189 = vadd.xlane.f32.xlu0 %v188_v56  ;;  %v206_v60 = vadd.f32 %v205_v58, %v198_v57  ;;  %v5696_v12 = vsub.s32 5, %v5423_v5 }
  0xed   :  { %vm478_vm0 = vcmp.gt.f32.partialorder %v476_v40, 0.0  ;;  %vm315_vm3 = vcmp.gt.f32.partialorder %v313_v54, 0.0  ;;  %vm477_vm11 = vcmp.gt.f32.partialorder %v475_v20, 0.0  ;;  %v592_v54 = vrot.slane %v576_v38, %v5652_v14 }
  0xee   :  { %v480_v47 = vsel %vm478_vm0, 1, %v6722_v4  ;;  %v5649_v13 = vsel %vm315_vm3, 1, %v6722_v4 }
  0xef   :  { %v492_v51 = vrot.slane %v480_v47, %v5576_v1  ;;  %v496_v53 = vrot.slane %v480_v47, %v5579_v2  ;;  %v322_v19 = vrot.slane %v5649_v13, %v5576_v1 }
  0xf0   :  { %207 = vadd.xlane.f32.xlu0 %v206_v60 }
  0xf1   :  { %v508_v60 = vrot.slane %v492_v51, %v5576_v1  ;;  %v512_v63 = vrot.slane %v496_v53, %v5576_v1  ;;  %v338_v47 = vrot.slane %v322_v19, %v5576_v1  ;;  %v178_v51 = vld [vmem:[%s6710_s4 + $0x8] sm:$0xff] }
  0xf3   :  { %vm515_vm9 = vcmp.eq.s32.totalorder %v508_v60, 1  ;;  %vm516_vm10 = vcmp.eq.s32.totalorder %v512_v63, 1  ;;  %v180_v63 = vld [vmem:[%s6711_s5 + $0x8] sm:$0xff] }
  0xf8   :  { %v5571_v0 = vpop.permute.xlu1 %427 }
  0xfc   :  { %v5581_v3 = vpop.permute.xlu1 %431 }
 0x100   :  { %v434_v10 = vpop.permute.xlu1 %433 }
 0x101   :  { %v440_v21 = vsel %vm437_vm13, %v5581_v3, %v434_v10 }
 0x102   :  { %v448_v25 = vsel %vm424_vm14, %v440_v21, -1e+30  ;;  %vm351_vm14 = vcmp.eq.s32.totalorder %v338_v47, 1 }
 0x104   :  { %v436_v18 = vpop.permute.xlu1 %435 }
 0x105   :  { %v441_v22 = vsel %vm437_vm13, %v434_v10, %v436_v18 }
 0x106   :  { %429 = vrot.lane.b32.xlu0 %v5474_v32, %s5341_s2  ;;  %v449_v26 = vsel %vm425_vm15, %v441_v22, -1e+30  ;;  %vm607_vm15 = vcmask 916480  }
 0x107   :  { %v455_v27 = vcombine.low %v448_v25, %v449_v26  ;;  %v326_v25 = vrot.slane %v5649_v13, %v5579_v2 }
 0x108   :  { %v5619_v35 = vpop.permute.xlu1 %517 }
 0x10a   :  { %523 = vrot.lane.b32.xlu0 %v5462_v30, %s5342_s25 }
 0x10c   :  { %v5622_v39 = vpop.permute.xlu1 %519 }
 0x10e   :  { %597 = vrot.lane.b32.xlu0 %v5451_v28, %s5343_s26 }
 0x110   :  { %v5630_v46 = vpop.permute.xlu1 %521 }
 0x112   :  { %601 = vrot.lane.b32.xlu0 %v5456_v29, %s5343_s26 }
 0x114   :  { %v526_v56 = vpop.permute.xlu1 %525 }
 0x116   :  { %603 = vrot.lane.b32.xlu0 %v5462_v30, %s5343_s26 }
 0x118   :  { %v5645_v8 = vpop.permute.xlu1 %599 }
 0x11a   :  { %677 = vrot.lane.b32.xlu0 %v5451_v28, %s5344_s27 }
 0x11e   :  { %681 = vrot.lane.b32.xlu0 %v5456_v29, %s5344_s27 }
 0x122   :  { %683 = vrot.lane.b32.xlu0 %v5462_v30, %s5344_s27 }
 0x126   :  { %767 = vrot.lane.b32.xlu0 %v5451_v28, %s5345_s28 }
 0x12a   :  { %771 = vrot.lane.b32.xlu0 %v5456_v29, %s5345_s28 }
 0x12e   :  { %775 = vrot.lane.b32.xlu0 %v5466_v31, %s5345_s28  ;;  %s5352_s28 = smov 1  }
 0x132   :  { %849 = vrot.lane.b32.xlu0 %v5474_v32, %s5346_s29 }
 0x136   :  { %853 = vrot.lane.b32.xlu0 %v5462_v30, %s5346_s29 }
 0x13a   :  { %927 = vrot.lane.b32.xlu0 %v5451_v28, %s5347_s14 }
 0x13e   :  { %931 = vrot.lane.b32.xlu0 %v5456_v29, %s5347_s14 }
 0x142   :  { %935 = vrot.lane.b32.xlu0 %v5466_v31, %s5347_s14 }
 0x146   :  { %373 = vrot.lane.b32.xlu0 %v370_v24, %s5340_s0  ;;  %v606_v24 = vpop.permute.xlu1 %605 }
 0x14a   :  { %458 = vrot.lane.b32.xlu0 %v455_v27, %s5340_s0  ;;  %v572_v27 = vrot.slane %v5594_v9, %v5652_v14  ;;  %v5674_v48 = vpop.permute.xlu1 %679 }
 0x14c   :  { %v588_v53 = vrot.slane %v572_v27, %v5652_v14  ;;  %v721_v27 = vrot.slane %v5628_v43, 5 }
 0x14e   :  { %vm595_vm3 = vcmp.eq.s32.totalorder %v588_v53, 1  ;;  %v361_v53 = vsel %vm351_vm14, %v5451_v28, -1e+30 }
 0x179   :  { %v190_v49 = vpop.xlane.xlu0 %189 }
 0x17a   :  { %v5634_v50 = vmul.f32 0.001953125, %v190_v49  ;;  %v342_v49 = vrot.slane %v326_v25, %v5576_v1 }
 0x17c   :  { %v214_v57 = vmul.f32 %v5634_v50, %v5634_v50  ;;  %vm352_vm0 = vcmp.eq.s32.totalorder %v342_v49, 1 }
 0x17d   :  { %v208_v55 = vpop.xlane.xlu0 %207 }
 0x17e   :  { %v212_v58 = vmul.f32 0.001953125, %v208_v55 }
 0x180   :  { %v216_v62 = vsub.f32 %v212_v58, %v214_v57  ;;  %v479_v57 = vsel %vm477_vm11, 1, %v6722_v4  ;;  %v5686_v58 = vsel %vm386_vm12, 1, %v6722_v4 }
 0x181   :  { %v5643_v7 = vpop.permute.xlu0 %429 }
 0x182   :  { %v218_v10 = vadd.f32 1e-05, %v216_v62  ;;  %v722_v62 = vrot.slane %v5563_v61, 5 }
 0x184   :  { %5317 = vrsqrt.f32 %v218_v10  ;;  %v5693_v10 = vsub.s32 1, %v5423_v5 }
 0x185   :  { %v524_v16 = vpop.permute.xlu0 %523 }
 0x186   :  { %v530_v17 = vsel %vm527_vm4, %v5630_v46, %v524_v16  ;;  %v531_v18 = vsel %vm527_vm4, %v524_v16, %v526_v56  ;;  %v484_v16 = vrot.slane %v479_v57, %v5576_v1 }
 0x187   :  { %v538_v21 = vsel %vm515_vm9, %v530_v17, -1e+30  ;;  %v539_v22 = vsel %vm516_vm10, %v531_v18, -1e+30  ;;  %vm596_vm9 = vcmp.eq.s32.totalorder %v592_v54, 1  ;;  %v488_v17 = vrot.slane %v479_v57, %v5579_v2 }
 0x188   :  { %v545_v26 = vcombine.low %v538_v21, %v539_v22  ;;  %v393_v18 = vrot.slane %v5686_v58, %v5576_v1  ;;  %v686_v21 = vpop.permute.xlu1 %685  ;;  %v397_v22 = vrot.slane %v5686_v58, %v5579_v2  ;;  %v726_v57 = vmul.f32 %v722_v62, %v5563_v61 }
 0x189   :  { %v5669_v40 = vpop.permute.xlu0 %597  ;;  %v500_v4 = vrot.slane %v484_v16, %v5576_v1  ;;  %v362_v54 = vsel %vm352_vm0, %v5474_v32, -1e+30 }
 0x18a   :  { %548 = vrot.lane.b32.xlu0 %v545_v26, %s5340_s0  ;;  %v409_v62 = vrot.slane %v393_v18, %v5576_v1  ;;  %vm728_vm10 = vcmp.gt.f32.partialorder %v726_v57, 0.0  ;;  %v369_v49 = vcombine.low %v361_v53, %v362_v54  ;;  %v564_v18 = vrot.slane %v5686_v58, %v5652_v14 }
 0x18b   :  { %vm513_vm11 = vcmp.eq.s32.totalorder %v500_v4, 1  ;;  %v5754_v57 = vsub.s32 7, %v5423_v5 }
 0x18c   :  { %v5728_v16 = vpop.permute.xlu1 %769  ;;  %vm422_vm14 = vcmp.eq.s32.totalorder %v409_v62, 1 }
 0x18d   :  { %v5682_v55 = vpop.permute.xlu0 %601 }
 0x18e   :  { %v5318_v56 = vpop.eup %5317 }
 0x18f   :  { %v222_v60 = vmul.f32 %v5318_v56, %v178_v51 }
 0x191   :  { %234 = vperm.xlu1 %5307, %v222_v60   ;;  %v604_v19 = vpop.permute.xlu0 %603  ;;  %v224_v20 = vmul.f32 %v222_v60, %v5634_v50  ;;  %v652_v50 = vrot.slane %v5594_v9, %v5693_v10  ;;  %v656_v60 = vrot.slane %v5594_v9, %v5696_v12 }
 0x192   :  { %v610_v25 = vsel %vm607_vm15, %v5682_v55, %v604_v19  ;;  %v611_v26 = vsel %vm607_vm15, %v604_v19, %v606_v24  ;;  %v504_v24 = vrot.slane %v488_v17, %v5576_v1  ;;  %v5731_v17 = vsub.s32 3, %v5423_v5 }
 0x193   :  { %v618_v38 = vsel %vm595_vm3, %v610_v25, -1e+30  ;;  %v619_v51 = vsel %vm596_vm9, %v611_v26, -1e+30  ;;  %v226_v56 = vsub.f32 %v180_v63, %v224_v20  ;;  %v413_v63 = vrot.slane %v397_v22, %v5576_v1 }
 0x194   :  { %v625_v11 = vcombine.low %v618_v38, %v619_v51  ;;  %v725_v20 = vmul.f32 %v721_v27, %v5628_v43  ;;  %v668_v47 = vrot.slane %v652_v50, %v5693_v10  ;;  %v672_v25 = vrot.slane %v656_v60, %v5693_v10 }
 0x195   :  { %252 = vperm.xlu1 %5307, %v226_v56   ;;  %v5718_v19 = vpop.permute.xlu0 %677  ;;  %vm514_vm12 = vcmp.eq.s32.totalorder %v504_v24, 1  ;;  %vm423_vm0 = vcmp.eq.s32.totalorder %v413_v63, 1  ;;  %v6728_v26 = vmov 0   ;;  %v528_v38 = vsel %vm527_vm4, %v5619_v35, %v5622_v39 }
 0x196   :  { %628 = vrot.lane.b32.xlu0 %v625_v11, %s5340_s0  ;;  %v568_v11 = vrot.slane %v5686_v58, %v5655_v15  ;;  %vm727_vm3 = vcmp.gt.f32.partialorder %v725_v20, 0.0  ;;  %v730_v27 = vsel %vm728_vm10, 1, %v6728_v26  ;;  %v438_v51 = vsel %vm437_vm13, %v5571_v0, %v5643_v7 }
 0x197   :  { %v439_v56 = vsel %vm437_vm13, %v5643_v7, %v5581_v3  ;;  %vm687_vm9 = vcmask 900096   ;;  %vm675_vm2 = vcmp.eq.s32.totalorder %v668_v47, 1  ;;  %vm676_vm1 = vcmp.eq.s32.totalorder %v672_v25, 1  ;;  %v774_v3 = vpop.permute.xlu1 %773 }
 0x198   :  { %v580_v50 = vrot.slane %v564_v18, %v5652_v14  ;;  %v584_v35 = vrot.slane %v568_v11, %v5652_v14  ;;  %v729_v60 = vsel %vm727_vm3, 1, %v6728_v26  ;;  %v742_v7 = vrot.slane %v730_v27, %v5731_v17 }
 0x199   :  { %929 = vrot.lane.b32.xlu1 %v5474_v32, %s5347_s14  ;;  %v682_v22 = vpop.permute.xlu0 %681  ;;  %v644_v32 = vrot.slane %v5686_v58, %v5693_v10  ;;  %v446_v53 = vsel %vm422_vm14, %v438_v51, -1e+30  ;;  %v447_v54 = vsel %vm423_vm0, %v439_v56, -1e+30  ;;  %v529_v18 = vsel %vm527_vm4, %v5622_v39, %v5630_v46 }
 0x19a   :  { %v746_v63 = vrot.slane %v730_v27, %v5754_v57  ;;  %v758_v39 = vrot.slane %v742_v7, %v5731_v17  ;;  %v454_v46 = vcombine.low %v446_v53, %v447_v54  ;;  %v536_v47 = vsel %vm513_vm11, %v528_v38, -1e+30 }
 0x19b   :  { %v660_v62 = vrot.slane %v644_v32, %v5693_v10  ;;  %v537_v25 = vsel %vm514_vm12, %v529_v18, -1e+30  ;;  %v609_v27 = vsel %vm607_vm15, %v5645_v8, %v5682_v55  ;;  %vm777_vm4 = vcmask 785408  }
 0x19c   :  { %v762_v4 = vrot.slane %v746_v63, %v5731_v17  ;;  %vm765_vm11 = vcmp.eq.s32.totalorder %v758_v39, 1  ;;  %v814_v54 = vrot.slane %v5686_v58, %v5731_v17  ;;  %v818_v18 = vrot.slane %v5686_v58, %v5754_v57 }
 0x19d   :  { %933 = vrot.lane.b32.xlu1 %v5462_v30, %s5347_s14  ;;  %v684_v0 = vpop.permute.xlu0 %683  ;;  %v648_v30 = vrot.slane %v5686_v58, %v5696_v12  ;;  %vm673_vm10 = vcmp.eq.s32.totalorder %v660_v62, 1 }
 0x19e   :  { %v690_v5 = vsel %vm687_vm9, %v682_v22, %v684_v0  ;;  %v691_v20 = vsel %vm687_vm9, %v684_v0, %v686_v21  ;;  %v734_v21 = vrot.slane %v729_v60, %v5731_v17  ;;  %v738_v0 = vrot.slane %v729_v60, %v5754_v57  ;;  %v848_v60 = vpop.permute.xlu1 %847 }
 0x19f   :  { %v698_v11 = vsel %vm675_vm2, %v690_v5, -1e+30  ;;  %v699_v26 = vsel %vm676_vm1, %v691_v20, -1e+30  ;;  %vm593_vm1 = vcmp.eq.s32.totalorder %v580_v50, 1  ;;  %vm594_vm2 = vcmp.eq.s32.totalorder %v584_v35, 1 }
 0x1a0   :  { %v705_v51 = vcombine.low %v698_v11, %v699_v26  ;;  %v664_v32 = vrot.slane %v648_v30, %v5693_v10  ;;  %v750_v24 = vrot.slane %v734_v21, %v5731_v17  ;;  %v754_v38 = vrot.slane %v738_v0, %v5731_v17 }
 0x1a1   :  { %371 = vrot.lane.b32.xlu1 %v369_v49, %s5340_s0  ;;  %v768_v56 = vpop.permute.xlu0 %767  ;;  %v608_v49 = vsel %vm607_vm15, %v5669_v40, %v5645_v8  ;;  %v544_v40 = vcombine.low %v536_v47, %v537_v25  ;;  %v617_v8 = vsel %vm594_vm2, %v609_v27, -1e+30  ;;  %v688_v5 = vsel %vm687_vm9, %v5718_v19, %v5674_v48 }
 0x1a2   :  { %708 = vrot.lane.b32.xlu0 %v705_v51, %s5340_s0  ;;  %v616_v53 = vsel %vm593_vm1, %v608_v49, -1e+30  ;;  %vm674_vm12 = vcmp.eq.s32.totalorder %v664_v32, 1  ;;  %v689_v20 = vsel %vm687_vm9, %v5674_v48, %v682_v22  ;;  %vm766_vm14 = vcmp.eq.s32.totalorder %v762_v4, 1  ;;  %v852_v19 = vpop.permute.xlu1 %851 }
 0x1a3   :  { %v822_v50 = vrot.slane %v5594_v9, %v5731_v17  ;;  %v826_v35 = vrot.slane %v5594_v9, %v5754_v57  ;;  %vm763_vm0 = vcmp.eq.s32.totalorder %v750_v24, 1  ;;  %vm764_vm3 = vcmp.eq.s32.totalorder %v754_v38, 1 }
 0x1a4   :  { %v624_v26 = vcombine.low %v616_v53, %v617_v8  ;;  %v696_v48 = vsel %vm673_vm10, %v688_v5, -1e+30  ;;  %v697_v22 = vsel %vm674_vm12, %v689_v20, -1e+30  ;;  %v830_v51 = vrot.slane %v814_v54, %v5731_v17 }
 0x1a5   :  { %v772_v7 = vpop.permute.xlu0 %771  ;;  %456 = vrot.lane.b32.xlu1 %v454_v46, %s5340_s0  ;;  %v778_v63 = vsel %vm777_vm4, %v768_v56, %v5728_v16  ;;  %v834_v0 = vrot.slane %v818_v18, %v5731_v17  ;;  %v838_v46 = vrot.slane %v822_v50, %v5731_v17  ;;  %v842_v62 = vrot.slane %v826_v35, %v5731_v17 }
 0x1a6   :  { %v780_v55 = vsel %vm777_vm4, %v772_v7, %v774_v3  ;;  %v779_v9 = vsel %vm777_vm4, %v5728_v16, %v772_v7  ;;  %v786_v25 = vsel %vm763_vm0, %v778_v63, -1e+30  ;;  %vm857_vm1 = vcmask 777216   ;;  %v856_v27 = vpop.permute.xlu1 %855 }
 0x1a7   :  { %v788_v30 = vsel %vm765_vm11, %v780_v55, -1e+30  ;;  %v787_v56 = vsel %vm764_vm3, %v779_v9, -1e+30  ;;  %vm843_vm2 = vcmp.eq.s32.totalorder %v830_v51, 1  ;;  %vm845_vm10 = vcmp.eq.s32.totalorder %v838_v46, 1 }
 0x1a8   :  { %vm846_vm11 = vcmp.eq.s32.totalorder %v842_v62, 1  ;;  %v794_v4 = vcombine.low %v786_v25, %v787_v56  ;;  %v894_v54 = vrot.slane %v5649_v13, %v5731_v17  ;;  %v898_v5 = vrot.slane %v5649_v13, %v5754_v57 }
 0x1a9   :  { %v776_v11 = vpop.permute.xlu0 %775  ;;  %546 = vrot.lane.b32.xlu1 %v544_v40, %s5340_s0  ;;  %v902_v20 = vrot.slane %v5584_v6, %v5731_v17  ;;  %v906_v35 = vrot.slane %v5584_v6, %v5754_v57  ;;  %v1186_v6 = vrot.slane %v5628_v43, %v5652_v14  ;;  %v1190_v63 = vrot.slane %v5628_v43, %v5655_v15 }
 0x1aa   :  { %v781_v58 = vsel %vm777_vm4, %v774_v3, %v776_v11  ;;  %v704_v3 = vcombine.low %v696_v48, %v697_v22  ;;  %vm844_vm4 = vcmp.eq.s32.totalorder %v834_v0, 1  ;;  %v914_v11 = vrot.slane %v898_v5, %v5731_v17 }
 0x1ab   :  { %v789_v21 = vsel %vm766_vm14, %v781_v58, -1e+30  ;;  %v918_v13 = vrot.slane %v902_v20, %v5731_v17  ;;  %v922_v51 = vrot.slane %v906_v35, %v5731_v17  ;;  %vm937_vm0 = vcmask 769024  }
 0x1ac   :  { %v795_v39 = vcombine.low %v788_v30, %v789_v21  ;;  %v910_v30 = vrot.slane %v894_v54, %v5731_v17  ;;  %vm924_vm14 = vcmp.eq.s32.totalorder %v914_v11, 1  ;;  %v1206_v62 = vrot.slane %v1186_v6, %v5652_v14 }
 0x1ad   :  { %v850_v47 = vpop.permute.xlu0 %849  ;;  %626 = vrot.lane.b32.xlu1 %v624_v26, %s5340_s0  ;;  %vm925_vm3 = vcmp.eq.s32.totalorder %v918_v13, 1  ;;  %v1601_v54 = vrot.slane %v5628_v43, %v5696_v12  ;;  %v1194_v5 = vrot.slane %v5563_v61, %v5652_v14  ;;  %v1198_v35 = vrot.slane %v5563_v61, %v5655_v15 }
 0x1ae   :  { %798 = vrot.lane.b32.xlu0 %v795_v39, %s5340_s0  ;;  %v858_v16 = vsel %vm857_vm1, %v848_v60, %v850_v47  ;;  %v859_v49 = vsel %vm857_vm1, %v850_v47, %v852_v19  ;;  %vm923_vm12 = vcmp.eq.s32.totalorder %v910_v30, 1  ;;  %v1210_v47 = vrot.slane %v1190_v63, %v5652_v14 }
 0x1af   :  { %v866_v24 = vsel %vm843_vm2, %v858_v16, -1e+30  ;;  %v867_v7 = vsel %vm844_vm4, %v859_v49, -1e+30  ;;  %vm926_vm2 = vcmp.eq.s32.totalorder %v922_v51, 1  ;;  %v1605_v15 = vrot.slane %v5563_v61, %v5693_v10 }
 0x1b0   :  { %v874_v60 = vcombine.low %v866_v24, %v867_v7  ;;  %v1609_v13 = vrot.slane %v5563_v61, %v5696_v12  ;;  %vm1231_vm4 = vcmask 130048  }
 0x1b1   :  { %v854_v32 = vpop.permute.xlu0 %853  ;;  %706 = vrot.lane.b32.xlu1 %v704_v3, %s5340_s0  ;;  %v1625_v63 = vrot.slane %v1605_v15, %v5693_v10 }
 0x1b2   :  { %v860_v38 = vsel %vm857_vm1, %v852_v19, %v854_v32  ;;  %v861_v40 = vsel %vm857_vm1, %v854_v32, %v856_v27 }
 0x1b3   :  { %v868_v53 = vsel %vm845_vm10, %v860_v38, -1e+30  ;;  %v869_v8 = vsel %vm846_vm11, %v861_v40, -1e+30  ;;  %v1597_v40 = vrot.slane %v5628_v43, %v5693_v10  ;;  %vm1642_vm10 = vcmask 146432  }
 0x1b4   :  { %v875_v55 = vcombine.low %v868_v53, %v869_v8  ;;  %vm998_vm11 = vcmask 908288  }
 0x1b5   :  { %796 = vrot.lane.b32.xlu1 %v794_v4, %s5340_s0  ;;  %v928_v18 = vpop.permute.xlu0 %927 }
 0x1b6   :  { %878 = vrot.lane.b32.xlu0 %v875_v55, %s5340_s0 }
 0x1b9   :  { %876 = vrot.lane.b32.xlu1 %v874_v60, %s5340_s0  ;;  %v932_v0 = vpop.permute.xlu0 %931 }
 0x1bd   :  { %v936_v8 = vpop.permute.xlu0 %935 }
 0x210   :  { %v235_v50 = vpop.permute.xlu1 %234 }
 0x211   :  { %v241_v19 = vmul.f32 %v235_v50, %v5516_v41  ;;  %v242_v26 = vmul.f32 %v235_v50, %v5522_v44  ;;  %v243_v48 = vmul.f32 %v235_v50, %v5518_v42  ;;  %v244_v22 = vmul.f32 %v235_v50, %v5524_v45 }
 0x214   :  { %v253_v58 = vpop.permute.xlu1 %252 }
 0x215   :  { %v259_v9 = vadd.f32 %v253_v58, %v241_v19  ;;  %v260_v21 = vadd.f32 %v253_v58, %v242_v26  ;;  %v261_v41 = vadd.f32 %v253_v58, %v243_v48  ;;  %v262_v42 = vadd.f32 %v253_v58, %v244_v22 }
 0x216   :  { %v1223_v19 = vcombine.low %v1206_v62, %v1210_v47  ;;  %v1617_v26 = vrot.slane %v1597_v40, %v5693_v10  ;;  %v1621_v48 = vrot.slane %v1601_v54, %v5693_v10  ;;  %v1214_v22 = vrot.slane %v1194_v5, %v5652_v14 }
 0x217   :  { %v267_v44 = vmax.f32 %v259_v9, 0.0  ;;  %v268_v45 = vmax.f32 %v260_v21, 0.0  ;;  %v269_v39 = vmax.f32 %v261_v41, 0.0  ;;  %v270_v3 = vmax.f32 %v262_v42, 0.0  ;;  %v374_v42 = vpop.permute.xlu0 %373 }
 0x218   :  { %v930_v46 = vpop.permute.xlu1 %929  ;;  %v1218_v58 = vrot.slane %v1198_v35, %v5652_v14  ;;  %v1634_v51 = vcombine.low %v1617_v26, %v1621_v48  ;;  %v1629_v9 = vrot.slane %v1609_v13, %v5693_v10 }
 0x219   :  { %v938_v25 = vsel %vm937_vm0, %v928_v18, %v930_v46  ;;  %v939_v56 = vsel %vm937_vm0, %v930_v46, %v932_v0  ;;  %v5858_v16 = vmin.f32 %v267_v44, 6.0  ;;  %v5860_v49 = vmin.f32 %v268_v45, 6.0 }
 0x21a   :  { %v946_v27 = vsel %vm923_vm12, %v938_v25, -1e+30  ;;  %v947_v32 = vsel %vm924_vm14, %v939_v56, -1e+30  ;;  %v5864_v4 = vmin.f32 %v269_v39, 6.0  ;;  %v5866_v24 = vmin.f32 %v270_v3, 6.0 }
 0x21b   :  { %v954_v7 = vcombine.low %v946_v27, %v947_v32  ;;  %v1163_v38 = vcombine.low %v5858_v16, %v5860_v49  ;;  %v2631_v53 = vcombine.high %v5858_v16, %v5860_v49  ;;  %v1224_v6 = vcombine.low %v1214_v22, %v1218_v58  ;;  %v459_v12 = vpop.permute.xlu0 %458 }
 0x21c   :  { %v934_v55 = vpop.permute.xlu1 %933  ;;  %v1164_v60 = vcombine.low %v5864_v4, %v5866_v24  ;;  %v2632_v20 = vcombine.high %v5864_v4, %v5866_v24  ;;  %v1635_v14 = vcombine.low %v1625_v63, %v1629_v9  ;;  %v376_v3 = vrot.slane %v374_v42, 4 }
 0x21d   :  { %v940_v18 = vsel %vm937_vm0, %v932_v0, %v934_v55  ;;  %v941_v50 = vsel %vm937_vm0, %v934_v55, %v936_v8  ;;  %956 = vrot.lane.b32.xlu1 %v954_v7, %s5340_s0  ;;  %v461_v27 = vrot.slane %v459_v12, 4  ;;  %vm6729_vm12 = vcmask 1041408  }
 0x21e   :  { %v948_v30 = vsel %vm925_vm3, %v940_v18, -1e+30  ;;  %v949_v11 = vsel %vm926_vm2, %v941_v50, -1e+30  ;;  %vm6730_vm14 = vmmov %vm6729_vm12  ;;  %vm6733_vm2 = vcmask 31744  }
 0x21f   :  { %v955_v43 = vcombine.low %v948_v30, %v949_v11  ;;  %v549_v44 = vpop.permute.xlu0 %548  ;;  %vm6731_vm0 = vmmov %vm6729_vm12 }
 0x220   :  { %v372_v21 = vpop.permute.xlu1 %371  ;;  %v551_v8 = vrot.slane %v549_v44, 4  ;;  %vm6732_vm3 = vmmov %vm6731_vm0 }
 0x221   :  { %1165 = vrot.lane.b32.xlu1 %v1163_v38, %s5340_s0  ;;  %958 = vrot.lane.b32.xlu0 %v955_v43, %s5340_s0  ;;  %v375_v39 = vrot.slane %v372_v21, 4 }
 0x223   :  { %v629_v46 = vpop.permute.xlu0 %628  ;;  %v377_v10 = vsel %vm289_vm5, %v375_v39, %v372_v21  ;;  %v378_v32 = vsel %vm291_vm8, %v375_v39, %v376_v3 }
 0x224   :  { %v457_v41 = vpop.permute.xlu1 %456  ;;  %v383_v40 = vmax.f32 %v5451_v28, %v377_v10  ;;  %v379_v5 = vsel %vm289_vm5, %v378_v32, %v374_v42  ;;  %v631_v30 = vrot.slane %v629_v46, 4 }
 0x225   :  { %1225 = vrot.lane.b32.xlu1 %v1223_v19, %s5348_s21  ;;  %1167 = vrot.lane.b32.xlu0 %v1164_v60, %s5340_s0  ;;  %v460_v62 = vrot.slane %v457_v41, 4  ;;  %v384_v22 = vmax.f32 %v5456_v29, %v379_v5 }
 0x227   :  { %v709_v56 = vpop.permute.xlu0 %708  ;;  %v462_v7 = vsel %vm289_vm5, %v460_v62, %v457_v41  ;;  %v463_v55 = vsel %vm291_vm8, %v460_v62, %v461_v27 }
 0x228   :  { %v547_v0 = vpop.permute.xlu1 %546  ;;  %v468_v50 = vmax.f32 %v383_v40, %v462_v7  ;;  %v711_v26 = vrot.slane %v709_v56, 4  ;;  %v464_v28 = vsel %vm289_vm5, %v463_v55, %v459_v12 }
 0x229   :  { %1636 = vrot.lane.b32.xlu1 %v1634_v51, %s5349_s22  ;;  %1227 = vrot.lane.b32.xlu0 %v1224_v6, %s5348_s21  ;;  %v550_v25 = vrot.slane %v547_v0, 4  ;;  %v385_v51 = vmax.f32 %v5466_v31, %v376_v3  ;;  %v469_v21 = vmax.f32 %v384_v22, %v464_v28 }
 0x22b   :  { %v552_v60 = vsel %vm289_vm5, %v550_v25, %v547_v0  ;;  %v799_v18 = vpop.permute.xlu0 %798  ;;  %v553_v11 = vsel %vm291_vm8, %v550_v25, %v551_v8  ;;  %v470_v42 = vmax.f32 %v385_v51, %v461_v27 }
 0x22c   :  { %v627_v61 = vpop.permute.xlu1 %626  ;;  %v558_v48 = vmax.f32 %v468_v50, %v552_v60  ;;  %v554_v6 = vsel %vm289_vm5, %v553_v11, %v549_v44 }
 0x22d   :  { %1638 = vrot.lane.b32.xlu0 %v1635_v14, %s5349_s22  ;;  %v630_v38 = vrot.slane %v627_v61, 4  ;;  %v801_v14 = vrot.slane %v799_v18, 4  ;;  %v559_v12 = vmax.f32 %v469_v21, %v554_v6  ;;  %v560_v10 = vmax.f32 %v470_v42, %v551_v8  ;;  %s5351_s22 = smov 33  }
 0x22f   :  { %v632_v43 = vsel %vm289_vm5, %v630_v38, %v627_v61  ;;  %v633_v58 = vsel %vm291_vm8, %v630_v38, %v631_v30  ;;  %v879_v63 = vpop.permute.xlu0 %878 }
 0x230   :  { %v707_v45 = vpop.permute.xlu1 %706  ;;  %v638_v9 = vmax.f32 %v558_v48, %v632_v43  ;;  %v634_v29 = vsel %vm289_vm5, %v633_v58, %v629_v46  ;;  %v881_v39 = vrot.slane %v879_v63, 4  ;;  %v640_v46 = vmax.f32 %v560_v10, %v631_v30 }
 0x231   :  { %v710_v54 = vrot.slane %v707_v45, 4  ;;  %v639_v25 = vmax.f32 %v559_v12, %v634_v29 }
 0x233   :  { %v712_v15 = vsel %vm289_vm5, %v710_v54, %v707_v45  ;;  %v713_v41 = vsel %vm291_vm8, %v710_v54, %v711_v26 }
 0x234   :  { %v797_v47 = vpop.permute.xlu1 %796  ;;  %v718_v61 = vmax.f32 %v638_v9, %v712_v15  ;;  %v714_v44 = vsel %vm289_vm5, %v713_v41, %v709_v56  ;;  %v720_v56 = vmax.f32 %v640_v46, %v711_v26 }
 0x235   :  { %v800_v19 = vrot.slane %v797_v47, 4  ;;  %v719_v40 = vmax.f32 %v639_v25, %v714_v44 }
 0x237   :  { %v802_v0 = vsel %vm289_vm5, %v800_v19, %v797_v47  ;;  %v803_v45 = vsel %vm291_vm8, %v800_v19, %v801_v14  ;;  %v810_v19 = vmax.f32 %v720_v56, %v801_v14 }
 0x238   :  { %v877_v35 = vpop.permute.xlu1 %876  ;;  %v808_v62 = vmax.f32 %v718_v61, %v802_v0  ;;  %v804_v27 = vsel %vm289_vm5, %v803_v45, %v799_v18 }
 0x239   :  { %v880_v13 = vrot.slane %v877_v35, 4  ;;  %v890_v58 = vmax.f32 %v810_v19, %v881_v39 }
 0x23b   :  { %v882_v31 = vsel %vm289_vm5, %v880_v13, %v877_v35  ;;  %v883_v32 = vsel %vm291_vm8, %v880_v13, %v881_v39  ;;  %v809_v35 = vmax.f32 %v719_v40, %v804_v27 }
 0x23c   :  { %v888_v47 = vmax.f32 %v808_v62, %v882_v31  ;;  %v884_v54 = vsel %vm289_vm5, %v883_v32, %v879_v63 }
 0x23d   :  { %v889_v48 = vmax.f32 %v809_v35, %v884_v54 }
 0x28f   :  { %v957_v3 = vpop.permute.xlu1 %956 }
 0x290   :  { %v960_v7 = vrot.slane %v957_v3, 4 }
 0x292   :  { %v962_v38 = vsel %vm289_vm5, %v960_v7, %v957_v3 }
 0x293   :  { %v968_v55 = vmax.f32 %v888_v47, %v962_v38  ;;  %v1166_v60 = vpop.permute.xlu1 %1165  ;;  %v959_v5 = vpop.permute.xlu0 %958 }
 0x294   :  { %v1169_v50 = vrot.slane %v1166_v60, 4  ;;  %v961_v8 = vrot.slane %v959_v5, 4 }
 0x295   :  { %v978_v11 = vpack.c.bf16 %v968_v55, %v968_v55  ;;  %v974_v43 = vcombine.high %v968_v55, %v968_v55 }
 0x296   :  { %v1171_v28 = vsel %vm289_vm5, %v1169_v50, %v1166_v60  ;;  %v963_v18 = vsel %vm291_vm8, %v960_v7, %v961_v8  ;;  %v970_v63 = vmax.f32 %v890_v58, %v961_v8  ;;  %v971_v58 = vld [vmem:[%s6712_s3] sm:$0xf] }
 0x297   :  { %1177 = vst.msk [vmem:[#allocation2] sm:$0xff] %vm5442_vm7, %v1171_v28  ;;  %v964_v30 = vsel %vm289_vm5, %v963_v18, %v959_v5  ;;  %988 = vrot.lane.b32.xlu1 %v978_v11, %s5350_s23  ;;  %v1168_v26 = vpop.permute.xlu0 %1167  ;;  %v979_v22 = vpack.c.bf16 %v974_v43, %v974_v43  ;;  %v1226_v9 = vpop.permute.xlu1 %1225 }
 0x298   :  { %v969_v15 = vmax.f32 %v889_v48, %v964_v30  ;;  %v1170_v13 = vrot.slane %v1168_v26, 4  ;;  %v982_v21 = vpack.c.bf16 %v970_v63, %v970_v63  ;;  %v1229_v41 = vrot.slane %v1226_v9, 4 }
 0x299   :  { %990 = vrot.lane.b32.xlu0 %v979_v22, %s5350_s23  ;;  %v6734_v63 = vmov 0.0  }
 0x29a   :  { %1179 = vst.msk [vmem:[#allocation2 + $0x10] sm:$0xf] %vm302_vm6, %v1170_v13  ;;  %v980_v51 = vpack.c.bf16 %v969_v15, %v969_v15  ;;  %v975_v6 = vcombine.high %v969_v15, %v969_v15  ;;  %v1172_v42 = vsel %vm291_vm8, %v1169_v50, %v1170_v13  ;;  %v5943_v39 = vsel %vm1231_vm4, %v1229_v41, %v1226_v9  ;;  %v1243_v9 = vld [vmem:[%s6713_s6] sm:$0xc] }
 0x29b   :  { %v1228_v0 = vpop.permute.xlu0 %1227  ;;  %v1637_v61 = vpop.permute.xlu1 %1636  ;;  %v1173_v45 = vsel %vm289_vm5, %v1172_v42, %v1168_v26 }
 0x29c   :  { %992 = vrot.lane.b32.xlu1 %v980_v51, %s5350_s23  ;;  %v981_v14 = vpack.c.bf16 %v975_v6, %v975_v6  ;;  %v5939_v12 = vrot.slane %v1228_v0, 4  ;;  %v1640_v44 = vrot.slane %v1637_v61, 4  ;;  %v1251_v47 = vcombine.high %v1173_v45, %v1173_v45 }
 0x29e   :  { %994 = vrot.lane.b32.xlu0 %v981_v14, %s5350_s23  ;;  %v1591_v31 = vld [vmem:[#allocation2] sm:$0xff]  ;;  %v1233_v62 = vsel %vm291_vm8, %v1229_v41, %v5939_v12  ;;  %v5953_v25 = vsel %vm1642_vm10, %v1640_v44, %v1637_v61  ;;  %v1244_v41 = vunpack.c.l.bf16 %v1243_v9 }
 0x29f   :  { %v1238_v3 = vmul.f32 %v1591_v31, %v5943_v39  ;;  %v1250_v10 = vcombine.high %v1591_v31, %v1591_v31  ;;  %v5956_v32 = vsel %vm1231_vm4, %v1233_v62, %v1228_v0  ;;  %v1639_v7 = vpop.permute.xlu0 %1638  ;;  %v1649_v27 = vmul.f32 %v5953_v25, %v1591_v31  ;;  %vm6735_vm4 = vmmov %vm6733_vm2 }
 0x2a0   :  { %996 = vrot.lane.b32.xlu1 %v982_v21, %s5350_s23  ;;  %v5960_v46 = vrot.slane %v1639_v7, 4  ;;  %v1239_v38 = vmul.f32 %v5956_v32, %v1173_v45 }
 0x2a1   :  { %v1182_v29 = vld [vmem:[#allocation2 + $0x10] sm:$0xf]  ;;  %v1422_v40 = vcombine.high %v1238_v3, %v1238_v3  ;;  %v1657_v60 = vcombine.high %v1649_v27, %v1649_v27 }
 0x2a2   :  { %1260 = vrot.lane.b32.xlu0 %v1182_v29, %s5350_s23  ;;  %v1644_v55 = vsel %vm291_vm8, %v1640_v44, %v5960_v46  ;;  %v1240_v54 = vmul.f32 %v5939_v12, %v1182_v29  ;;  %v1423_v56 = vcombine.high %v1239_v38, %v1239_v38  ;;  %v1593_v35 = vld [vmem:[#allocation2 + $0x10] sm:$0xf]  ;;  %v1246_v29 = vrot.slane %v1244_v41, 4 }
 0x2a3   :  { %v5971_v5 = vsel %vm1642_vm10, %v1644_v55, %v1639_v7  ;;  %v1651_v11 = vmul.f32 %v5960_v46, %v1593_v35  ;;  %vm6736_vm10 = vmmov %vm6733_vm2 }
 0x2a4   :  { %1256 = vrot.lane.b32.xlu1 %v1173_v45, %s5350_s23  ;;  %v1650_v50 = vmul.f32 %v5971_v5, %v1173_v45 }
 0x2a6   :  { %1252 = vrot.lane.b32.xlu0 %v1591_v31, %s5350_s23  ;;  %v1658_v8 = vcombine.high %v1650_v50, %v1650_v50 }
 0x2a8   :  { %1424 = vrot.lane.b32.xlu1 %v1238_v3, %s5343_s26 }
 0x2aa   :  { %1254 = vrot.lane.b32.xlu0 %v1250_v10, %s5350_s23  ;;  %v1241_v10 = vld [vmem:[%s6713_s6] sm:$0x3] }
 0x2ac   :  { %1258 = vrot.lane.b32.xlu1 %v1251_v47, %s5350_s23 }
 0x2ae   :  { %1428 = vrot.lane.b32.xlu0 %v1239_v38, %s5343_s26 }
 0x2b0   :  { %1426 = vrot.lane.b32.xlu1 %v1422_v40, %s5343_s26  ;;  %v1242_v40 = vunpack.c.l.bf16 %v1241_v10 }
 0x2b2   :  { %1661 = vrot.lane.b32.xlu0 %v1657_v60, %s5344_s27 }
 0x2b4   :  { %1432 = vrot.lane.b32.xlu1 %v1240_v54, %s5343_s26 }
 0x2b6   :  { %1430 = vrot.lane.b32.xlu0 %v1423_v56, %s5343_s26 }
 0x2b8   :  { %1663 = vrot.lane.b32.xlu1 %v1650_v50, %s5344_s27  ;;  %v1652_v50 = vld [vmem:[%s6713_s6 + $0x4] sm:$0x3] }
 0x2ba   :  { %1659 = vrot.lane.b32.xlu0 %v1649_v27, %s5344_s27 }
 0x2bc   :  { %1665 = vrot.lane.b32.xlu1 %v1658_v8, %s5344_s27 }
 0x2be   :  { %1667 = vrot.lane.b32.xlu0 %v1651_v11, %s5344_s27 }
 0x309   :  { %v989_v43 = vpop.permute.xlu1 %988 }
 0x30b   :  { %v991_v19 = vpop.permute.xlu0 %990 }
 0x30c   :  { %v999_v28 = vsel %vm998_vm11, %v989_v43, %v991_v19  ;;  %v1653_v43 = vunpack.c.l.bf16 %v1652_v50 }
 0x30d   :  { %v1007_v26 = vsel %vm6730_vm14, %v999_v28, 0  ;;  %vm6738_vm14 = vmmov %vm6733_vm2 }
 0x30e   :  { %v993_v48 = vpop.permute.xlu1 %992 }
 0x30f   :  { %v1000_v18 = vsel %vm998_vm11, %v991_v19, %v993_v48 }
 0x310   :  { %5126 = vmatprep.subr.msk.bf16.mxu0 %vm6729_vm12, %v1000_v18  ;;  %v995_v30 = vpop.permute.xlu0 %994  ;;  %vm6737_vm12 = vmmov %vm6733_vm2 }
 0x311   :  { %v1001_v22 = vsel %vm998_vm11, %v993_v48, %v995_v30  ;;  %1019 = vmatpush1.bf16.msra.mxu0 %v1007_v26 }
 0x312   :  { %v997_v15 = vpop.permute.xlu1 %996  ;;  %v1013_v6 = vsel %vm6732_vm3, %v1001_v22, 0 }
 0x313   :  { %v1002_v13 = vsel %vm998_vm11, %v995_v30, %v997_v15 }
 0x314   :  { %5128 = vmatprep.subr.msk.bf16.mxu1 %vm6731_vm0, %v1002_v13  ;;  %v1261_v51 = vpop.permute.xlu0 %1260  ;;  %5127 = vmatmul.mubr.msk.bf16.vlgmr.msra.gmra.mrb[4].mxu0 %vm6733_vm2, %v971_v58  ;;  %vm6739_vm0 = vmmov %vm6733_vm2 }
 0x315   :  { %1060 = vmatpush1.bf16.msra.mxu1 %v1013_v6  ;;  %1341 = vmatprep.mubr.f32.mxu0 %v6734_v63  ;;  %vm6740_vm3 = vmmov %vm6739_vm0 }
 0x316   :  { %v1257_v14 = vpop.permute.xlu1 %1256  ;;  %vm6741_vm2 = vmmov %vm6739_vm0 }
 0x318   :  { %v1253_v21 = vpop.permute.xlu0 %1252  ;;  %5129 = vmatmul.mubr.msk.bf16.vlgmr.msra.gmra.mrb[4].mxu1 %vm6735_vm4, %v971_v58  ;;  %vm1961_vm4 = vcmask 7168  }
 0x319   :  { %1412 = vmatprep.mubr.f32.mxu1 %v6734_v63 }
 0x31a   :  { %v1425_v0 = vpop.permute.xlu1 %1424 }
 0x31c   :  { %v1255_v42 = vpop.permute.xlu0 %1254 }
 0x31d   :  { %v1263_v61 = vsel %vm998_vm11, %v1253_v21, %v1255_v42  ;;  %v1264_v45 = vsel %vm998_vm11, %v1255_v42, %v1257_v14 }
 0x31e   :  { %v1259_v31 = vpop.permute.xlu1 %1258  ;;  %5130 = vmatprep.subr.msk.mxu0 %vm291_vm8, %v1264_v45 }
 0x31f   :  { %v1265_v44 = vsel %vm998_vm11, %v1257_v14, %v1259_v31  ;;  %5131 = vmatpush1.msk.msra.mxu0 %vm291_vm8, %v1263_v61  ;;  %v1266_v62 = vsel %vm998_vm11, %v1259_v31, %v1261_v51 }
 0x320   :  { %5132 = vmatmul.mubr.msk.f32.vlgmr.msra.gmra.mrb[8].mxu0 %vm6736_vm10, %v1246_v29  ;;  %5133 = vmatprep.subr.msk.mxu1 %vm291_vm8, %v1266_v62  ;;  %v1429_v3 = vpop.permute.xlu0 %1428  ;;  %vm2382_vm10 = vcmask 269312  }
 0x321   :  { %5134 = vmatpush1.msk.msra.mxu1 %vm291_vm8, %v1265_v44  ;;  %1513 = vmatprep.mubr.f32.mxu0 %v6734_v63 }
 0x322   :  { %v1427_v7 = vpop.permute.xlu1 %1426  ;;  %5135 = vmatmul.mubr.msk.f32.vlgmr.msra.gmra.mrb[8].mxu1 %vm6737_vm12, %v1246_v29  ;;  %vm6742_vm12 = vmmov %vm6739_vm0 }
 0x323   :  { %v1434_v47 = vsel %vm607_vm15, %v1425_v0, %v1427_v7  ;;  %v1435_v27 = vsel %vm607_vm15, %v1427_v7, %v1429_v3  ;;  %1584 = vmatprep.mubr.f32.mxu1 %v6734_v63 }
 0x324   :  { %5136 = vmatprep.subr.msk.mxu0 %vm291_vm8, %v1435_v27  ;;  %v1662_v38 = vpop.permute.xlu0 %1661 }
 0x325   :  { %5137 = vmatpush1.msk.msra.mxu0 %vm291_vm8, %v1434_v47 }
 0x326   :  { %v1433_v55 = vpop.permute.xlu1 %1432 }
 0x328   :  { %5138 = vmatmul.mubr.msk.f32.vlgmr.msra.gmra.mrb[8].mxu0 %vm6738_vm14, %v1242_v40  ;;  %v1431_v60 = vpop.permute.xlu0 %1430  ;;  %vm6743_vm14 = vmmov %vm6739_vm0 }
 0x329   :  { %v1436_v54 = vsel %vm607_vm15, %v1429_v3, %v1431_v60  ;;  %v1437_v56 = vsel %vm607_vm15, %v1431_v60, %v1433_v55  ;;  %1748 = vmatprep.mubr.f32.mxu0 %v6734_v63 }
 0x32a   :  { %v1664_v35 = vpop.permute.xlu1 %1663  ;;  %5139 = vmatprep.subr.msk.mxu1 %vm291_vm8, %v1437_v56 }
 0x32b   :  { %5140 = vmatpush1.msk.msra.mxu1 %vm291_vm8, %v1436_v54  ;;  %v1670_v8 = vsel %vm687_vm9, %v1662_v38, %v1664_v35 }
 0x32c   :  { %5141 = vmatmul.mubr.msk.f32.vlgmr.msra.gmra.mrb[8].mxu1 %vm6739_vm0, %v1242_v40  ;;  %5142 = vmatprep.subr.msk.mxu0 %vm291_vm8, %v1670_v8  ;;  %v1660_v11 = vpop.permute.xlu0 %1659 }
 0x32d   :  { %v1669_v19 = vsel %vm687_vm9, %v1660_v11, %v1662_v38  ;;  %1819 = vmatprep.mubr.f32.mxu1 %v6734_v63 }
 0x32e   :  { %5143 = vmatpush1.msk.msra.mxu0 %vm291_vm8, %v1669_v19  ;;  %v1666_v28 = vpop.permute.xlu1 %1665 }
 0x32f   :  { %v1671_v30 = vsel %vm687_vm9, %v1664_v35, %v1666_v28 }
 0x330   :  { %5144 = vmatmul.mubr.msk.f32.vlgmr.msra.gmra.mrb[8].mxu0 %vm6740_vm3, %v1653_v43  ;;  %v1668_v48 = vpop.permute.xlu0 %1667  ;;  %vm6744_vm3 = vmmov %vm6739_vm0 }
 0x331   :  { %v1672_v18 = vsel %vm687_vm9, %v1666_v28, %v1668_v48  ;;  %2077 = vmatprep.mubr.f32.mxu0 %v6734_v63 }
 0x332   :  { %5145 = vmatprep.subr.msk.mxu1 %vm291_vm8, %v1672_v18 }
 0x333   :  { %5146 = vmatpush1.msk.msra.mxu1 %vm291_vm8, %v1671_v30 }
 0x334   :  { %5147 = vmatmul.mubr.msk.f32.vlgmr.msra.gmra.mrb[8].mxu1 %vm6741_vm2, %v1653_v43  ;;  %vm6745_vm2 = vmmov %vm6739_vm0 }
 0x335   :  { %2148 = vmatprep.mubr.f32.mxu1 %v6734_v63 }
 0x3e7   :  { %v6041_v26 = vpop.f32.mrb[4].mxu0 }
 0x3e8   :  { %v1107_v22 = vmul.f32 %v6041_v26, %v6041_v26  ;;  %v6045_v58 = vpop.f32.mrb[5].mxu0 }
 0x3e9   :  { %v1102_v15 = vadd.f32 %v6045_v58, %v6041_v26  ;;  %v1108_v13 = vmul.f32 %v6045_v58, %v6045_v58  ;;  %v1056_v51 = vpop.f32.mrb[6].mxu0 }
 0x3ea   :  { %v1057_v6 = vpop.f32.mrb[7].mxu0 }
 0x3eb   :  { %v1111_v9 = vadd.f32 %v1108_v13, %v1107_v22  ;;  %v6051_v14 = vpop.f32.mrb[4].mxu1 }
 0x3ec   :  { %v1103_v21 = vadd.f32 %v1102_v15, %v6051_v14  ;;  %v1109_v41 = vmul.f32 %v6051_v14, %v6051_v14  ;;  %v6056_v0 = vpop.f32.mrb[5].mxu1 }
 0x3ed   :  { %v1110_v42 = vmul.f32 %v6056_v0, %v6056_v0  ;;  %v1097_v29 = vpop.f32.mrb[6].mxu1 }
 0x3ee   :  { %v1112_v61 = vadd.f32 %v1111_v9, %v1109_v41  ;;  %v6061_v45 = vadd.f32 %v1103_v21, %v6056_v0  ;;  %v1098_v31 = vpop.f32.mrb[7].mxu1  ;;  %v1830_v41 = vld [vmem:[%s6714_s7] sm:$0xf] }
 0x3f0   :  { %v6063_v44 = vadd.f32 %v1112_v61, %v1110_v42  ;;  %v1831_v61 = vld [vmem:[%s6715_s8] sm:$0xf] }
 0x403   :  { %v1750_v62 = vpop.f32.mrb[8].mxu0 }
 0x404   :  { %v1832_v3 = vsel %vm291_vm8, %v1750_v62, 0.0  ;;  %v1841_v10 = vmul.f32 %v1750_v62, %v1750_v62  ;;  %v1752_v7 = vpop.f32.mrb[9].mxu0 }
 0x405   :  { %v1833_v47 = vsel %vm291_vm8, %v1752_v7, 0.0  ;;  %v1842_v27 = vmul.f32 %v1752_v7, %v1752_v7 }
 0x406   :  { %v1845_v38 = vsel %vm291_vm8, %v1841_v10, 0.0  ;;  %v1834_v40 = vadd.f32 %v1833_v47, %v1832_v3  ;;  %v5335_v10 = vld [vmem:[%s6709_s1] sm:$0xff] }
 0x407   :  { %v1846_v55 = vsel %vm291_vm8, %v1842_v27, 0.0  ;;  %v1821_v60 = vpop.f32.mrb[8].mxu1  ;;  %v2337_v47 = vrot.slane %v5335_v10, %v5731_v17  ;;  %v2341_v27 = vrot.slane %v5335_v10, %v5754_v57 }
 0x408   :  { %v1835_v54 = vsel %vm291_vm8, %v1821_v60, 0.0  ;;  %v1843_v56 = vmul.f32 %v1821_v60, %v1821_v60  ;;  %v1823_v50 = vpop.f32.mrb[9].mxu1  ;;  %v1847_v35 = vadd.f32 %v1846_v55, %v1845_v38 }
 0x409   :  { %v1844_v8 = vmul.f32 %v1823_v50, %v1823_v50  ;;  %v1836_v11 = vadd.f32 %v1835_v54, %v1834_v40  ;;  %v1837_v43 = vsel %vm291_vm8, %v1823_v50, 0.0  ;;  %v2357_v38 = vrot.slane %v2337_v47, %v5731_v17 }
 0x40a   :  { %v1848_v19 = vsel %vm291_vm8, %v1843_v56, 0.0  ;;  %v2361_v40 = vrot.slane %v2341_v27, %v5731_v17 }
 0x40b   :  { %v1838_v28 = vadd.f32 %v1837_v43, %v1836_v11  ;;  %v1849_v48 = vadd.f32 %v1848_v19, %v1847_v35  ;;  %v1850_v18 = vsel %vm291_vm8, %v1844_v8, 0.0 }
 0x40c   :  { %v2374_v55 = vcombine.low %v2357_v38, %v2361_v40 }
 0x40d   :  { %1839 = vadd.xlane.f32.xlu1 %v1838_v28  ;;  %v1851_v30 = vadd.f32 %v1850_v18, %v1849_v48 }
 0x40f   :  { %1852 = vadd.xlane.f32.xlu0 %v1851_v30 }
 0x49a   :  { %v1840_v22 = vpop.xlane.xlu1 %1839 }
 0x49b   :  { %v1854_v15 = vmul.f32 0.001953125, %v1840_v22 }
 0x49c   :  { %v1853_v13 = vpop.xlane.xlu0 %1852 }
 0x49d   :  { %v1856_v51 = vmul.f32 %v1854_v15, %v1854_v15  ;;  %v1855_v6 = vmul.f32 0.001953125, %v1853_v13 }
 0x49f   :  { %v1857_v9 = vsub.f32 %v1855_v6, %v1856_v51  ;;  %v1916_v51 = vrot.slane %v5335_v10, %v5576_v1  ;;  %v1920_v6 = vrot.slane %v5335_v10, %v5579_v2 }
 0x4a1   :  { %v1858_v21 = vadd.f32 1e-05, %v1857_v9 }
 0x4a3   :  { %5319 = vrsqrt.f32 %v1858_v21 }
 0x4ad   :  { %v5320_v42 = vpop.eup %5319 }
 0x4ae   :  { %v1860_v29 = vmul.f32 %v5320_v42, %v1830_v41  ;;  %v1940_v42 = vrot.slane %v1920_v6, %v5576_v1 }
 0x4b0   :  { %1865 = vperm.xlu0 %5308, %v1860_v29   ;;  %v1861_v31 = vmul.f32 %v1860_v29, %v1854_v15  ;;  %v5336_v29 = vld [vmem:[%s6709_s1 + $0x8] sm:$0xff] }
 0x4b1   :  { %v2345_v38 = vrot.slane %v5336_v29, %v5731_v17  ;;  %v2349_v40 = vrot.slane %v5336_v29, %v5754_v57 }
 0x4b2   :  { %v1862_v3 = vsub.f32 %v1831_v61, %v1861_v31  ;;  %v1924_v61 = vrot.slane %v5336_v29, %v5576_v1  ;;  %v1928_v31 = vrot.slane %v5336_v29, %v5579_v2 }
 0x4b3   :  { %v2365_v2 = vrot.slane %v2345_v38, %v5731_v17 }
 0x4b4   :  { %1874 = vperm.xlu1 %5307, %v1862_v3   ;;  %2376 = vrot.lane.b32.xlu0 %v2374_v55, %s5351_s22  ;;  %v1944_v10 = vrot.slane %v1924_v61, %v5576_v1  ;;  %v1948_v47 = vrot.slane %v1928_v31, %v5576_v1  ;;  %v2369_v55 = vrot.slane %v2349_v40, %v5731_v17 }
 0x4b6   :  { %v1954_v27 = vcombine.low %v1944_v10, %v1948_v47 }
 0x52f   :  { %v1866_v54 = vpop.permute.xlu0 %1865 }
 0x530   :  { %v1868_v56 = vmul.f32 %v1866_v54, %v1750_v62  ;;  %v1869_v35 = vmul.f32 %v1866_v54, %v1752_v7  ;;  %v1870_v8 = vmul.f32 %v1866_v54, %v1821_v60  ;;  %v1871_v11 = vmul.f32 %v1866_v54, %v1823_v50 }
 0x531   :  { %v1936_v50 = vrot.slane %v1916_v51, %v5576_v1  ;;  %v2375_v1 = vcombine.low %v2365_v2, %v2369_v55 }
 0x533   :  { %v1875_v43 = vpop.permute.xlu1 %1874  ;;  %v1953_v3 = vcombine.low %v1936_v50, %v1940_v42 }
 0x534   :  { %v1877_v19 = vadd.f32 %v1875_v43, %v1868_v56  ;;  %v1878_v28 = vadd.f32 %v1875_v43, %v1869_v35  ;;  %v1879_v48 = vadd.f32 %v1875_v43, %v1870_v8  ;;  %v1880_v18 = vadd.f32 %v1875_v43, %v1871_v11 }
 0x536   :  { %v1881_v30 = vmax.f32 %v1877_v19, 0.0  ;;  %v1882_v22 = vmax.f32 %v1878_v28, 0.0  ;;  %v1883_v15 = vmax.f32 %v1879_v48, 0.0  ;;  %v1884_v13 = vmax.f32 %v1880_v18, 0.0 }
 0x538   :  { %v1885_v9 = vmin.f32 %v1881_v30, 6.0  ;;  %v1886_v21 = vmin.f32 %v1882_v22, 6.0  ;;  %v1887_v41 = vmin.f32 %v1883_v15, 6.0  ;;  %v1888_v62 = vmin.f32 %v1884_v13, 6.0  ;;  %v2377_v13 = vpop.permute.xlu0 %2376 }
 0x53a   :  { %v1893_v7 = vcombine.low %v1885_v9, %v1886_v21  ;;  %v1894_v60 = vcombine.low %v1887_v41, %v1888_v62  ;;  %v2380_v21 = vrot.slane %v2377_v13, 4 }
 0x53c   :  { %1895 = vrot.lane.b32.xlu1 %v1893_v7, %s5340_s0  ;;  %v6146_v29 = vsel %vm2382_vm10, %v2380_v21, %v2377_v13 }
 0x540   :  { %1897 = vrot.lane.b32.xlu1 %v1894_v60, %s5340_s0 }
 0x544   :  { %1955 = vrot.lane.b32.xlu1 %v1953_v3, %s5352_s28 }
 0x548   :  { %1957 = vrot.lane.b32.xlu1 %v1954_v27, %s5352_s28 }
 0x54c   :  { %2633 = vrot.lane.b32.xlu1 %v2631_v53, %s5340_s0 }
 0x550   :  { %2635 = vrot.lane.b32.xlu1 %v2632_v20, %s5340_s0 }
 0x554   :  { %2378 = vrot.lane.b32.xlu1 %v2375_v1, %s5351_s22 }
 0x5ae   :  { %v1896_v54 = vpop.permute.xlu1 %1895 }
 0x5af   :  { %v1899_v56 = vrot.slane %v1896_v54, 4 }
 0x5b1   :  { %v1901_v57 = vsel %vm289_vm5, %v1899_v56, %v1896_v54 }
 0x5b2   :  { %1907 = vst.msk [vmem:[#allocation2] sm:$0xff] %vm5442_vm7, %v1901_v57  ;;  %v1898_v16 = vpop.permute.xlu1 %1897 }
 0x5b3   :  { %v1900_v49 = vrot.slane %v1898_v16, 4 }
 0x5b5   :  { %v1902_v53 = vsel %vm291_vm8, %v1899_v56, %v1900_v49  ;;  %1909 = vst.msk [vmem:[#allocation2 + $0x10] sm:$0xf] %vm302_vm6, %v1900_v49 }
 0x5b6   :  { %v1903_v17 = vsel %vm289_vm5, %v1902_v53, %v1898_v16  ;;  %v1956_v4 = vpop.permute.xlu1 %1955 }
 0x5b7   :  { %1993 = vrot.lane.b32.xlu1 %v1903_v17, %s5350_s23  ;;  %v1959_v24 = vrot.slane %v1956_v4, 4  ;;  %v1988_v6 = vcombine.high %v1903_v17, %v1903_v17 }
 0x5b9   :  { %v6125_v43 = vsel %vm1961_vm4, %v1959_v24, %v1956_v4  ;;  %v1910_v28 = vld [vmem:[#allocation2] sm:$0xff] }
 0x5ba   :  { %v1958_v20 = vpop.permute.xlu1 %1957  ;;  %v1968_v30 = vmul.f32 %v6125_v43, %v1910_v28  ;;  %v1987_v42 = vcombine.high %v1910_v28, %v1910_v28  ;;  %v2389_v3 = vmul.f32 %v6146_v29, %v1910_v28 }
 0x5bb   :  { %v6120_v35 = vrot.slane %v1958_v20, 4 }
 0x5bc   :  { %v1912_v8 = vld [vmem:[#allocation2 + $0x10] sm:$0xf]  ;;  %v2163_v31 = vcombine.high %v1968_v30, %v1968_v30  ;;  %v2404_v40 = vcombine.high %v2389_v3, %v2389_v3 }
 0x5bd   :  { %1997 = vrot.lane.b32.xlu0 %v1912_v8, %s5350_s23  ;;  %v1970_v11 = vmul.f32 %v6120_v35, %v1912_v8  ;;  %v2333_v51 = vld [vmem:[#allocation2 + $0x10] sm:$0xf]  ;;  %v1963_v61 = vsel %vm291_vm8, %v1959_v24, %v6120_v35 }
 0x5be   :  { %v2634_v19 = vpop.permute.xlu1 %2633  ;;  %v6154_v10 = vsel %vm1961_vm4, %v1963_v61, %v1958_v20  ;;  %vm6746_vm4 = vmmov %vm6739_vm0 }
 0x5bf   :  { %v2637_v48 = vrot.slane %v2634_v19, 4  ;;  %2173 = vrot.lane.b32.xlu1 %v1970_v11, %s5341_s2  ;;  %v1969_v27 = vmul.f32 %v6154_v10, %v1903_v17 }
 0x5c1   :  { %v2639_v18 = vsel %vm289_vm5, %v2637_v48, %v2634_v19  ;;  %1989 = vrot.lane.b32.xlu0 %v1910_v28, %s5350_s23  ;;  %v2164_v1 = vcombine.high %v1969_v27, %v1969_v27 }
 0x5c2   :  { %v2636_v22 = vpop.permute.xlu1 %2635  ;;  %2645 = vst.msk [vmem:[#allocation2] sm:$0xff] %vm5442_vm7, %v2639_v18 }
 0x5c3   :  { %v2638_v15 = vrot.slane %v2636_v22, 4  ;;  %2165 = vrot.lane.b32.xlu1 %v1968_v30, %s5341_s2  ;;  %v1975_v30 = vld [vmem:[%s6713_s6 + $0x8] sm:$0xc] }
 0x5c4   :  { %v1977_v13 = vunpack.c.l.bf16 %v1975_v30 }
 0x5c5   :  { %2647 = vst.msk [vmem:[#allocation2 + $0x10] sm:$0xf] %vm302_vm6, %v2638_v15  ;;  %v2640_v55 = vsel %vm291_vm8, %v2637_v48, %v2638_v15 }
 0x5c6   :  { %v2379_v9 = vpop.permute.xlu1 %2378  ;;  %v2641_v56 = vsel %vm289_vm5, %v2640_v55, %v2636_v22  ;;  %v1976_v22 = vld [vmem:[%s6713_s6 + $0xc] sm:$0x3] }
 0x5c7   :  { %v6135_v41 = vrot.slane %v2379_v9, 4  ;;  %1995 = vrot.lane.b32.xlu1 %v1988_v6, %s5350_s23  ;;  %v2652_v57 = vmul.f32 %v2641_v56, %v5956_v32  ;;  %v3007_v19 = vmul.f32 %v2641_v56, %v5971_v5 }
 0x5c9   :  { %v2384_v62 = vsel %vm291_vm8, %v2380_v21, %v6135_v41  ;;  %v2391_v7 = vmul.f32 %v6135_v41, %v2333_v51  ;;  %v2648_v2 = vld [vmem:[#allocation2] sm:$0xff]  ;;  %v2835_v4 = vcombine.high %v2652_v57, %v2652_v57  ;;  %v3015_v28 = vcombine.high %v3007_v19, %v3007_v19 }
 0x5ca   :  { %v6141_v60 = vsel %vm2382_vm10, %v2384_v62, %v2379_v9  ;;  %v2663_v54 = vcombine.high %v2648_v2, %v2648_v2  ;;  %v3006_v16 = vmul.f32 %v2648_v2, %v5953_v25  ;;  %v2651_v49 = vmul.f32 %v2648_v2, %v5943_v39  ;;  %vm6747_vm10 = vmmov %vm6739_vm0 }
 0x5cb   :  { %v2390_v50 = vmul.f32 %v6141_v60, %v1903_v17  ;;  %2414 = vrot.lane.b32.xlu0 %v2391_v7, %s5346_s29  ;;  %v2664_v17 = vcombine.high %v2641_v56, %v2641_v56  ;;  %v1978_v51 = vunpack.c.l.bf16 %v1976_v22  ;;  %v1981_v9 = vrot.slane %v1977_v13, 4 }
 0x5cc   :  { %v2650_v38 = vld [vmem:[#allocation2 + $0x10] sm:$0xf]  ;;  %v3014_v53 = vcombine.high %v3006_v16, %v3006_v16  ;;  %v2834_v24 = vcombine.high %v2651_v49, %v2651_v49 }
 0x5cd   :  { %2410 = vrot.lane.b32.xlu1 %v2390_v50, %s5346_s29  ;;  %v2405_v47 = vcombine.high %v2390_v50, %v2390_v50  ;;  %v3005_v20 = vld [vmem:[#allocation2 + $0x10] sm:$0xf]  ;;  %v2653_v8 = vmul.f32 %v2650_v38, %v5939_v12  ;;  %v1982_v21 = vrot.slane %v1978_v51, 4  ;;  %v2656_v51 = vld [vmem:[%s6716_s9] sm:$0xc] }
 0x5ce   :  { %v3008_v11 = vmul.f32 %v3005_v20, %v5960_v46 }
 0x5cf   :  { %1991 = vrot.lane.b32.xlu0 %v1987_v42, %s5350_s23  ;;  %v1983_v61 = vsel %vm291_vm8, %v1981_v9, %v1982_v21  ;;  %v2657_v21 = vunpack.c.l.bf16 %v2656_v51 }
 0x5d1   :  { %2167 = vrot.lane.b32.xlu1 %v2163_v31, %s5341_s2 }
 0x5d3   :  { %2406 = vrot.lane.b32.xlu0 %v2389_v3, %s5346_s29 }
 0x5d5   :  { %2412 = vrot.lane.b32.xlu1 %v2405_v47, %s5346_s29  ;;  %v1971_v47 = vld [vmem:[%s6713_s6 + $0x4] sm:$0xc] }
 0x5d6   :  { %v1973_v55 = vunpack.c.l.bf16 %v1971_v47 }
 0x5d7   :  { %2169 = vrot.lane.b32.xlu0 %v1969_v27, %s5341_s2  ;;  %v1972_v27 = vld [vmem:[%s6713_s6 + $0x8] sm:$0x3] }
 0x5d9   :  { %2673 = vrot.lane.b32.xlu1 %v2650_v38, %s5350_s23 }
 0x5db   :  { %2408 = vrot.lane.b32.xlu0 %v2404_v40, %s5346_s29 }
 0x5dd   :  { %2665 = vrot.lane.b32.xlu1 %v2648_v2, %s5350_s23 }
 0x5df   :  { %2171 = vrot.lane.b32.xlu0 %v2164_v1, %s5341_s2  ;;  %v1974_v1 = vunpack.c.l.bf16 %v1972_v27  ;;  %v2659_v27 = vrot.slane %v2657_v21, 4 }
 0x5e1   :  { %2667 = vrot.lane.b32.xlu1 %v2663_v54, %s5350_s23 }
 0x5e3   :  { %2669 = vrot.lane.b32.xlu0 %v2641_v56, %s5350_s23 }
 0x5e5   :  { %2840 = vrot.lane.b32.xlu1 %v2652_v57, %s5343_s26  ;;  %v2157_v57 = vrot.slane %v1973_v55, 4 }
 0x5e7   :  { %2836 = vrot.lane.b32.xlu0 %v2651_v49, %s5343_s26 }
 0x5e9   :  { %3018 = vrot.lane.b32.xlu1 %v3014_v53, %s5344_s27  ;;  %v2392_v53 = vld [vmem:[%s6713_s6 + $0xc] sm:$0xc] }
 0x5eb   :  { %2671 = vrot.lane.b32.xlu0 %v2664_v17, %s5350_s23  ;;  %v2393_v17 = vld [vmem:[%s6713_s6 + $0x10] sm:$0x3] }
 0x5ed   :  { %2842 = vrot.lane.b32.xlu1 %v2835_v4, %s5343_s26 }
 0x5ef   :  { %2838 = vrot.lane.b32.xlu0 %v2834_v24, %s5343_s26 }
 0x5f1   :  { %3016 = vrot.lane.b32.xlu1 %v3006_v16, %s5344_s27  ;;  %v2158_v16 = vrot.slane %v1974_v1, 4 }
 0x5f3   :  { %2844 = vrot.lane.b32.xlu0 %v2653_v8, %s5343_s26  ;;  %v2159_v20 = vsel %vm291_vm8, %v2157_v57, %v2158_v16  ;;  %v2394_v8 = vunpack.c.l.bf16 %v2392_v53 }
 0x5f5   :  { %3024 = vrot.lane.b32.xlu1 %v3008_v11, %s5344_s27  ;;  %v2395_v11 = vunpack.c.l.bf16 %v2393_v17 }
 0x5f7   :  { %3020 = vrot.lane.b32.xlu0 %v3007_v19, %s5344_s27  ;;  %v2399_v13 = vrot.slane %v2395_v11, 4 }
 0x5fb   :  { %3022 = vrot.lane.b32.xlu0 %v3015_v28, %s5344_s27 }
 0x629   :  { %v1994_v48 = vpop.permute.xlu1 %1993 }
 0x62f   :  { %v1998_v15 = vpop.permute.xlu0 %1997 }
 0x631   :  { %v6185_v18 = vpop.permute.xlu1 %2173 }
 0x633   :  { %v1990_v62 = vpop.permute.xlu0 %1989 }
 0x635   :  { %v2166_v6 = vpop.permute.xlu1 %2165 }
 0x639   :  { %v1996_v7 = vpop.permute.xlu1 %1995 }
 0x63a   :  { %v2001_v50 = vsel %vm998_vm11, %v1994_v48, %v1996_v7  ;;  %v2002_v42 = vsel %vm998_vm11, %v1996_v7, %v1998_v15  ;;  %v2398_v15 = vrot.slane %v2394_v8, 4 }
 0x63b   :  { %5151 = vmatprep.subr.msk.mxu1 %vm291_vm8, %v2002_v42 }
 0x63c   :  { %5152 = vmatpush1.msk.msra.mxu1 %vm291_vm8, %v2001_v50  ;;  %v2400_v50 = vsel %vm291_vm8, %v2398_v15, %v2399_v13 }
 0x63d   :  { %v2415_v31 = vpop.permute.xlu0 %2414  ;;  %5153 = vmatmul.mubr.msk.f32.vlgmr.msra.gmra.mrb[10].mxu1 %vm6742_vm12, %v1983_v61  ;;  %vm6748_vm12 = vmmov %vm6739_vm0 }
 0x63e   :  { %2324 = vmatprep.mubr.f32.mxu1 %v6734_v63 }
 0x63f   :  { %v2411_v3 = vpop.permute.xlu1 %2410 }
 0x641   :  { %v1992_v38 = vpop.permute.xlu0 %1991 }
 0x642   :  { %v1999_v40 = vsel %vm998_vm11, %v1990_v62, %v1992_v38  ;;  %v2000_v2 = vsel %vm998_vm11, %v1992_v38, %v1994_v48 }
 0x643   :  { %5148 = vmatprep.subr.msk.mxu0 %vm291_vm8, %v2000_v2  ;;  %v2168_v54 = vpop.permute.xlu1 %2167 }
 0x644   :  { %5149 = vmatpush1.msk.msra.mxu0 %vm291_vm8, %v1999_v40  ;;  %v2175_v19 = vsel %vm437_vm13, %v2166_v6, %v2168_v54 }
 0x645   :  { %v2407_v56 = vpop.permute.xlu0 %2406  ;;  %5150 = vmatmul.mubr.msk.f32.vlgmr.msra.gmra.mrb[10].mxu0 %vm6743_vm14, %v1983_v61  ;;  %vm6749_vm14 = vmmov %vm6739_vm0 }
 0x646   :  { %2253 = vmatprep.mubr.f32.mxu0 %v6734_v63 }
 0x647   :  { %v2413_v49 = vpop.permute.xlu1 %2412 }
 0x648   :  { %v2419_v61 = vsel %vm857_vm1, %v2413_v49, %v2415_v31  ;;  %v2418_v38 = vsel %vm857_vm1, %v2411_v3, %v2413_v49 }
 0x649   :  { %v2170_v4 = vpop.permute.xlu0 %2169 }
 0x64a   :  { %v2176_v24 = vsel %vm437_vm13, %v2168_v54, %v2170_v4 }
 0x64b   :  { %5154 = vmatprep.subr.msk.mxu0 %vm291_vm8, %v2176_v24  ;;  %v2674_v28 = vpop.permute.xlu1 %2673 }
 0x64c   :  { %5155 = vmatpush1.msk.msra.mxu0 %vm291_vm8, %v2175_v19 }
 0x64d   :  { %v2409_v48 = vpop.permute.xlu0 %2408  ;;  %5156 = vmatmul.mubr.msk.f32.vlgmr.msra.gmra.mrb[10].mxu0 %vm6739_vm0, %v2159_v20 }
 0x64e   :  { %v2416_v30 = vsel %vm857_vm1, %v2407_v56, %v2409_v48  ;;  %v2417_v22 = vsel %vm857_vm1, %v2409_v48, %v2411_v3  ;;  %2494 = vmatprep.mubr.f32.mxu0 %v6734_v63  ;;  %v2654_v56 = vld [vmem:[%s6716_s9] sm:$0x3] }
 0x64f   :  { %5160 = vmatprep.subr.msk.mxu0 %vm291_vm8, %v2417_v22  ;;  %v2666_v6 = vpop.permute.xlu1 %2665  ;;  %v2655_v49 = vunpack.c.l.bf16 %v2654_v56 }
 0x650   :  { %5161 = vmatpush1.msk.msra.mxu0 %vm291_vm8, %v2416_v30 }
 0x651   :  { %v2172_v9 = vpop.permute.xlu0 %2171 }
 0x652   :  { %v2177_v62 = vsel %vm437_vm13, %v2170_v4, %v2172_v9  ;;  %v2178_v7 = vsel %vm437_vm13, %v2172_v9, %v6185_v18 }
 0x653   :  { %5157 = vmatprep.subr.msk.mxu1 %vm291_vm8, %v2178_v7  ;;  %v2668_v42 = vpop.permute.xlu1 %2667 }
 0x654   :  { %5158 = vmatpush1.msk.msra.mxu1 %vm291_vm8, %v2177_v62  ;;  %v2675_v40 = vsel %vm998_vm11, %v2666_v6, %v2668_v42 }
 0x655   :  { %v2670_v47 = vpop.permute.xlu0 %2669  ;;  %5159 = vmatmul.mubr.msk.f32.vlgmr.msra.gmra.mrb[10].mxu1 %vm6744_vm3, %v2159_v20  ;;  %5162 = vmatmul.mubr.msk.f32.vlgmr.msra.gmra.mrb[10].mxu0 %vm6745_vm2, %v2400_v50  ;;  %v3009_v20 = vld [vmem:[%s6716_s9 + $0x4] sm:$0x3]  ;;  %vm6750_vm3 = vmmov %vm6739_vm0 }
 0x656   :  { %5163 = vmatprep.subr.msk.mxu1 %vm291_vm8, %v2419_v61  ;;  %v2676_v18 = vsel %vm998_vm11, %v2668_v42, %v2670_v47  ;;  %2565 = vmatprep.mubr.f32.mxu1 %v6734_v63  ;;  %vm6751_vm2 = vmmov %vm6739_vm0 }
 0x657   :  { %5164 = vmatpush1.msk.msra.mxu1 %vm291_vm8, %v2418_v38  ;;  %5166 = vmatprep.subr.msk.mxu0 %vm291_vm8, %v2676_v18  ;;  %v2841_v31 = vpop.permute.xlu1 %2840 }
 0x658   :  { %5167 = vmatpush1.msk.msra.mxu0 %vm291_vm8, %v2675_v40  ;;  %2753 = vmatprep.mubr.f32.mxu0 %v6734_v63 }
 0x659   :  { %v2837_v2 = vpop.permute.xlu0 %2836  ;;  %5168 = vmatmul.mubr.msk.f32.vlgmr.msra.gmra.mrb[12].mxu0 %vm6746_vm4, %v2659_v27  ;;  %vm6752_vm4 = vmmov %vm6739_vm0 }
 0x65a   :  { %2925 = vmatprep.mubr.f32.mxu0 %v6734_v63 }
 0x65b   :  { %v3019_v3 = vpop.permute.xlu1 %3018 }
 0x65d   :  { %v2672_v55 = vpop.permute.xlu0 %2671  ;;  %5165 = vmatmul.mubr.msk.f32.vlgmr.msra.gmra.mrb[10].mxu1 %vm6747_vm10, %v2400_v50  ;;  %vm6753_vm10 = vmmov %vm6739_vm0 }
 0x65e   :  { %v2677_v1 = vsel %vm998_vm11, %v2670_v47, %v2672_v55  ;;  %v2678_v54 = vsel %vm998_vm11, %v2672_v55, %v2674_v28  ;;  %2824 = vmatprep.mubr.f32.mxu1 %v6734_v63  ;;  %v3010_v28 = vunpack.c.l.bf16 %v3009_v20 }
 0x65f   :  { %5169 = vmatprep.subr.msk.mxu1 %vm291_vm8, %v2678_v54  ;;  %v2843_v16 = vpop.permute.xlu1 %2842 }
 0x660   :  { %5170 = vmatpush1.msk.msra.mxu1 %vm291_vm8, %v2677_v1  ;;  %v2848_v8 = vsel %vm607_vm15, %v2841_v31, %v2843_v16 }
 0x661   :  { %v2839_v57 = vpop.permute.xlu0 %2838  ;;  %5171 = vmatmul.mubr.msk.f32.vlgmr.msra.gmra.mrb[12].mxu1 %vm6748_vm12, %v2659_v27  ;;  %vm6754_vm12 = vmmov %vm6739_vm0 }
 0x662   :  { %v2846_v53 = vsel %vm607_vm15, %v2837_v2, %v2839_v57  ;;  %v2847_v17 = vsel %vm607_vm15, %v2839_v57, %v2841_v31  ;;  %2996 = vmatprep.mubr.f32.mxu1 %v6734_v63 }
 0x663   :  { %5172 = vmatprep.subr.msk.mxu0 %vm291_vm8, %v2847_v17  ;;  %v3017_v11 = vpop.permute.xlu1 %3016 }
 0x664   :  { %5173 = vmatpush1.msk.msra.mxu0 %vm291_vm8, %v2846_v53  ;;  %v3026_v30 = vsel %vm687_vm9, %v3017_v11, %v3019_v3 }
 0x665   :  { %v2845_v4 = vpop.permute.xlu0 %2844  ;;  %5174 = vmatmul.mubr.msk.f32.vlgmr.msra.gmra.mrb[12].mxu0 %vm6749_vm14, %v2655_v49  ;;  %vm6755_vm14 = vmmov %vm6739_vm0 }
 0x666   :  { %v2849_v24 = vsel %vm607_vm15, %v2843_v16, %v2845_v4  ;;  %3105 = vmatprep.mubr.f32.mxu0 %v6734_v63 }
 0x667   :  { %5175 = vmatprep.subr.msk.mxu1 %vm291_vm8, %v2849_v24  ;;  %v3025_v22 = vpop.permute.xlu1 %3024 }
 0x668   :  { %5176 = vmatpush1.msk.msra.mxu1 %vm291_vm8, %v2848_v8 }
 0x669   :  { %v3021_v19 = vpop.permute.xlu0 %3020  ;;  %5177 = vmatmul.mubr.msk.f32.vlgmr.msra.gmra.mrb[12].mxu1 %vm6739_vm0, %v2655_v49 }
 0x66a   :  { %v3027_v48 = vsel %vm687_vm9, %v3019_v3, %v3021_v19  ;;  %3176 = vmatprep.mubr.f32.mxu1 %v6734_v63 }
 0x66b   :  { %5178 = vmatprep.subr.msk.mxu0 %vm291_vm8, %v3027_v48 }
 0x66c   :  { %5179 = vmatpush1.msk.msra.mxu0 %vm291_vm8, %v3026_v30 }
 0x66d   :  { %v3023_v15 = vpop.permute.xlu0 %3022  ;;  %5180 = vmatmul.mubr.msk.f32.vlgmr.msra.gmra.mrb[12].mxu0 %vm6750_vm3, %v3010_v28  ;;  %vm6756_vm3 = vmmov %vm6739_vm0 }
 0x66e   :  { %v3028_v13 = vsel %vm687_vm9, %v3021_v19, %v3023_v15  ;;  %v3029_v51 = vsel %vm687_vm9, %v3023_v15, %v3025_v22  ;;  %3371 = vmatprep.mubr.f32.mxu0 %v6734_v63 }
 0x66f   :  { %5181 = vmatprep.subr.msk.mxu1 %vm291_vm8, %v3029_v51 }
 0x670   :  { %5182 = vmatpush1.msk.msra.mxu1 %vm291_vm8, %v3028_v13 }
 0x671   :  { %5183 = vmatmul.mubr.msk.f32.vlgmr.msra.gmra.mrb[12].mxu1 %vm6751_vm2, %v3010_v28  ;;  %vm6757_vm2 = vmmov %vm6739_vm0 }
 0x672   :  { %3442 = vmatprep.mubr.f32.mxu1 %v6734_v63 }
 0x728   :  { %v6290_v6 = vpop.f32.mrb[10].mxu0 }
 0x729   :  { %v2583_v9 = vmul.f32 %v6290_v6, %v6290_v6  ;;  %v6294_v21 = vpop.f32.mrb[11].mxu0 }
 0x72a   :  { %v2578_v62 = vadd.f32 %v6294_v21, %v6290_v6  ;;  %v2584_v7 = vmul.f32 %v6294_v21, %v6294_v21 }
 0x72c   :  { %v2587_v50 = vadd.f32 %v2584_v7, %v2583_v9 }
 0x730   :  { %v6300_v42 = vpop.f32.mrb[10].mxu1 }
 0x731   :  { %v2579_v61 = vadd.f32 %v2578_v62, %v6300_v42  ;;  %v2585_v47 = vmul.f32 %v6300_v42, %v6300_v42  ;;  %v6305_v27 = vpop.f32.mrb[11].mxu1 }
 0x732   :  { %v2586_v38 = vmul.f32 %v6305_v27, %v6305_v27 }
 0x733   :  { %v2588_v18 = vadd.f32 %v2587_v50, %v2585_v47  ;;  %v6310_v40 = vadd.f32 %v2579_v61, %v6305_v27  ;;  %v3187_v47 = vld [vmem:[%s6717_s10] sm:$0xf] }
 0x735   :  { %v6312_v31 = vadd.f32 %v2588_v18, %v2586_v38 }
 0x740   :  { %v3107_v2 = vpop.f32.mrb[12].mxu0 }
 0x741   :  { %v3189_v3 = vsel %vm291_vm8, %v3107_v2, 0.0  ;;  %v3198_v55 = vmul.f32 %v3107_v2, %v3107_v2  ;;  %v3109_v1 = vpop.f32.mrb[13].mxu0 }
 0x742   :  { %v3190_v54 = vsel %vm291_vm8, %v3109_v1, 0.0  ;;  %v3199_v56 = vmul.f32 %v3109_v1, %v3109_v1 }
 0x743   :  { %v3202_v57 = vsel %vm291_vm8, %v3198_v55, 0.0  ;;  %v3191_v16 = vadd.f32 %v3190_v54, %v3189_v3  ;;  %v3188_v3 = vld [vmem:[%s6718_s11] sm:$0xf] }
 0x744   :  { %v3203_v49 = vsel %vm291_vm8, %v3199_v56, 0.0  ;;  %v3178_v53 = vpop.f32.mrb[12].mxu1 }
 0x745   :  { %v3204_v17 = vadd.f32 %v3203_v49, %v3202_v57  ;;  %v3192_v4 = vsel %vm291_vm8, %v3178_v53, 0.0  ;;  %v3200_v24 = vmul.f32 %v3178_v53, %v3178_v53  ;;  %v3180_v20 = vpop.f32.mrb[13].mxu1 }
 0x746   :  { %v3193_v8 = vadd.f32 %v3192_v4, %v3191_v16  ;;  %v3194_v11 = vsel %vm291_vm8, %v3180_v20, 0.0  ;;  %v3201_v19 = vmul.f32 %v3180_v20, %v3180_v20 }
 0x747   :  { %v3205_v28 = vsel %vm291_vm8, %v3200_v24, 0.0 }
 0x748   :  { %v3195_v48 = vadd.f32 %v3194_v11, %v3193_v8  ;;  %v3206_v30 = vadd.f32 %v3205_v28, %v3204_v17  ;;  %v3207_v22 = vsel %vm291_vm8, %v3201_v19, 0.0 }
 0x74a   :  { %3196 = vadd.xlane.f32.xlu0 %v3195_v48  ;;  %v3208_v15 = vadd.f32 %v3207_v22, %v3206_v30 }
 0x74c   :  { %3209 = vadd.xlane.f32.xlu1 %v3208_v15 }
 0x7d7   :  { %v3197_v13 = vpop.xlane.xlu0 %3196 }
 0x7d8   :  { %v3211_v51 = vmul.f32 0.001953125, %v3197_v13 }
 0x7d9   :  { %v3210_v9 = vpop.xlane.xlu1 %3209 }
 0x7da   :  { %v3213_v62 = vmul.f32 %v3211_v51, %v3211_v51  ;;  %v3212_v7 = vmul.f32 0.001953125, %v3210_v9 }
 0x7dc   :  { %v3214_v50 = vsub.f32 %v3212_v7, %v3213_v62 }
 0x7de   :  { %v3215_v61 = vadd.f32 1e-05, %v3214_v50 }
 0x7e0   :  { %5321 = vrsqrt.f32 %v3215_v61 }
 0x7ea   :  { %v5322_v38 = vpop.eup %5321 }
 0x7eb   :  { %v3217_v18 = vmul.f32 %v5322_v38, %v3187_v47 }
 0x7ed   :  { %3222 = vperm.xlu0 %5308, %v3217_v18   ;;  %v3218_v55 = vmul.f32 %v3217_v18, %v3211_v51 }
 0x7ef   :  { %v3219_v54 = vsub.f32 %v3188_v3, %v3218_v55 }
 0x7f1   :  { %3231 = vperm.xlu1 %5307, %v3219_v54  }
 0x86c   :  { %v3223_v56 = vpop.permute.xlu0 %3222 }
 0x86d   :  { %v3225_v57 = vmul.f32 %v3223_v56, %v3107_v2  ;;  %v3226_v16 = vmul.f32 %v3223_v56, %v3109_v1  ;;  %v3227_v49 = vmul.f32 %v3223_v56, %v3178_v53  ;;  %v3228_v17 = vmul.f32 %v3223_v56, %v3180_v20 }
 0x870   :  { %v3232_v4 = vpop.permute.xlu1 %3231 }
 0x871   :  { %v3234_v24 = vadd.f32 %v3232_v4, %v3225_v57  ;;  %v3235_v8 = vadd.f32 %v3232_v4, %v3226_v16  ;;  %v3236_v11 = vadd.f32 %v3232_v4, %v3227_v49  ;;  %v3237_v19 = vadd.f32 %v3232_v4, %v3228_v17 }
 0x873   :  { %v3238_v28 = vmax.f32 %v3234_v24, 0.0  ;;  %v3239_v48 = vmax.f32 %v3235_v8, 0.0  ;;  %v3240_v30 = vmax.f32 %v3236_v11, 0.0  ;;  %v3241_v22 = vmax.f32 %v3237_v19, 0.0 }
 0x875   :  { %v3242_v15 = vmin.f32 %v3238_v28, 6.0  ;;  %v3243_v13 = vmin.f32 %v3239_v48, 6.0  ;;  %v3244_v9 = vmin.f32 %v3240_v30, 6.0  ;;  %v3245_v51 = vmin.f32 %v3241_v22, 6.0 }
 0x877   :  { %v3251_v62 = vcombine.low %v3244_v9, %v3245_v51  ;;  %v3250_v7 = vcombine.low %v3242_v15, %v3243_v13  ;;  %v3275_v15 = vld [vmem:[%s6716_s9 + $0x8] sm:$0x3] }
 0x879   :  { %3254 = vrot.lane.b32.xlu1 %v3251_v62, %s5340_s0  ;;  %3252 = vrot.lane.b32.xlu0 %v3250_v7, %s5340_s0  ;;  %v3276_v7 = vunpack.c.l.bf16 %v3275_v15 }
 0x8eb   :  { %v3255_v2 = vpop.permute.xlu1 %3254  ;;  %v3253_v1 = vpop.permute.xlu0 %3252 }
 0x8ec   :  { %v3257_v53 = vrot.slane %v3255_v2, 4  ;;  %v3256_v20 = vrot.slane %v3253_v1, 4 }
 0x8ee   :  { %3266 = vst.msk [vmem:[#allocation2 + $0x10] sm:$0xf] %vm302_vm6, %v3257_v53  ;;  %v3258_v50 = vsel %vm289_vm5, %v3256_v20, %v3253_v1  ;;  %v3259_v61 = vsel %vm291_vm8, %v3256_v20, %v3257_v53  ;;  %v3273_v53 = vld [vmem:[%s6716_s9 + $0x4] sm:$0xc] }
 0x8ef   :  { %v3260_v47 = vsel %vm289_vm5, %v3259_v61, %v3255_v2  ;;  %3264 = vst.msk [vmem:[#allocation2] sm:$0xff] %vm5442_vm7, %v3258_v50  ;;  %v3274_v61 = vunpack.c.l.bf16 %v3273_v53 }
 0x8f0   :  { %3286 = vrot.lane.b32.xlu1 %v3260_v47, %s5350_s23  ;;  %v3281_v55 = vcombine.high %v3260_v47, %v3260_v47  ;;  %v3271_v57 = vmul.f32 %v3260_v47, %v6154_v10  ;;  %v3626_v4 = vmul.f32 %v3260_v47, %v6141_v60 }
 0x8f2   :  { %v3455_v24 = vcombine.high %v3271_v57, %v3271_v57  ;;  %v3636_v8 = vcombine.high %v3626_v4, %v3626_v4 }
 0x8f5   :  { %v3269_v38 = vld [vmem:[#allocation2 + $0x10] sm:$0xf] }
 0x8f6   :  { %3290 = vrot.lane.b32.xlu0 %v3269_v38, %s5350_s23  ;;  %v3267_v18 = vld [vmem:[#allocation2] sm:$0xff]  ;;  %v3272_v49 = vmul.f32 %v3269_v38, %v6120_v35  ;;  %v3624_v11 = vld [vmem:[#allocation2 + $0x10] sm:$0xf] }
 0x8f7   :  { %v3270_v3 = vmul.f32 %v3267_v18, %v6125_v43  ;;  %v3280_v54 = vcombine.high %v3267_v18, %v3267_v18  ;;  %v3625_v16 = vmul.f32 %v3267_v18, %v6146_v29  ;;  %v3627_v19 = vmul.f32 %v3624_v11, %v6135_v41 }
 0x8f9   :  { %3456 = vrot.lane.b32.xlu1 %v3270_v3, %s5341_s2  ;;  %v3454_v56 = vcombine.high %v3270_v3, %v3270_v3  ;;  %v3635_v17 = vcombine.high %v3625_v16, %v3625_v16 }
 0x8fa   :  { %3282 = vrot.lane.b32.xlu0 %v3267_v18, %s5350_s23 }
 0x8fd   :  { %3288 = vrot.lane.b32.xlu1 %v3281_v55, %s5350_s23  ;;  %v3450_v55 = vrot.slane %v3274_v61, 4 }
 0x8fe   :  { %3284 = vrot.lane.b32.xlu0 %v3280_v54, %s5350_s23  ;;  %v3628_v54 = vld [vmem:[%s6716_s9 + $0x8] sm:$0xc] }
 0x901   :  { %3458 = vrot.lane.b32.xlu1 %v3454_v56, %s5341_s2 }
 0x902   :  { %3460 = vrot.lane.b32.xlu0 %v3271_v57, %s5341_s2 }
 0x905   :  { %3464 = vrot.lane.b32.xlu1 %v3272_v49, %s5341_s2  ;;  %v3629_v49 = vunpack.c.l.bf16 %v3628_v54 }
 0x906   :  { %3639 = vrot.lane.b32.xlu0 %v3635_v17, %s5346_s29 }
 0x909   :  { %3641 = vrot.lane.b32.xlu1 %v3626_v4, %s5346_s29 }
 0x90a   :  { %3462 = vrot.lane.b32.xlu0 %v3455_v24, %s5341_s2 }
 0x90d   :  { %3643 = vrot.lane.b32.xlu1 %v3636_v8, %s5346_s29  ;;  %v3631_v8 = vrot.slane %v3629_v49, 4 }
 0x90e   :  { %3637 = vrot.lane.b32.xlu0 %v3625_v16, %s5346_s29 }
 0x912   :  { %3645 = vrot.lane.b32.xlu0 %v3627_v19, %s5346_s29 }
 0x962   :  { %v3287_v28 = vpop.permute.xlu1 %3286 }
 0x968   :  { %v3291_v48 = vpop.permute.xlu0 %3290 }
 0x96b   :  { %v3457_v30 = vpop.permute.xlu1 %3456 }
 0x96c   :  { %v3283_v22 = vpop.permute.xlu0 %3282 }
 0x96f   :  { %v3289_v13 = vpop.permute.xlu1 %3288 }
 0x970   :  { %v3285_v9 = vpop.permute.xlu0 %3284  ;;  %v3294_v51 = vsel %vm998_vm11, %v3287_v28, %v3289_v13  ;;  %v3295_v62 = vsel %vm998_vm11, %v3289_v13, %v3291_v48 }
 0x971   :  { %v3292_v2 = vsel %vm998_vm11, %v3283_v22, %v3285_v9  ;;  %v3293_v1 = vsel %vm998_vm11, %v3285_v9, %v3287_v28  ;;  %5187 = vmatprep.subr.msk.mxu1 %vm291_vm8, %v3295_v62 }
 0x972   :  { %5184 = vmatprep.subr.msk.mxu0 %vm291_vm8, %v3293_v1  ;;  %5188 = vmatpush1.msk.msra.mxu1 %vm291_vm8, %v3294_v51 }
 0x973   :  { %5185 = vmatpush1.msk.msra.mxu0 %vm291_vm8, %v3292_v2  ;;  %v3459_v20 = vpop.permute.xlu1 %3458  ;;  %5189 = vmatmul.mubr.msk.f32.vlgmr.msra.gmra.mrb[14].mxu1 %vm6752_vm4, %v3276_v7  ;;  %vm6758_vm4 = vmmov %vm6739_vm0 }
 0x974   :  { %5186 = vmatmul.mubr.msk.f32.vlgmr.msra.gmra.mrb[14].mxu0 %vm6753_vm10, %v3276_v7  ;;  %v3461_v50 = vpop.permute.xlu0 %3460  ;;  %3615 = vmatprep.mubr.f32.mxu1 %v6734_v63  ;;  %v3466_v38 = vsel %vm437_vm13, %v3457_v30, %v3459_v20  ;;  %vm6759_vm10 = vmmov %vm6739_vm0 }
 0x975   :  { %v3467_v47 = vsel %vm437_vm13, %v3459_v20, %v3461_v50  ;;  %3544 = vmatprep.mubr.f32.mxu0 %v6734_v63 }
 0x976   :  { %5190 = vmatprep.subr.msk.mxu0 %vm291_vm8, %v3467_v47 }
 0x977   :  { %5191 = vmatpush1.msk.msra.mxu0 %vm291_vm8, %v3466_v38  ;;  %v3465_v18 = vpop.permute.xlu1 %3464 }
 0x978   :  { %v3640_v3 = vpop.permute.xlu0 %3639 }
 0x97b   :  { %v3642_v56 = vpop.permute.xlu1 %3641 }
 0x97c   :  { %5192 = vmatmul.mubr.msk.f32.vlgmr.msra.gmra.mrb[14].mxu0 %vm6754_vm12, %v3450_v55  ;;  %v3463_v57 = vpop.permute.xlu0 %3462  ;;  %v3648_v16 = vsel %vm857_vm1, %v3640_v3, %v3642_v56  ;;  %vm6760_vm12 = vmmov %vm6739_vm0 }
 0x97d   :  { %v3468_v17 = vsel %vm437_vm13, %v3461_v50, %v3463_v57  ;;  %v3469_v4 = vsel %vm437_vm13, %v3463_v57, %v3465_v18  ;;  %5196 = vmatprep.subr.msk.mxu0 %vm291_vm8, %v3648_v16  ;;  %3725 = vmatprep.mubr.f32.mxu0 %v6734_v63 }
 0x97e   :  { %5193 = vmatprep.subr.msk.mxu1 %vm291_vm8, %v3469_v4 }
 0x97f   :  { %5194 = vmatpush1.msk.msra.mxu1 %vm291_vm8, %v3468_v17  ;;  %v3644_v19 = vpop.permute.xlu1 %3643 }
 0x980   :  { %5195 = vmatmul.mubr.msk.f32.vlgmr.msra.gmra.mrb[14].mxu1 %vm6755_vm14, %v3450_v55  ;;  %v3638_v24 = vpop.permute.xlu0 %3637  ;;  %v3649_v30 = vsel %vm857_vm1, %v3642_v56, %v3644_v19  ;;  %vm6762_vm14 = vmmov %vm6739_vm0 }
 0x981   :  { %v3647_v11 = vsel %vm857_vm1, %v3638_v24, %v3640_v3  ;;  %3796 = vmatprep.mubr.f32.mxu1 %v6734_v63 }
 0x982   :  { %5197 = vmatpush1.msk.msra.mxu0 %vm291_vm8, %v3647_v11 }
 0x984   :  { %5198 = vmatmul.mubr.msk.f32.vlgmr.msra.gmra.mrb[14].mxu0 %vm6739_vm0, %v3631_v8  ;;  %v3646_v28 = vpop.permute.xlu0 %3645 }
 0x985   :  { %v3650_v48 = vsel %vm857_vm1, %v3644_v19, %v3646_v28  ;;  %3992 = vmatprep.mubr.f32.mxu0 %v6734_v63  ;;  %v3807_v28 = vld [vmem:[%s6717_s10 + $0x4] sm:$0xf] }
 0x986   :  { %5199 = vmatprep.subr.msk.mxu1 %vm291_vm8, %v3650_v48 }
 0x987   :  { %5200 = vmatpush1.msk.msra.mxu1 %vm291_vm8, %v3649_v30 }
 0x988   :  { %5201 = vmatmul.mubr.msk.f32.vlgmr.msra.gmra.mrb[14].mxu1 %vm6756_vm3, %v3631_v8 }
 0x989   :  { %4063 = vmatprep.mubr.f32.mxu1 %v6734_v63 }
 0xa57   :  { %v3727_v22 = vpop.f32.mrb[14].mxu0 }
 0xa58   :  { %v3809_v15 = vsel %vm291_vm8, %v3727_v22, 0.0  ;;  %v3818_v13 = vmul.f32 %v3727_v22, %v3727_v22  ;;  %v3729_v9 = vpop.f32.mrb[15].mxu0 }
 0xa59   :  { %v3810_v51 = vsel %vm291_vm8, %v3729_v9, 0.0  ;;  %v3819_v62 = vmul.f32 %v3729_v9, %v3729_v9 }
 0xa5a   :  { %v3822_v7 = vsel %vm291_vm8, %v3818_v13, 0.0  ;;  %v3811_v2 = vadd.f32 %v3810_v51, %v3809_v15  ;;  %v3808_v15 = vld [vmem:[%s6718_s11 + $0x4] sm:$0xf] }
 0xa5b   :  { %v3823_v1 = vsel %vm291_vm8, %v3819_v62, 0.0  ;;  %v3798_v53 = vpop.f32.mrb[14].mxu1 }
 0xa5c   :  { %v3824_v20 = vadd.f32 %v3823_v1, %v3822_v7  ;;  %v3812_v50 = vsel %vm291_vm8, %v3798_v53, 0.0  ;;  %v3820_v61 = vmul.f32 %v3798_v53, %v3798_v53  ;;  %v3800_v47 = vpop.f32.mrb[15].mxu1 }
 0xa5d   :  { %v3813_v38 = vadd.f32 %v3812_v50, %v3811_v2  ;;  %v3814_v18 = vsel %vm291_vm8, %v3800_v47, 0.0  ;;  %v3821_v3 = vmul.f32 %v3800_v47, %v3800_v47 }
 0xa5e   :  { %v3825_v55 = vsel %vm291_vm8, %v3820_v61, 0.0 }
 0xa5f   :  { %v3815_v54 = vadd.f32 %v3814_v18, %v3813_v38  ;;  %v3826_v56 = vadd.f32 %v3825_v55, %v3824_v20  ;;  %v3827_v57 = vsel %vm291_vm8, %v3821_v3, 0.0 }
 0xa61   :  { %3816 = vadd.xlane.f32.xlu1 %v3815_v54  ;;  %v3828_v16 = vadd.f32 %v3827_v57, %v3826_v56 }
 0xa63   :  { %3829 = vadd.xlane.f32.xlu0 %v3828_v16 }
 0xaee   :  { %v3817_v49 = vpop.xlane.xlu1 %3816 }
 0xaef   :  { %v3831_v17 = vmul.f32 0.001953125, %v3817_v49 }
 0xaf0   :  { %v3830_v4 = vpop.xlane.xlu0 %3829 }
 0xaf1   :  { %v3833_v24 = vmul.f32 %v3831_v17, %v3831_v17  ;;  %v3832_v8 = vmul.f32 0.001953125, %v3830_v4 }
 0xaf3   :  { %v3834_v11 = vsub.f32 %v3832_v8, %v3833_v24 }
 0xaf5   :  { %v3835_v19 = vadd.f32 1e-05, %v3834_v11 }
 0xaf7   :  { %5323 = vrsqrt.f32 %v3835_v19 }
 0xb01   :  { %v5324_v48 = vpop.eup %5323 }
 0xb02   :  { %v3837_v30 = vmul.f32 %v5324_v48, %v3807_v28 }
 0xb04   :  { %3842 = vperm.xlu0 %5308, %v3837_v30   ;;  %v3838_v13 = vmul.f32 %v3837_v30, %v3831_v17 }
 0xb06   :  { %v3839_v51 = vsub.f32 %v3808_v15, %v3838_v13 }
 0xb08   :  { %3851 = vperm.xlu1 %5307, %v3839_v51  }
 0xb83   :  { %v3843_v62 = vpop.permute.xlu0 %3842 }
 0xb84   :  { %v3845_v7 = vmul.f32 %v3843_v62, %v3727_v22  ;;  %v3846_v2 = vmul.f32 %v3843_v62, %v3729_v9  ;;  %v3847_v1 = vmul.f32 %v3843_v62, %v3798_v53  ;;  %v3848_v20 = vmul.f32 %v3843_v62, %v3800_v47 }
 0xb87   :  { %v3852_v50 = vpop.permute.xlu1 %3851 }
 0xb88   :  { %v3854_v61 = vadd.f32 %v3852_v50, %v3845_v7  ;;  %v3855_v38 = vadd.f32 %v3852_v50, %v3846_v2  ;;  %v3856_v18 = vadd.f32 %v3852_v50, %v3847_v1  ;;  %v3857_v3 = vadd.f32 %v3852_v50, %v3848_v20 }
 0xb8a   :  { %v3858_v55 = vmax.f32 %v3854_v61, 0.0  ;;  %v3859_v54 = vmax.f32 %v3855_v38, 0.0  ;;  %v3860_v56 = vmax.f32 %v3856_v18, 0.0  ;;  %v3861_v57 = vmax.f32 %v3857_v3, 0.0 }
 0xb8c   :  { %v3862_v16 = vmin.f32 %v3858_v55, 6.0  ;;  %v3863_v49 = vmin.f32 %v3859_v54, 6.0  ;;  %v3864_v4 = vmin.f32 %v3860_v56, 6.0  ;;  %v3865_v17 = vmin.f32 %v3861_v57, 6.0 }
 0xb8e   :  { %v3871_v24 = vcombine.low %v3864_v4, %v3865_v17  ;;  %v3870_v8 = vcombine.low %v3862_v16, %v3863_v49 }
 0xb90   :  { %3874 = vrot.lane.b32.xlu0 %v3871_v24, %s5340_s0  ;;  %3872 = vrot.lane.b32.xlu1 %v3870_v8, %s5340_s0 }
 0xc02   :  { %v3875_v22 = vpop.permute.xlu0 %3874  ;;  %v3873_v9 = vpop.permute.xlu1 %3872 }
 0xc03   :  { %v3877_v53 = vrot.slane %v3875_v22, 4  ;;  %v3876_v47 = vrot.slane %v3873_v9, 4 }
 0xc05   :  { %3886 = vst.msk [vmem:[#allocation2 + $0x10] sm:$0xf] %vm302_vm6, %v3877_v53  ;;  %v3878_v11 = vsel %vm289_vm5, %v3876_v47, %v3873_v9  ;;  %v3879_v19 = vsel %vm291_vm8, %v3876_v47, %v3877_v53 }
 0xc06   :  { %v3880_v28 = vsel %vm289_vm5, %v3879_v19, %v3875_v22  ;;  %3884 = vst.msk [vmem:[#allocation2] sm:$0xff] %vm5442_vm7, %v3878_v11  ;;  %v3893_v22 = vld [vmem:[%s6716_s9 + $0xc] sm:$0x3] }
 0xc07   :  { %3908 = vrot.lane.b32.xlu0 %v3880_v28, %s5350_s23  ;;  %v3903_v13 = vcombine.high %v3880_v28, %v3880_v28  ;;  %v3891_v7 = vmul.f32 %v3880_v28, %v5956_v32  ;;  %v4246_v20 = vmul.f32 %v3880_v28, %v5971_v5  ;;  %v3895_v5 = vld [vmem:[%s6716_s9 + $0xc] sm:$0xc]  ;;  %v3894_v11 = vunpack.c.l.bf16 %v3893_v22 }
 0xc08   :  { %v3896_v55 = vunpack.c.l.bf16 %v3895_v5 }
 0xc09   :  { %v4074_v50 = vcombine.high %v3891_v7, %v3891_v7  ;;  %v4254_v32 = vcombine.high %v4246_v20, %v4246_v20 }
 0xc0a   :  { %v3898_v49 = vrot.slane %v3896_v55, 4 }
 0xc0c   :  { %v3889_v48 = vld [vmem:[#allocation2 + $0x10] sm:$0xf] }
 0xc0d   :  { %3912 = vrot.lane.b32.xlu1 %v3889_v48, %s5350_s23  ;;  %v3887_v30 = vld [vmem:[#allocation2] sm:$0xff] }
 0xc0e   :  { %v3890_v15 = vmul.f32 %v3887_v30, %v5943_v39  ;;  %v3902_v51 = vcombine.high %v3887_v30, %v3887_v30  ;;  %v4245_v2 = vmul.f32 %v3887_v30, %v5953_v25  ;;  %v3892_v39 = vmul.f32 %v3889_v48, %v5939_v12  ;;  %v4244_v25 = vld [vmem:[#allocation2 + $0x10] sm:$0xf] }
 0xc0f   :  { %v4247_v12 = vmul.f32 %v4244_v25, %v5960_v46 }
 0xc10   :  { %4075 = vrot.lane.b32.xlu0 %v3890_v15, %s5343_s26  ;;  %v4073_v62 = vcombine.high %v3890_v15, %v3890_v15  ;;  %v4253_v1 = vcombine.high %v4245_v2, %v4245_v2 }
 0xc11   :  { %3904 = vrot.lane.b32.xlu1 %v3887_v30, %s5350_s23 }
 0xc14   :  { %3910 = vrot.lane.b32.xlu0 %v3903_v13, %s5350_s23  ;;  %v4248_v13 = vld [vmem:[%s6716_s9 + $0x10] sm:$0x3] }
 0xc15   :  { %3906 = vrot.lane.b32.xlu1 %v3902_v51, %s5350_s23 }
 0xc18   :  { %4077 = vrot.lane.b32.xlu0 %v4073_v62, %s5343_s26  ;;  %v4249_v62 = vunpack.c.l.bf16 %v4248_v13 }
 0xc19   :  { %4079 = vrot.lane.b32.xlu1 %v3891_v7, %s5343_s26 }
 0xc1c   :  { %4083 = vrot.lane.b32.xlu0 %v3892_v39, %s5343_s26 }
 0xc1d   :  { %4257 = vrot.lane.b32.xlu1 %v4253_v1, %s5344_s27 }
 0xc20   :  { %4259 = vrot.lane.b32.xlu0 %v4246_v20, %s5344_s27 }
 0xc21   :  { %4081 = vrot.lane.b32.xlu1 %v4074_v50, %s5343_s26 }
 0xc24   :  { %4261 = vrot.lane.b32.xlu0 %v4254_v32, %s5344_s27 }
 0xc25   :  { %4255 = vrot.lane.b32.xlu1 %v4245_v2, %s5344_s27 }
 0xc29   :  { %4263 = vrot.lane.b32.xlu1 %v4247_v12, %s5344_s27 }
 0xc79   :  { %v3909_v61 = vpop.permute.xlu0 %3908 }
 0xc7f   :  { %v3913_v38 = vpop.permute.xlu1 %3912 }
 0xc82   :  { %v4076_v18 = vpop.permute.xlu0 %4075 }
 0xc83   :  { %v3905_v3 = vpop.permute.xlu1 %3904 }
 0xc86   :  { %v3911_v54 = vpop.permute.xlu0 %3910 }
 0xc87   :  { %v3907_v56 = vpop.permute.xlu1 %3906  ;;  %v3916_v57 = vsel %vm998_vm11, %v3909_v61, %v3911_v54  ;;  %v3917_v16 = vsel %vm998_vm11, %v3911_v54, %v3913_v38 }
 0xc88   :  { %v3914_v46 = vsel %vm998_vm11, %v3905_v3, %v3907_v56  ;;  %v3915_v4 = vsel %vm998_vm11, %v3907_v56, %v3909_v61  ;;  %5205 = vmatprep.subr.msk.mxu1 %vm291_vm8, %v3917_v16 }
 0xc89   :  { %5202 = vmatprep.subr.msk.mxu0 %vm291_vm8, %v3915_v4  ;;  %5206 = vmatpush1.msk.msra.mxu1 %vm291_vm8, %v3916_v57 }
 0xc8a   :  { %5203 = vmatpush1.msk.msra.mxu0 %vm291_vm8, %v3914_v46  ;;  %v4078_v17 = vpop.permute.xlu0 %4077  ;;  %5207 = vmatmul.mubr.msk.f32.vlgmr.msra.gmra.mrb[16].mxu1 %vm6757_vm2, %v3898_v49 }
 0xc8b   :  { %5204 = vmatmul.mubr.msk.f32.vlgmr.msra.gmra.mrb[16].mxu0 %vm6758_vm4, %v3898_v49  ;;  %v4080_v24 = vpop.permute.xlu1 %4079  ;;  %4235 = vmatprep.mubr.f32.mxu1 %v6734_v63  ;;  %v4085_v9 = vsel %vm607_vm15, %v4076_v18, %v4078_v17 }
 0xc8c   :  { %v4086_v8 = vsel %vm607_vm15, %v4078_v17, %v4080_v24  ;;  %4164 = vmatprep.mubr.f32.mxu0 %v6734_v63 }
 0xc8d   :  { %5208 = vmatprep.subr.msk.mxu0 %vm291_vm8, %v4086_v8 }
 0xc8e   :  { %5209 = vmatpush1.msk.msra.mxu0 %vm291_vm8, %v4085_v9  ;;  %v4084_v53 = vpop.permute.xlu0 %4083 }
 0xc8f   :  { %v4258_v47 = vpop.permute.xlu1 %4257 }
 0xc92   :  { %v4260_v19 = vpop.permute.xlu0 %4259 }
 0xc93   :  { %5210 = vmatmul.mubr.msk.f32.vlgmr.msra.gmra.mrb[16].mxu0 %vm6759_vm10, %v3894_v11  ;;  %v4082_v28 = vpop.permute.xlu1 %4081  ;;  %v4266_v48 = vsel %vm687_vm9, %v4258_v47, %v4260_v19 }
 0xc94   :  { %v4087_v30 = vsel %vm607_vm15, %v4080_v24, %v4082_v28  ;;  %v4088_v15 = vsel %vm607_vm15, %v4082_v28, %v4084_v53  ;;  %5214 = vmatprep.subr.msk.mxu0 %vm291_vm8, %v4266_v48  ;;  %4344 = vmatprep.mubr.f32.mxu0 %v6734_v63  ;;  %vm6761_vm15 = vmmov %vm6739_vm0 }
 0xc95   :  { %5211 = vmatprep.subr.msk.mxu1 %vm291_vm8, %v4088_v15  ;;  %v4426_v15 = vld [vmem:[%s6717_s10 + $0x8] sm:$0xf] }
 0xc96   :  { %5212 = vmatpush1.msk.msra.mxu1 %vm291_vm8, %v4087_v30  ;;  %v4262_v2 = vpop.permute.xlu0 %4261 }
 0xc97   :  { %5213 = vmatmul.mubr.msk.f32.vlgmr.msra.gmra.mrb[16].mxu1 %vm6760_vm12, %v3894_v11  ;;  %v4256_v51 = vpop.permute.xlu1 %4255  ;;  %v4267_v20 = vsel %vm687_vm9, %v4260_v19, %v4262_v2 }
 0xc98   :  { %v4265_v7 = vsel %vm687_vm9, %v4256_v51, %v4258_v47  ;;  %4415 = vmatprep.mubr.f32.mxu1 %v6734_v63 }
 0xc99   :  { %5215 = vmatpush1.msk.msra.mxu0 %vm291_vm8, %v4265_v7 }
 0xc9b   :  { %5216 = vmatmul.mubr.msk.f32.vlgmr.msra.gmra.mrb[16].mxu0 %vm6761_vm15, %v4249_v62  ;;  %v4264_v39 = vpop.permute.xlu1 %4263 }
 0xc9c   :  { %v4268_v1 = vsel %vm687_vm9, %v4262_v2, %v4264_v39  ;;  %4618 = vmatprep.mubr.f32.mxu0 %v6734_v63  ;;  %vm6766_vm9 = vmmov %vm6739_vm0 }
 0xc9d   :  { %5217 = vmatprep.subr.msk.mxu1 %vm291_vm8, %v4268_v1 }
 0xc9e   :  { %5218 = vmatpush1.msk.msra.mxu1 %vm291_vm8, %v4267_v20 }
 0xc9f   :  { %5219 = vmatmul.mubr.msk.f32.vlgmr.msra.gmra.mrb[16].mxu1 %vm6762_vm14, %v4249_v62  ;;  %v4427_v62 = vld [vmem:[%s6718_s11 + $0x8] sm:$0xf] }
 0xca0   :  { %4689 = vmatprep.mubr.f32.mxu1 %v6734_v63 }
 0xd6e   :  { %v4346_v50 = vpop.f32.mrb[16].mxu0 }
 0xd6f   :  { %v4428_v32 = vsel %vm291_vm8, %v4346_v50, 0.0  ;;  %v4437_v25 = vmul.f32 %v4346_v50, %v4346_v50  ;;  %v4348_v12 = vpop.f32.mrb[17].mxu0 }
 0xd70   :  { %v4429_v61 = vsel %vm291_vm8, %v4348_v12, 0.0  ;;  %v4438_v38 = vmul.f32 %v4348_v12, %v4348_v12 }
 0xd71   :  { %v4441_v5 = vsel %vm291_vm8, %v4437_v25, 0.0  ;;  %v4430_v18 = vadd.f32 %v4429_v61, %v4428_v32 }
 0xd72   :  { %v4442_v3 = vsel %vm291_vm8, %v4438_v38, 0.0  ;;  %v4417_v55 = vpop.f32.mrb[16].mxu1 }
 0xd73   :  { %v4443_v54 = vadd.f32 %v4442_v3, %v4441_v5  ;;  %v4431_v56 = vsel %vm291_vm8, %v4417_v55, 0.0  ;;  %v4439_v57 = vmul.f32 %v4417_v55, %v4417_v55  ;;  %v4419_v16 = vpop.f32.mrb[17].mxu1 }
 0xd74   :  { %v4432_v49 = vadd.f32 %v4431_v56, %v4430_v18  ;;  %v4433_v46 = vsel %vm291_vm8, %v4419_v16, 0.0  ;;  %v4440_v4 = vmul.f32 %v4419_v16, %v4419_v16 }
 0xd75   :  { %v4444_v17 = vsel %vm291_vm8, %v4439_v57, 0.0 }
 0xd76   :  { %v4434_v24 = vadd.f32 %v4433_v46, %v4432_v49  ;;  %v4445_v8 = vadd.f32 %v4444_v17, %v4443_v54  ;;  %v4446_v22 = vsel %vm291_vm8, %v4440_v4, 0.0 }
 0xd78   :  { %4435 = vadd.xlane.f32.xlu0 %v4434_v24  ;;  %v4447_v9 = vadd.f32 %v4446_v22, %v4445_v8 }
 0xd7a   :  { %4448 = vadd.xlane.f32.xlu1 %v4447_v9 }
 0xe05   :  { %v4436_v53 = vpop.xlane.xlu0 %4435 }
 0xe06   :  { %v4450_v47 = vmul.f32 0.001953125, %v4436_v53 }
 0xe07   :  { %v4449_v11 = vpop.xlane.xlu1 %4448 }
 0xe08   :  { %v4452_v19 = vmul.f32 %v4450_v47, %v4450_v47  ;;  %v4451_v28 = vmul.f32 0.001953125, %v4449_v11 }
 0xe0a   :  { %v4453_v48 = vsub.f32 %v4451_v28, %v4452_v19 }
 0xe0c   :  { %v4454_v30 = vadd.f32 1e-05, %v4453_v48 }
 0xe0e   :  { %5325 = vrsqrt.f32 %v4454_v30 }
 0xe18   :  { %v5326_v13 = vpop.eup %5325 }
 0xe19   :  { %v4456_v51 = vmul.f32 %v5326_v13, %v4426_v15 }
 0xe1b   :  { %4461 = vperm.xlu0 %5308, %v4456_v51   ;;  %v4457_v7 = vmul.f32 %v4456_v51, %v4450_v47 }
 0xe1d   :  { %v4458_v2 = vsub.f32 %v4427_v62, %v4457_v7 }
 0xe1f   :  { %4470 = vperm.xlu1 %5307, %v4458_v2  }
 0xe9a   :  { %v4462_v39 = vpop.permute.xlu0 %4461 }
 0xe9b   :  { %v4464_v1 = vmul.f32 %v4462_v39, %v4346_v50  ;;  %v4465_v20 = vmul.f32 %v4462_v39, %v4348_v12  ;;  %v4466_v32 = vmul.f32 %v4462_v39, %v4417_v55  ;;  %v4467_v25 = vmul.f32 %v4462_v39, %v4419_v16 }
 0xe9e   :  { %v4471_v61 = vpop.permute.xlu1 %4470 }
 0xe9f   :  { %v4473_v38 = vadd.f32 %v4471_v61, %v4464_v1  ;;  %v4474_v5 = vadd.f32 %v4471_v61, %v4465_v20  ;;  %v4475_v18 = vadd.f32 %v4471_v61, %v4466_v32  ;;  %v4476_v3 = vadd.f32 %v4471_v61, %v4467_v25 }
 0xea1   :  { %v4477_v54 = vmax.f32 %v4473_v38, 0.0  ;;  %v4478_v56 = vmax.f32 %v4474_v5, 0.0  ;;  %v4479_v57 = vmax.f32 %v4475_v18, 0.0  ;;  %v4480_v49 = vmax.f32 %v4476_v3, 0.0 }
 0xea3   :  { %v4481_v46 = vmin.f32 %v4477_v54, 6.0  ;;  %v4482_v4 = vmin.f32 %v4478_v56, 6.0  ;;  %v4483_v17 = vmin.f32 %v4479_v57, 6.0  ;;  %v4484_v24 = vmin.f32 %v4480_v49, 6.0 }
 0xea5   :  { %v4490_v8 = vcombine.low %v4483_v17, %v4484_v24  ;;  %v4489_v22 = vcombine.low %v4481_v46, %v4482_v4 }
 0xea7   :  { %4493 = vrot.lane.b32.xlu1 %v4490_v8, %s5340_s0  ;;  %4491 = vrot.lane.b32.xlu0 %v4489_v22, %s5340_s0  ;;  %v4878_v8 = vld [vmem:[%s6716_s9 + $0x18] sm:$0xc]  ;;  %v4879_v22 = vld [vmem:[%s6716_s9 + $0x1c] sm:$0x3] }
 0xf19   :  { %v4494_v50 = vpop.permute.xlu1 %4493  ;;  %v4492_v12 = vpop.permute.xlu0 %4491 }
 0xf1a   :  { %v4496_v55 = vrot.slane %v4494_v50, 4  ;;  %v4495_v16 = vrot.slane %v4492_v12, 4 }
 0xf1c   :  { %4505 = vst.msk [vmem:[#allocation2 + $0x10] sm:$0xf] %vm302_vm6, %v4496_v55  ;;  %v4497_v9 = vsel %vm289_vm5, %v4495_v16, %v4492_v12  ;;  %v4498_v53 = vsel %vm291_vm8, %v4495_v16, %v4496_v55  ;;  %vm6764_vm6 = vmmov %vm6739_vm0  ;;  %v4880_v16 = vunpack.c.l.bf16 %v4878_v8 }
 0xf1d   :  { %v4499_v47 = vsel %vm289_vm5, %v4498_v53, %v4494_v50  ;;  %4503 = vst.msk [vmem:[#allocation2] sm:$0xff] %vm5442_vm7, %v4497_v9  ;;  %vm6763_vm5 = vmmov %vm6739_vm0  ;;  %v4881_v9 = vunpack.c.l.bf16 %v4879_v22 }
 0xf1e   :  { %4534 = vrot.lane.b32.xlu1 %v4499_v47, %s5350_s23  ;;  %v4529_v48 = vcombine.high %v4499_v47, %v4499_v47  ;;  %v4510_v15 = vmul.f32 %v4499_v47, %v6154_v10  ;;  %v4876_v62 = vmul.f32 %v4499_v47, %v6141_v60  ;;  %v4516_v60 = vld [vmem:[%s6716_s9 + $0x14] sm:$0xc]  ;;  %vm6765_vm7 = vmmov %vm6739_vm0 }
 0xf1f   :  { %v4518_v39 = vunpack.c.l.bf16 %v4516_v60 }
 0xf20   :  { %v4705_v7 = vcombine.high %v4510_v15, %v4510_v15  ;;  %v4891_v10 = vcombine.high %v4876_v62, %v4876_v62 }
 0xf21   :  { %v4522_v20 = vrot.slane %v4518_v39, 4 }
 0xf23   :  { %v4508_v11 = vld [vmem:[#allocation2 + $0x10] sm:$0xf] }
 0xf24   :  { %4538 = vrot.lane.b32.xlu0 %v4508_v11, %s5350_s23  ;;  %v4506_v19 = vld [vmem:[#allocation2] sm:$0xff] }
 0xf25   :  { %v4509_v28 = vmul.f32 %v4506_v19, %v6125_v43  ;;  %v4528_v30 = vcombine.high %v4506_v19, %v4506_v19  ;;  %v4875_v13 = vmul.f32 %v4506_v19, %v6146_v29  ;;  %v4511_v43 = vmul.f32 %v4508_v11, %v6120_v35  ;;  %v4874_v29 = vld [vmem:[#allocation2 + $0x10] sm:$0xf] }
 0xf26   :  { %v4877_v35 = vmul.f32 %v4874_v29, %v6135_v41  ;;  %v4517_v41 = vld [vmem:[%s6716_s9 + $0x18] sm:$0x3] }
 0xf27   :  { %4706 = vrot.lane.b32.xlu1 %v4509_v28, %s5341_s2  ;;  %v4704_v23 = vcombine.high %v4509_v28, %v4509_v28  ;;  %v4890_v51 = vcombine.high %v4875_v13, %v4875_v13 }
 0xf28   :  { %4530 = vrot.lane.b32.xlu0 %v4506_v19, %s5350_s23 }
 0xf2b   :  { %4536 = vrot.lane.b32.xlu1 %v4529_v48, %s5350_s23  ;;  %v4884_v48 = vrot.slane %v4880_v16, 4 }
 0xf2c   :  { %4532 = vrot.lane.b32.xlu0 %v4528_v30, %s5350_s23  ;;  %v4885_v30 = vrot.slane %v4881_v9, 4 }
 0xf2f   :  { %4708 = vrot.lane.b32.xlu1 %v4704_v23, %s5341_s2 }
 0xf30   :  { %4710 = vrot.lane.b32.xlu0 %v4510_v15, %s5341_s2 }
 0xf33   :  { %4714 = vrot.lane.b32.xlu1 %v4511_v43, %s5341_s2 }
 0xf34   :  { %4894 = vrot.lane.b32.xlu0 %v4890_v51, %s5346_s29 }
 0xf37   :  { %4896 = vrot.lane.b32.xlu1 %v4876_v62, %s5346_s29 }
 0xf38   :  { %4712 = vrot.lane.b32.xlu0 %v4705_v7, %s5341_s2 }
 0xf3b   :  { %4898 = vrot.lane.b32.xlu1 %v4891_v10, %s5346_s29 }
 0xf3c   :  { %4892 = vrot.lane.b32.xlu0 %v4875_v13, %s5346_s29  ;;  %v4886_v13 = vsel %vm291_vm8, %v4884_v48, %v4885_v30 }
 0xf40   :  { %4900 = vrot.lane.b32.xlu0 %v4877_v35, %s5346_s29 }
 0xf5f   :  { %1105 = vadd.xlane.f32.xlu0 %v6061_v45  ;;  %184 = vadd.xlane.f32.xlu1 %v5536_v52  ;;  %v4519_v52 = vunpack.c.l.bf16 %v4517_v41 }
 0xf63   :  { %2581 = vadd.xlane.f32.xlu0 %v6310_v40  ;;  %1114 = vadd.xlane.f32.xlu1 %v6063_v44  ;;  %v4523_v44 = vrot.slane %v4519_v52, 4 }
 0xf65   :  { %v4524_v5 = vsel %vm291_vm8, %v4522_v20, %v4523_v44 }
 0xf67   :  { %202 = vadd.xlane.f32.xlu0 %v5542_v59  ;;  %v4512_v59 = vld [vmem:[%s6716_s9 + $0x10] sm:$0xc] }
 0xf68   :  { %v4514_v54 = vunpack.c.l.bf16 %v4512_v59 }
 0xf6a   :  { %v4698_v4 = vrot.slane %v4514_v54, 4 }
 0xf6b   :  { %2590 = vadd.xlane.f32.xlu0 %v6312_v31  ;;  %v4513_v31 = vld [vmem:[%s6716_s9 + $0x14] sm:$0x3] }
 0xf6c   :  { %v4515_v56 = vunpack.c.l.bf16 %v4513_v31 }
 0xf6e   :  { %v4699_v17 = vrot.slane %v4515_v56, 4  ;;  %v177_v56 = vld [vmem:[%s6710_s4] sm:$0xff] }
 0xf70   :  { %v4700_v55 = vsel %vm291_vm8, %v4698_v4, %v4699_v17  ;;  %v2576_v4 = vld [vmem:[%s6714_s7 + $0x4] sm:$0xff]  ;;  %v1101_v17 = vld [vmem:[%s6711_s5 + $0x10] sm:$0xff] }
 0xf90   :  { %v4535_v2 = vpop.permute.xlu1 %4534 }
 0xf96   :  { %v4539_v45 = vpop.permute.xlu0 %4538 }
 0xf99   :  { %v4707_v1 = vpop.permute.xlu1 %4706 }
 0xf9a   :  { %v4531_v40 = vpop.permute.xlu0 %4530 }
 0xf9d   :  { %v4537_v32 = vpop.permute.xlu1 %4536 }
 0xf9e   :  { %v4533_v25 = vpop.permute.xlu0 %4532  ;;  %v4542_v61 = vsel %vm998_vm11, %v4535_v2, %v4537_v32  ;;  %v4543_v38 = vsel %vm998_vm11, %v4537_v32, %v4539_v45 }
 0xf9f   :  { %v4540_v18 = vsel %vm998_vm11, %v4531_v40, %v4533_v25  ;;  %v4541_v3 = vsel %vm998_vm11, %v4533_v25, %v4535_v2  ;;  %5223 = vmatprep.subr.msk.mxu1 %vm291_vm8, %v4543_v38  ;;  %vm6768_vm11 = vmmov %vm6739_vm0 }
 0xfa0   :  { %5220 = vmatprep.subr.msk.mxu0 %vm291_vm8, %v4541_v3  ;;  %5224 = vmatpush1.msk.msra.mxu1 %vm291_vm8, %v4542_v61 }
 0xfa1   :  { %5221 = vmatpush1.msk.msra.mxu0 %vm291_vm8, %v4540_v18  ;;  %v4709_v57 = vpop.permute.xlu1 %4708  ;;  %5225 = vmatmul.mubr.msk.f32.vlgmr.msra.gmra.mrb[18].mxu1 %vm6763_vm5, %v4524_v5  ;;  %v1100_v18 = vld [vmem:[%s6710_s4 + $0x10] sm:$0xff] }
 0xfa2   :  { %5222 = vmatmul.mubr.msk.f32.vlgmr.msra.gmra.mrb[18].mxu0 %vm6764_vm6, %v4524_v5  ;;  %v4711_v49 = vpop.permute.xlu0 %4710  ;;  %4865 = vmatprep.mubr.f32.mxu1 %v6734_v63  ;;  %v4716_v24 = vsel %vm437_vm13, %v4707_v1, %v4709_v57 }
 0xfa3   :  { %v4717_v46 = vsel %vm437_vm13, %v4709_v57, %v4711_v49  ;;  %4794 = vmatprep.mubr.f32.mxu0 %v6734_v63 }
 0xfa4   :  { %5226 = vmatprep.subr.msk.mxu0 %vm291_vm8, %v4717_v46 }
 0xfa5   :  { %5227 = vmatpush1.msk.msra.mxu0 %vm291_vm8, %v4716_v24  ;;  %v4715_v50 = vpop.permute.xlu1 %4714 }
 0xfa6   :  { %v4895_v12 = vpop.permute.xlu0 %4894 }
 0xfa9   :  { %v4897_v53 = vpop.permute.xlu1 %4896 }
 0xfaa   :  { %5228 = vmatmul.mubr.msk.f32.vlgmr.msra.gmra.mrb[18].mxu0 %vm6765_vm7, %v4700_v55  ;;  %v4713_v47 = vpop.permute.xlu0 %4712  ;;  %v4903_v11 = vsel %vm857_vm1, %v4895_v12, %v4897_v53 }
 0xfab   :  { %v4718_v19 = vsel %vm437_vm13, %v4711_v49, %v4713_v47  ;;  %v4719_v28 = vsel %vm437_vm13, %v4713_v47, %v4715_v50  ;;  %5232 = vmatprep.subr.msk.mxu0 %vm291_vm8, %v4903_v11  ;;  %4980 = vmatprep.mubr.f32.mxu0 %v6734_v63  ;;  %vm6767_vm13 = vmmov %vm6739_vm0 }
 0xfac   :  { %5229 = vmatprep.subr.msk.mxu1 %vm291_vm8, %v4719_v28 }
 0xfad   :  { %5230 = vmatpush1.msk.msra.mxu1 %vm291_vm8, %v4718_v19  ;;  %v4899_v43 = vpop.permute.xlu1 %4898 }
 0xfae   :  { %5231 = vmatmul.mubr.msk.f32.vlgmr.msra.gmra.mrb[18].mxu1 %vm6766_vm9, %v4700_v55  ;;  %v4893_v23 = vpop.permute.xlu0 %4892  ;;  %v4904_v7 = vsel %vm857_vm1, %v4897_v53, %v4899_v43 }
 0xfaf   :  { %v4902_v15 = vsel %vm857_vm1, %v4893_v23, %v4895_v12  ;;  %5051 = vmatprep.mubr.f32.mxu1 %v6734_v63  ;;  %v2577_v12 = vld [vmem:[%s6715_s8 + $0x4] sm:$0xff] }
 0xfb0   :  { %5233 = vmatpush1.msk.msra.mxu0 %vm291_vm8, %v4902_v15 }
 0xfb2   :  { %5234 = vmatmul.mubr.msk.f32.vlgmr.msra.gmra.mrb[18].mxu0 %vm6767_vm13, %v4886_v13  ;;  %v4901_v51 = vpop.permute.xlu0 %4900 }
 0xfb3   :  { %v4905_v62 = vsel %vm857_vm1, %v4899_v43, %v4901_v51 }
 0xfb4   :  { %5235 = vmatprep.subr.msk.mxu1 %vm291_vm8, %v4905_v62 }
 0xfb5   :  { %5236 = vmatpush1.msk.msra.mxu1 %vm291_vm8, %v4904_v7  ;;  %v179_v7 = vld [vmem:[%s6711_s5] sm:$0xff] }
 0xfb6   :  { %5237 = vmatmul.mubr.msk.f32.vlgmr.msra.gmra.mrb[18].mxu1 %vm6768_vm11, %v4886_v13 }
 0xfec   :  { %v1106_v10 = vpop.xlane.xlu0 %1105  ;;  %v185_v29 = vpop.xlane.xlu1 %184 }
 0xfed   :  { %v1116_v35 = vmul.f32 0.001953125, %v1106_v10  ;;  %v209_v2 = vmul.f32 0.001953125, %v185_v29 }
 0xfef   :  { %v1118_v41 = vmul.f32 %v1116_v35, %v1116_v35  ;;  %v213_v1 = vmul.f32 %v209_v2, %v209_v2 }
 0xff0   :  { %v2582_v63 = vpop.xlane.xlu0 %2581  ;;  %v1115_v60 = vpop.xlane.xlu1 %1114 }
 0xff1   :  { %v1117_v45 = vmul.f32 0.001953125, %v1115_v60  ;;  %v2592_v40 = vmul.f32 0.001953125, %v2582_v63 }
 0xff3   :  { %v1119_v39 = vsub.f32 %v1117_v45, %v1118_v41  ;;  %v2594_v32 = vmul.f32 %v2592_v40, %v2592_v40 }
 0xff4   :  { %v203_v52 = vpop.xlane.xlu0 %202 }
 0xff5   :  { %v1120_v20 = vadd.f32 1e-05, %v1119_v39  ;;  %v211_v44 = vmul.f32 0.001953125, %v203_v52 }
 0xff7   :  { %5327 = vrsqrt.f32 %v1120_v20  ;;  %v215_v59 = vsub.f32 %v211_v44, %v213_v1 }
 0xff8   :  { %v2591_v31 = vpop.xlane.xlu0 %2590 }
 0xff9   :  { %v217_v25 = vadd.f32 1e-05, %v215_v59  ;;  %v2593_v61 = vmul.f32 0.001953125, %v2591_v31 }
 0xffb   :  { %5329 = vrsqrt.f32 %v217_v25  ;;  %v2595_v38 = vsub.f32 %v2593_v61, %v2594_v32 }
 0xffd   :  { %v2596_v5 = vadd.f32 1e-05, %v2595_v38 }
 0xfff   :  { %5331 = vrsqrt.f32 %v2596_v5 }
0x1001   :  { %v5328_v3 = vpop.eup %5327 }
0x1002   :  { %v1122_v54 = vmul.f32 %v5328_v3, %v1100_v18 }
0x1004   :  { %v1123_v46 = vmul.f32 %v1122_v54, %v1116_v35 }
0x1005   :  { %v5330_v57 = vpop.eup %5329 }
0x1006   :  { %v221_v49 = vmul.f32 %v5330_v57, %v177_v56  ;;  %v1124_v22 = vsub.f32 %v1101_v17, %v1123_v46 }
0x1008   :  { %229 = vperm.xlu0 %5308, %v221_v49   ;;  %v223_v24 = vmul.f32 %v221_v49, %v209_v2 }
0x1009   :  { %v5332_v8 = vpop.eup %5331 }
0x100a   :  { %v2598_v50 = vmul.f32 %v5332_v8, %v2576_v4  ;;  %v225_v10 = vsub.f32 %v179_v7, %v223_v24 }
0x100c   :  { %1136 = vperm.xlu0 %5308, %v1124_v22   ;;  %v2599_v55 = vmul.f32 %v2598_v50, %v2592_v40 }
0x100e   :  { %v2600_v16 = vsub.f32 %v2577_v12, %v2599_v55 }
0x1010   :  { %2612 = vperm.xlu0 %5308, %v2600_v16  }
0x1085   :  { %v6609_v9 = vpop.f32.mrb[18].mxu0 }
0x1086   :  { %v5069_v53 = vmul.f32 %v6609_v9, %v6609_v9  ;;  %v6613_v47 = vpop.f32.mrb[19].mxu0 }
0x1087   :  { %v5064_v11 = vadd.f32 %v6613_v47, %v6609_v9  ;;  %v5070_v19 = vmul.f32 %v6613_v47, %v6613_v47  ;;  %v230_v63 = vpop.permute.xlu0 %229 }
0x1088   :  { %v237_v45 = vmul.f32 %v230_v63, %v5500_v33  ;;  %v238_v39 = vmul.f32 %v230_v63, %v5506_v36  ;;  %v239_v52 = vmul.f32 %v230_v63, %v5502_v34  ;;  %v240_v40 = vmul.f32 %v230_v63, %v5508_v37 }
0x1089   :  { %v5073_v28 = vadd.f32 %v5070_v19, %v5069_v53  ;;  %v6619_v48 = vpop.f32.mrb[18].mxu1 }
0x108a   :  { %v5065_v30 = vadd.f32 %v5064_v11, %v6619_v48  ;;  %v5071_v23 = vmul.f32 %v6619_v48, %v6619_v48  ;;  %v6624_v15 = vpop.f32.mrb[19].mxu1 }
0x108b   :  { %v5072_v13 = vmul.f32 %v6624_v15, %v6624_v15  ;;  %v1137_v18 = vpop.permute.xlu0 %1136 }
0x108c   :  { %v5074_v43 = vadd.f32 %v5073_v28, %v5071_v23  ;;  %v5066_v51 = vadd.f32 %v5065_v30, %v6624_v15  ;;  %v5062_v23 = vld [vmem:[%s6717_s10 + $0xc] sm:$0xff] }
0x108e   :  { %v5075_v62 = vadd.f32 %v5074_v43, %v5072_v13  ;;  %5067 = vadd.xlane.f32.xlu1 %v5066_v51 }
0x1092   :  { %5076 = vadd.xlane.f32.xlu1 %v5075_v62 }
0x10a3   :  { %247 = vperm.xlu1 %5307, %v225_v10  }
0x10a7   :  { %1127 = vperm.xlu1 %5307, %v1122_v54  }
0x10ab   :  { %2603 = vperm.xlu1 %5307, %v2598_v50   ;;  %v2613_v50 = vpop.permute.xlu0 %2612 }
0x111b   :  { %v5068_v29 = vpop.xlane.xlu1 %5067 }
0x111c   :  { %v6632_v35 = vmul.f32 0.001953125, %v5068_v29 }
0x111e   :  { %v5080_v41 = vmul.f32 %v6632_v35, %v6632_v35 }
0x111f   :  { %v5077_v60 = vpop.xlane.xlu1 %5076 }
0x1120   :  { %v5079_v2 = vmul.f32 0.001953125, %v5077_v60 }
0x1122   :  { %v5081_v1 = vsub.f32 %v5079_v2, %v5080_v41  ;;  %v5063_v41 = vld [vmem:[%s6718_s11 + $0xc] sm:$0xff] }
0x1123   :  { %v248_v20 = vpop.permute.xlu1 %247 }
0x1124   :  { %v5082_v44 = vadd.f32 1e-05, %v5081_v1  ;;  %v255_v59 = vadd.f32 %v248_v20, %v237_v45  ;;  %v256_v31 = vadd.f32 %v248_v20, %v238_v39  ;;  %v257_v32 = vadd.f32 %v248_v20, %v239_v52 }
0x1125   :  { %v258_v25 = vadd.f32 %v248_v20, %v240_v40 }
0x1126   :  { %5333 = vrsqrt.f32 %v5082_v44  ;;  %v263_v61 = vmax.f32 %v255_v59, 0.0  ;;  %v264_v38 = vmax.f32 %v256_v31, 0.0  ;;  %v265_v5 = vmax.f32 %v257_v32, 0.0 }
0x1127   :  { %v266_v3 = vmax.f32 %v258_v25, 0.0  ;;  %v1128_v33 = vpop.permute.xlu1 %1127 }
0x1128   :  { %v271_v54 = vmin.f32 %v263_v61, 6.0  ;;  %v272_v36 = vmin.f32 %v264_v38, 6.0  ;;  %v273_v56 = vmin.f32 %v265_v5, 6.0  ;;  %v1130_v34 = vmul.f32 %v1128_v33, %v6041_v26 }
0x1129   :  { %v274_v57 = vmin.f32 %v266_v3, 6.0  ;;  %v1131_v37 = vmul.f32 %v1128_v33, %v6045_v58  ;;  %v1132_v49 = vmul.f32 %v1128_v33, %v6051_v14  ;;  %v1133_v46 = vmul.f32 %v1128_v33, %v6056_v0 }
0x112a   :  { %1151 = vst [vmem:[%s6719_s12] sm:$0xff] %v271_v54  ;;  %1152 = vst [vmem:[%s6719_s12 + $0x8] sm:$0xff] %v272_v36  ;;  %v1139_v26 = vadd.f32 %v1137_v18, %v1130_v34 }
0x112b   :  { %1153 = vst [vmem:[%s6719_s12 + $0x10] sm:$0xff] %v273_v56  ;;  %1154 = vst [vmem:[%s6719_s12 + $0x18] sm:$0xff] %v274_v57  ;;  %v1140_v58 = vadd.f32 %v1137_v18, %v1131_v37  ;;  %v1141_v14 = vadd.f32 %v1137_v18, %v1132_v49  ;;  %v1142_v0 = vadd.f32 %v1137_v18, %v1133_v46  ;;  %v2604_v4 = vpop.permute.xlu1 %2603 }
0x112c   :  { %v1143_v17 = vmax.f32 %v1139_v26, 0.0  ;;  %v2606_v24 = vmul.f32 %v2604_v4, %v6290_v6  ;;  %v2607_v8 = vmul.f32 %v2604_v4, %v6294_v21  ;;  %v2608_v22 = vmul.f32 %v2604_v4, %v6300_v42 }
0x112d   :  { %v1144_v12 = vmax.f32 %v1140_v58, 0.0  ;;  %v1145_v55 = vmax.f32 %v1141_v14, 0.0  ;;  %v1146_v16 = vmax.f32 %v1142_v0, 0.0  ;;  %v2609_v53 = vmul.f32 %v2604_v4, %v6305_v27 }
0x112e   :  { %v1147_v11 = vmin.f32 %v1143_v17, 6.0  ;;  %v2615_v19 = vadd.f32 %v2613_v50, %v2606_v24  ;;  %v2616_v28 = vadd.f32 %v2613_v50, %v2607_v8  ;;  %v2617_v30 = vadd.f32 %v2613_v50, %v2608_v22 }
0x112f   :  { %v1148_v13 = vmin.f32 %v1144_v12, 6.0  ;;  %v1149_v6 = vmin.f32 %v1145_v55, 6.0  ;;  %v1150_v43 = vmin.f32 %v1146_v16, 6.0  ;;  %v2618_v21 = vadd.f32 %v2613_v50, %v2609_v53 }
0x1130   :  { %v5334_v51 = vpop.eup %5333  ;;  %1155 = vst [vmem:[%s6719_s12 + $0x60] sm:$0xff] %v1147_v11  ;;  %v2619_v42 = vmax.f32 %v2615_v19, 0.0  ;;  %v2620_v62 = vmax.f32 %v2616_v28, 0.0  ;;  %v2621_v27 = vmax.f32 %v2617_v30, 0.0 }
0x1131   :  { %1156 = vst [vmem:[%s6719_s12 + $0x68] sm:$0xff] %v1148_v13  ;;  %1157 = vst [vmem:[%s6719_s12 + $0x70] sm:$0xff] %v1149_v6  ;;  %v2622_v7 = vmax.f32 %v2618_v21, 0.0  ;;  %v5084_v10 = vmul.f32 %v5334_v51, %v5062_v23 }
0x1132   :  { %1158 = vst [vmem:[%s6719_s12 + $0x78] sm:$0xff] %v1150_v43  ;;  %v2623_v29 = vmin.f32 %v2619_v42, 6.0  ;;  %v2624_v63 = vmin.f32 %v2620_v62, 6.0  ;;  %v2625_v60 = vmin.f32 %v2621_v27, 6.0 }
0x1133   :  { %v2626_v2 = vmin.f32 %v2622_v7, 6.0  ;;  %5089 = vperm.xlu1 %5307, %v5084_v10   ;;  %v5085_v45 = vmul.f32 %v5084_v10, %v6632_v35 }
0x1134   :  { %2627 = vst [vmem:[%s6719_s12 + $0x20] sm:$0xff] %v2623_v29  ;;  %2628 = vst [vmem:[%s6719_s12 + $0x28] sm:$0xff] %v2624_v63 }
0x1135   :  { %2629 = vst [vmem:[%s6719_s12 + $0x30] sm:$0xff] %v2625_v60  ;;  %2630 = vst [vmem:[%s6719_s12 + $0x38] sm:$0xff] %v2626_v2  ;;  %v5086_v39 = vsub.f32 %v5063_v41, %v5085_v45 }
0x1137   :  { %5098 = vperm.xlu0 %5308, %v5086_v39  }
0x11b2   :  { %v5090_v52 = vpop.permute.xlu1 %5089 }
0x11b3   :  { %v5092_v35 = vmul.f32 %v5090_v52, %v6609_v9  ;;  %v5093_v1 = vmul.f32 %v5090_v52, %v6613_v47  ;;  %v5094_v40 = vmul.f32 %v5090_v52, %v6619_v48  ;;  %v5095_v20 = vmul.f32 %v5090_v52, %v6624_v15 }
0x11b6   :  { %v5099_v44 = vpop.permute.xlu0 %5098 }
0x11b7   :  { %v5101_v59 = vadd.f32 %v5099_v44, %v5092_v35  ;;  %v5102_v31 = vadd.f32 %v5099_v44, %v5093_v1  ;;  %v5103_v32 = vadd.f32 %v5099_v44, %v5094_v40  ;;  %v5104_v25 = vadd.f32 %v5099_v44, %v5095_v20 }
0x11b9   :  { %v5105_v61 = vmax.f32 %v5101_v59, 0.0  ;;  %v5106_v38 = vmax.f32 %v5102_v31, 0.0  ;;  %v5107_v5 = vmax.f32 %v5103_v32, 0.0  ;;  %v5108_v18 = vmax.f32 %v5104_v25, 0.0 }
0x11bb   :  { %v5109_v3 = vmin.f32 %v5105_v61, 6.0  ;;  %v5110_v33 = vmin.f32 %v5106_v38, 6.0  ;;  %v5111_v54 = vmin.f32 %v5107_v5, 6.0  ;;  %v5112_v36 = vmin.f32 %v5108_v18, 6.0 }
0x11bd   :  { %5113 = vst [vmem:[%s6719_s12 + $0x40] sm:$0xff] %v5109_v3  ;;  %5114 = vst [vmem:[%s6719_s12 + $0x48] sm:$0xff] %v5110_v33 }
0x11be   :  { %5115 = vst [vmem:[%s6719_s12 + $0x50] sm:$0xff] %v5111_v54  ;;  %5116 = vst [vmem:[%s6719_s12 + $0x58] sm:$0xff] %v5112_v36 }

</bundles_post_ra>
